<compile_context>
chip_gen: v7x
topology: tpu7x:2x2x1
jax: 0.10.0
libtpu: 0.0.40
codegen_flags: <defaults>
</compile_context>

<pallas_src>
import jax
import jax.numpy as jnp
from jax import lax
from jax.experimental import pallas as pl
from jax.experimental.pallas import tpu as pltpu


def _round_up(x, m):
    return (x + m - 1) // m * m


def _gru_gates(gx, gh, h_prev, H):
    """PyTorch GRU gate math in feature-major layout.

    gx, gh: (3H, Bb) with rows [0:H]=r, [H:2H]=z, [2H:3H]=n; h_prev: (H, Bb).
    Biases are already folded into gx / gh.  All math in f32.
    """
    r = jax.nn.sigmoid(gx[0:H] + gh[0:H])
    z = jax.nn.sigmoid(gx[H:2 * H] + gh[H:2 * H])
    n = jnp.tanh(gx[2 * H:3 * H] + r * gh[2 * H:3 * H])
    return (1.0 - z) * n + z * h_prev


def word_att_net_kernel(x_ref, mask_ref,
                        wih_ref, bih_ref, whh_ref, bhh_ref,
                        w_att_ref, b_att_ref, ctx_ref,
                        out_ref,
                        gx_ref, hcat_ref):
    T, E, Bb = x_ref.shape
    H2 = out_ref.shape[0]            # 2H
    H = H2 // 2
    H3, H6 = 3 * H, 6 * H

    wih = wih_ref[...]               # (6H, E)  bf16  (fwd rows stacked on bwd rows)
    bih = bih_ref[...]               # (6H, 1)  f32
    whh = whh_ref[...]               # (6H, 2H) bf16  block-diag(W_hh_f, W_hh_b)
    bhh = bhh_ref[...]               # (6H, 1)  f32

    # ---- hoisted input->hidden projections (off the serial chain) -------------
    # One (6H,E)@(E,Bb) matmul per timestep covering BOTH directions; batch on
    # the lane axis so every MXU result is N=Bb wide and stores are unmasked.
    for t in range(T):
        gx_ref[t] = (jnp.dot(wih, x_ref[t], preferred_element_type=jnp.float32)
                     + bih)

    # ---- fwd/bwd recurrences interleaved; one fused block-diag matmul / step --
    h_f = jnp.zeros((H, Bb), jnp.float32)
    h_b = jnp.zeros((H, Bb), jnp.float32)
    # TODO(synk): for T > 16 switch this static unroll to
    # lax.fori_loop(..., unroll=2..4) over the same body to bound vreg liveness.
    for t in range(T):
        tb = T - 1 - t
        h_cat = jnp.concatenate([h_f, h_b], axis=0)                  # (2H, Bb) f32
        gh = jnp.dot(whh, h_cat.astype(jnp.bfloat16),
                     preferred_element_type=jnp.float32) + bhh       # (6H, Bb) f32
        h_f = _gru_gates(gx_ref[t, 0:H3, :], gh[0:H3], h_f, H)
        h_b = _gru_gates(gx_ref[tb, H3:H6, :], gh[H3:H6], h_b, H)
        hcat_ref[t, 0:H, :] = h_f            # lane-dense, sublane-aligned stores
        hcat_ref[tb, H:H2, :] = h_b

    # ---- fused word attention (batch stays on the lane axis throughout) -------
    w_att = w_att_ref[...]           # (2H, 2H) bf16, used as u = W @ h + b
    b_att = b_att_ref[...]           # (2H, 1)  f32
    ctx = ctx_ref[...]               # (2H, 1)  f32
    mask = mask_ref[...]             # (T, Bb)  f32
    neg_big = jnp.float32(-1e9)

    s = []
    for t in range(T):
        h_t = hcat_ref[t]                                            # (2H, Bb)
        u_t = jnp.tanh(jnp.dot(w_att, h_t.astype(jnp.bfloat16),
                               preferred_element_type=jnp.float32) + b_att)
        # context "matmul" as VPU multiply + XLU sublane reduce (avoids N=1 MXU)
        s_t = jnp.sum(ctx * u_t, axis=0, keepdims=True)              # (1, Bb)
        s.append(jnp.where(mask[t:t + 1, :] < 0.5, neg_big, s_t))

    # masked softmax over T, kept as per-row (1, Bb) lane-dense values
    m = s[0]
    for t in range(1, T):
        m = jnp.maximum(m, s[t])
    e = [jnp.exp(s_t - m) for s_t in s]
    denom = e[0]
    for t in range(1, T):
        denom = denom + e[t]
    inv = pl.reciprocal(denom, approx=True)                          # EUP slot

    acc = jnp.zeros((H2, Bb), jnp.float32)
    for t in range(T):
        acc = acc + (e[t] * inv) * hcat_ref[t]       # (1,Bb) bcast over 2H sublanes
    out_ref[...] = acc


def prepare_params(params):
    """One-time weight prep: concat/block-diag fwd+bwd GRU weights, bf16 matmul
    operands, column-shaped (features, 1) biases for the batch-on-lanes layout."""
    H = params["w_hh_f"].shape[1]
    wih_cat = jnp.concatenate([params["w_ih_f"], params["w_ih_b"]], axis=0)   # (6H, E)
    whh_bd = jnp.zeros((6 * H, 2 * H), jnp.float32)
    whh_bd = whh_bd.at[0:3 * H, 0:H].set(params["w_hh_f"])
    whh_bd = whh_bd.at[3 * H:6 * H, H:2 * H].set(params["w_hh_b"])
    bih_cat = jnp.concatenate([params["b_ih_f"], params["b_ih_b"]]).reshape(6 * H, 1)
    bhh_cat = jnp.concatenate([params["b_hh_f"], params["b_hh_b"]]).reshape(6 * H, 1)
    return {
        "embedding": params["embedding"].astype(jnp.bfloat16),   # streamed tensor -> bf16
        "wih_cat": wih_cat.astype(jnp.bfloat16),
        "whh_bd": whh_bd.astype(jnp.bfloat16),
        "bih_cat": bih_cat.astype(jnp.float32),
        "bhh_cat": bhh_cat.astype(jnp.float32),
        "w_att": params["w_att"].astype(jnp.bfloat16),           # (2H,2H): u = W @ h + b
        "b_att": params["b_att"].reshape(-1, 1).astype(jnp.float32),
        "ctx": params["context_vec"].astype(jnp.float32),        # (2H, 1)
    }


def _full_spec(arr):
    zeros = (0,) * arr.ndim
    # Constant weights: same block every grid step.
    # (pl.Buffered(1) would shave a little VMEM here; left at default for safety.)
    return pl.BlockSpec(arr.shape, lambda i, _z=zeros: _z)


def word_att_net(x_ids, word_mask, prepared):
    """Embedding gather (plain-JAX glue) + gridded Pallas kernel (GRU + attention)."""
    emb = jnp.take(prepared["embedding"], x_ids, axis=0)         # (B, T, E) bf16
    B, T, E = emb.shape
    H = E // 2
    LANE = 128

    # Batch blocking: batch lives on the LANE axis inside the kernel.
    #  - B <= 128: single 8-aligned block (minimal padding; tiny batches can't
    #    fill the lanes anyway).
    #  - B  > 128: 128-wide lane-dense blocks -> >=2 grid steps so both v7x
    #    TensorCores get work ("parallel" axis); worst case pads <128 dead rows
    #    which are fully masked.  (A ragged last block would need a 2nd call.)
    if B > LANE:
        b_block = LANE
        b_pad = _round_up(B, LANE)
    else:
        b_block = b_pad = _round_up(max(B, 1), 8)

    # One-time wrapper-side layout plumbing: (B,T,E) -> (T,E,B), (B,T) -> (T,B).
    x_t = jnp.transpose(emb, (1, 2, 0))                          # (T, E, B) bf16
    mask_t = jnp.transpose(word_mask.astype(jnp.float32), (1, 0))  # (T, B) f32
    if b_pad != B:
        x_t = jnp.pad(x_t, ((0, 0), (0, 0), (0, b_pad - B)))
        mask_t = jnp.pad(mask_t, ((0, 0), (0, b_pad - B)))       # dead rows fully masked

    weight_args = (
        prepared["wih_cat"], prepared["bih_cat"],
        prepared["whh_bd"], prepared["bhh_cat"],
        prepared["w_att"], prepared["b_att"], prepared["ctx"],
    )
    n_blocks = b_pad // b_block

    cost = pl.CostEstimate(
        flops=int(b_pad * T * (2 * E * 6 * H + 2 * 2 * H * 6 * H
                               + 2 * 2 * H * 2 * H + 4 * 2 * H)),
        transcendentals=int(b_pad * T * (8 * H + 1)),
        bytes_accessed=int(x_t.size * 2 + mask_t.size * 4 + b_pad * 2 * H * 4
                           + n_blocks * sum(int(w.size) * w.dtype.itemsize
                                            for w in weight_args)),
    )

    out_t = pl.pallas_call(
        word_att_net_kernel,
        out_shape=jax.ShapeDtypeStruct((2 * H, b_pad), jnp.float32),
        grid_spec=pltpu.PrefetchScalarGridSpec(
            num_scalar_prefetch=0,
            grid=(n_blocks,),
            in_specs=[
                pl.BlockSpec((T, E, b_block), lambda i: (0, 0, i)),
                pl.BlockSpec((T, b_block), lambda i: (0, i)),
            ] + [_full_spec(w) for w in weight_args],
            out_specs=pl.BlockSpec((2 * H, b_block), lambda i: (0, i)),
            scratch_shapes=[
                pltpu.VMEM((T, 6 * H, b_block), jnp.float32),   # gx (fwd+bwd gates)
                pltpu.VMEM((T, 2 * H, b_block), jnp.float32),   # concatenated hidden states
            ],
        ),
        compiler_params=pltpu.CompilerParams(
            dimension_semantics=("parallel",),           # megacore batch split on v7x
            vmem_limit_bytes=32 * 1024 * 1024,           # explicit (v5e default is 16 MiB)
        ),
        cost_estimate=cost,
    )(x_t, mask_t, *weight_args)

    return jnp.transpose(out_t, (1, 0))[:B]              # back to (B, 2H)


def word_att_net_reference(x_ids, word_mask, params):
    """Pure-JAX f32 reference reproducing the PyTorch forward semantics."""
    emb = jnp.take(params["embedding"], x_ids, axis=0).astype(jnp.float32)
    B, T, E = emb.shape
    H = E // 2

    def run_dir(wih, whh, bih, bhh, reverse):
        xs = jnp.transpose(emb, (1, 0, 2))            # (T, B, E)
        if reverse:
            xs = xs[::-1]

        def step(h, x_t):
            gx = x_t @ wih.T + bih
            gh = h @ whh.T + bhh
            r = jax.nn.sigmoid(gx[:, :H] + gh[:, :H])
            z = jax.nn.sigmoid(gx[:, H:2 * H] + gh[:, H:2 * H])
            n = jnp.tanh(gx[:, 2 * H:] + r * gh[:, 2 * H:])
            h_new = (1.0 - z) * n + z * h
            return h_new, h_new

        _, hs = lax.scan(step, jnp.zeros((B, H), jnp.float32), xs)
        if reverse:
            hs = hs[::-1]
        return jnp.transpose(hs, (1, 0, 2))           # (B, T, H)

    hf = run_dir(params["w_ih_f"], params["w_hh_f"], params["b_ih_f"], params["b_hh_f"], False)
    hb = run_dir(params["w_ih_b"], params["w_hh_b"], params["b_ih_b"], params["b_hh_b"], True)
    xg = jnp.concatenate([hf, hb], axis=-1)           # (B, T, 2H)
    u = jnp.tanh(xg @ params["w_att"].T + params["b_att"])
    att = u @ params["context_vec"]                   # (B, T, 1)
    att = jnp.where(word_mask[:, :, None] == 0, -1e9, att)
    att = jax.nn.softmax(att, axis=1)
    return jnp.sum(xg * att, axis=1)                  # (B, 2H)


if __name__ == "__main__":
    # small shapes consistent with the module: vocab=50, embed_dim=32 -> H=16, T=8, B=2
    vocab_size, embed_dim, max_sent_len, padding_idx = 50, 32, 8, 0
    batch = 2
    H = embed_dim // 2
    bound = 1.0 / (H ** 0.5)

    key = jax.random.PRNGKey(0)
    ks = jax.random.split(key, 16)

    def unif(k, shape, lo=-bound, hi=bound):
        return jax.random.uniform(k, shape, jnp.float32, lo, hi)

    params = {
        "embedding": jax.random.normal(ks[0], (vocab_size, embed_dim), jnp.float32)
                        .at[padding_idx].set(0.0),
        "w_ih_f": unif(ks[1], (3 * H, embed_dim)),
        "w_hh_f": unif(ks[2], (3 * H, H)),
        "b_ih_f": unif(ks[3], (3 * H,)),
        "b_hh_f": unif(ks[4], (3 * H,)),
        "w_ih_b": unif(ks[5], (3 * H, embed_dim)),
        "w_hh_b": unif(ks[6], (3 * H, H)),
        "b_ih_b": unif(ks[7], (3 * H,)),
        "b_hh_b": unif(ks[8], (3 * H,)),
        "w_att": unif(ks[9], (2 * H, 2 * H)),
        "b_att": unif(ks[10], (2 * H,)),
        "context_vec": jax.random.uniform(ks[11], (2 * H, 1), jnp.float32),  # torch.rand
    }

    lengths = jnp.array([max_sent_len, 5], dtype=jnp.int32)
    word_mask = (jnp.arange(max_sent_len)[None, :] < lengths[:, None]).astype(jnp.float32)
    x_ids = jax.random.randint(ks[12], (batch, max_sent_len), 1, vocab_size, dtype=jnp.int32)
    x_ids = jnp.where(word_mask > 0, x_ids, padding_idx).astype(jnp.int32)

    prepared = prepare_params(params)                 # one-time weight concat / bf16 cast
    out = word_att_net(x_ids, word_mask, prepared)
    jax.block_until_ready(out)

    ref = word_att_net_reference(x_ids, word_mask, params)
    assert out.shape == (batch, 2 * H)
    # bf16 matmul operands + approx reciprocal -> loosened tolerance vs f32 reference
    assert jnp.allclose(out, ref, rtol=5e-2, atol=5e-2), (
        float(jnp.max(jnp.abs(out - ref))), out, ref)
    print("KERNEL_OK")
</pallas_src>

<mosaic_0001>
module attributes {stable_mosaic.version = 11 : i64} {
  func.func @word_att_net_kernel(%arg0: i32, %arg1: memref<8x32x8xbf16, #tpu.memory_space<vmem>>, %arg2: memref<8x8xf32, #tpu.memory_space<vmem>>, %arg3: memref<96x32xbf16, #tpu.memory_space<vmem>>, %arg4: memref<96x1xf32, #tpu.memory_space<vmem>>, %arg5: memref<96x32xbf16, #tpu.memory_space<vmem>>, %arg6: memref<96x1xf32, #tpu.memory_space<vmem>>, %arg7: memref<32x32xbf16, #tpu.memory_space<vmem>>, %arg8: memref<32x1xf32, #tpu.memory_space<vmem>>, %arg9: memref<32x1xf32, #tpu.memory_space<vmem>>, %arg10: memref<32x8xf32, #tpu.memory_space<vmem>>, %arg11: memref<8x96x8xf32, #tpu.memory_space<vmem>>, %arg12: memref<8x32x8xf32, #tpu.memory_space<vmem>>) attributes {dimension_semantics = [#tpu.dimension_semantics<parallel>], iteration_bounds = array<i64: 1>, scalar_prefetch = 0 : i64, scratch_operands = 2 : i64, tpu.core_type = #tpu.core_type<tc>, window_params = [{transform_indices = @transform_0, window_bounds = array<i64: 8, 32, 8>}, {transform_indices = @transform_1, window_bounds = array<i64: 8, 8>}, {pipeline_mode = #tpu.pipeline_mode<synchronous>, transform_indices = @transform_2, window_bounds = array<i64: 96, 32>}, {pipeline_mode = #tpu.pipeline_mode<synchronous>, transform_indices = @transform_3, window_bounds = array<i64: 96, 1>}, {pipeline_mode = #tpu.pipeline_mode<synchronous>, transform_indices = @transform_4, window_bounds = array<i64: 96, 32>}, {pipeline_mode = #tpu.pipeline_mode<synchronous>, transform_indices = @transform_5, window_bounds = array<i64: 96, 1>}, {pipeline_mode = #tpu.pipeline_mode<synchronous>, transform_indices = @transform_6, window_bounds = array<i64: 32, 32>}, {pipeline_mode = #tpu.pipeline_mode<synchronous>, transform_indices = @transform_7, window_bounds = array<i64: 32, 1>}, {pipeline_mode = #tpu.pipeline_mode<synchronous>, transform_indices = @transform_8, window_bounds = array<i64: 32, 1>}, {transform_indices = @transform_9, window_bounds = array<i64: 32, 8>}]} {
    %c0 = arith.constant 0 : index
    %c0_0 = arith.constant 0 : index
    %0 = vector.load %arg3[%c0, %c0_0] : memref<96x32xbf16, #tpu.memory_space<vmem>>, vector<96x32xbf16>
    %c0_1 = arith.constant 0 : index
    %c0_2 = arith.constant 0 : index
    %1 = vector.load %arg4[%c0_1, %c0_2] : memref<96x1xf32, #tpu.memory_space<vmem>>, vector<96x1xf32>
    %c0_3 = arith.constant 0 : index
    %c0_4 = arith.constant 0 : index
    %2 = vector.load %arg5[%c0_3, %c0_4] : memref<96x32xbf16, #tpu.memory_space<vmem>>, vector<96x32xbf16>
    %c0_5 = arith.constant 0 : index
    %c0_6 = arith.constant 0 : index
    %3 = vector.load %arg6[%c0_5, %c0_6] : memref<96x1xf32, #tpu.memory_space<vmem>>, vector<96x1xf32>
    %c0_7 = arith.constant 0 : index
    %c0_8 = arith.constant 0 : index
    %c0_9 = arith.constant 0 : index
    %4 = vector.load %arg1[%c0_7, %c0_8, %c0_9] : memref<8x32x8xbf16, #tpu.memory_space<vmem>>, vector<1x32x8xbf16>
    %5 = vector.shape_cast %4 : vector<1x32x8xbf16> to vector<32x8xbf16>
    %cst = arith.constant dense<0.000000e+00> : vector<96x8xf32>
    %6 = tpu.matmul %0, %5, %cst {dimension_numbers = #tpu.dot_dimension_numbers<[1], [0], [0], [1], [0, 0, 1, 1], [], []>} : vector<96x32xbf16>, vector<32x8xbf16>, vector<96x8xf32> -> vector<96x8xf32>
    %7 = vector.broadcast %1 : vector<96x1xf32> to vector<96x8xf32>
    %8 = arith.addf %6, %7 : vector<96x8xf32>
    %c0_10 = arith.constant 0 : index
    %c0_11 = arith.constant 0 : index
    %c0_12 = arith.constant 0 : index
    %9 = vector.load %arg11[%c0_10, %c0_11, %c0_12] : memref<8x96x8xf32, #tpu.memory_space<vmem>>, vector<1x96x8xf32>
    %10 = vector.shape_cast %9 : vector<1x96x8xf32> to vector<96x8xf32>
    %11 = vector.shape_cast %8 : vector<96x8xf32> to vector<1x96x8xf32>
    tpu.vector_store %arg11[%c0_10, %c0_11, %c0_12], %11 {strides = array<i32>} : memref<8x96x8xf32, #tpu.memory_space<vmem>>, vector<1x96x8xf32>,
    %c1 = arith.constant 1 : index
    %c0_13 = arith.constant 0 : index
    %c0_14 = arith.constant 0 : index
    %12 = vector.load %arg1[%c1, %c0_13, %c0_14] : memref<8x32x8xbf16, #tpu.memory_space<vmem>>, vector<1x32x8xbf16>
    %13 = vector.shape_cast %12 : vector<1x32x8xbf16> to vector<32x8xbf16>
    %cst_15 = arith.constant dense<0.000000e+00> : vector<96x8xf32>
    %14 = tpu.matmul %0, %13, %cst_15 {dimension_numbers = #tpu.dot_dimension_numbers<[1], [0], [0], [1], [0, 0, 1, 1], [], []>} : vector<96x32xbf16>, vector<32x8xbf16>, vector<96x8xf32> -> vector<96x8xf32>
    %15 = vector.broadcast %1 : vector<96x1xf32> to vector<96x8xf32>
    %16 = arith.addf %14, %15 : vector<96x8xf32>
    %c1_16 = arith.constant 1 : index
    %c0_17 = arith.constant 0 : index
    %c0_18 = arith.constant 0 : index
    %17 = vector.load %arg11[%c1_16, %c0_17, %c0_18] : memref<8x96x8xf32, #tpu.memory_space<vmem>>, vector<1x96x8xf32>
    %18 = vector.shape_cast %17 : vector<1x96x8xf32> to vector<96x8xf32>
    %19 = vector.shape_cast %16 : vector<96x8xf32> to vector<1x96x8xf32>
    tpu.vector_store %arg11[%c1_16, %c0_17, %c0_18], %19 {strides = array<i32>} : memref<8x96x8xf32, #tpu.memory_space<vmem>>, vector<1x96x8xf32>,
    %c2 = arith.constant 2 : index
    %c0_19 = arith.constant 0 : index
    %c0_20 = arith.constant 0 : index
    %20 = vector.load %arg1[%c2, %c0_19, %c0_20] : memref<8x32x8xbf16, #tpu.memory_space<vmem>>, vector<1x32x8xbf16>
    %21 = vector.shape_cast %20 : vector<1x32x8xbf16> to vector<32x8xbf16>
    %cst_21 = arith.constant dense<0.000000e+00> : vector<96x8xf32>
    %22 = tpu.matmul %0, %21, %cst_21 {dimension_numbers = #tpu.dot_dimension_numbers<[1], [0], [0], [1], [0, 0, 1, 1], [], []>} : vector<96x32xbf16>, vector<32x8xbf16>, vector<96x8xf32> -> vector<96x8xf32>
    %23 = vector.broadcast %1 : vector<96x1xf32> to vector<96x8xf32>
    %24 = arith.addf %22, %23 : vector<96x8xf32>
    %c2_22 = arith.constant 2 : index
    %c0_23 = arith.constant 0 : index
    %c0_24 = arith.constant 0 : index
    %25 = vector.load %arg11[%c2_22, %c0_23, %c0_24] : memref<8x96x8xf32, #tpu.memory_space<vmem>>, vector<1x96x8xf32>
    %26 = vector.shape_cast %25 : vector<1x96x8xf32> to vector<96x8xf32>
    %27 = vector.shape_cast %24 : vector<96x8xf32> to vector<1x96x8xf32>
    tpu.vector_store %arg11[%c2_22, %c0_23, %c0_24], %27 {strides = array<i32>} : memref<8x96x8xf32, #tpu.memory_space<vmem>>, vector<1x96x8xf32>,
    %c3 = arith.constant 3 : index
    %c0_25 = arith.constant 0 : index
    %c0_26 = arith.constant 0 : index
    %28 = vector.load %arg1[%c3, %c0_25, %c0_26] : memref<8x32x8xbf16, #tpu.memory_space<vmem>>, vector<1x32x8xbf16>
    %29 = vector.shape_cast %28 : vector<1x32x8xbf16> to vector<32x8xbf16>
    %cst_27 = arith.constant dense<0.000000e+00> : vector<96x8xf32>
    %30 = tpu.matmul %0, %29, %cst_27 {dimension_numbers = #tpu.dot_dimension_numbers<[1], [0], [0], [1], [0, 0, 1, 1], [], []>} : vector<96x32xbf16>, vector<32x8xbf16>, vector<96x8xf32> -> vector<96x8xf32>
    %31 = vector.broadcast %1 : vector<96x1xf32> to vector<96x8xf32>
    %32 = arith.addf %30, %31 : vector<96x8xf32>
    %c3_28 = arith.constant 3 : index
    %c0_29 = arith.constant 0 : index
    %c0_30 = arith.constant 0 : index
    %33 = vector.load %arg11[%c3_28, %c0_29, %c0_30] : memref<8x96x8xf32, #tpu.memory_space<vmem>>, vector<1x96x8xf32>
    %34 = vector.shape_cast %33 : vector<1x96x8xf32> to vector<96x8xf32>
    %35 = vector.shape_cast %32 : vector<96x8xf32> to vector<1x96x8xf32>
    tpu.vector_store %arg11[%c3_28, %c0_29, %c0_30], %35 {strides = array<i32>} : memref<8x96x8xf32, #tpu.memory_space<vmem>>, vector<1x96x8xf32>,
    %c4 = arith.constant 4 : index
    %c0_31 = arith.constant 0 : index
    %c0_32 = arith.constant 0 : index
    %36 = vector.load %arg1[%c4, %c0_31, %c0_32] : memref<8x32x8xbf16, #tpu.memory_space<vmem>>, vector<1x32x8xbf16>
    %37 = vector.shape_cast %36 : vector<1x32x8xbf16> to vector<32x8xbf16>
    %cst_33 = arith.constant dense<0.000000e+00> : vector<96x8xf32>
    %38 = tpu.matmul %0, %37, %cst_33 {dimension_numbers = #tpu.dot_dimension_numbers<[1], [0], [0], [1], [0, 0, 1, 1], [], []>} : vector<96x32xbf16>, vector<32x8xbf16>, vector<96x8xf32> -> vector<96x8xf32>
    %39 = vector.broadcast %1 : vector<96x1xf32> to vector<96x8xf32>
    %40 = arith.addf %38, %39 : vector<96x8xf32>
    %c4_34 = arith.constant 4 : index
    %c0_35 = arith.constant 0 : index
    %c0_36 = arith.constant 0 : index
    %41 = vector.load %arg11[%c4_34, %c0_35, %c0_36] : memref<8x96x8xf32, #tpu.memory_space<vmem>>, vector<1x96x8xf32>
    %42 = vector.shape_cast %41 : vector<1x96x8xf32> to vector<96x8xf32>
    %43 = vector.shape_cast %40 : vector<96x8xf32> to vector<1x96x8xf32>
    tpu.vector_store %arg11[%c4_34, %c0_35, %c0_36], %43 {strides = array<i32>} : memref<8x96x8xf32, #tpu.memory_space<vmem>>, vector<1x96x8xf32>,
    %c5 = arith.constant 5 : index
    %c0_37 = arith.constant 0 : index
    %c0_38 = arith.constant 0 : index
    %44 = vector.load %arg1[%c5, %c0_37, %c0_38] : memref<8x32x8xbf16, #tpu.memory_space<vmem>>, vector<1x32x8xbf16>
    %45 = vector.shape_cast %44 : vector<1x32x8xbf16> to vector<32x8xbf16>
    %cst_39 = arith.constant dense<0.000000e+00> : vector<96x8xf32>
    %46 = tpu.matmul %0, %45, %cst_39 {dimension_numbers = #tpu.dot_dimension_numbers<[1], [0], [0], [1], [0, 0, 1, 1], [], []>} : vector<96x32xbf16>, vector<32x8xbf16>, vector<96x8xf32> -> vector<96x8xf32>
    %47 = vector.broadcast %1 : vector<96x1xf32> to vector<96x8xf32>
    %48 = arith.addf %46, %47 : vector<96x8xf32>
    %c5_40 = arith.constant 5 : index
    %c0_41 = arith.constant 0 : index
    %c0_42 = arith.constant 0 : index
    %49 = vector.load %arg11[%c5_40, %c0_41, %c0_42] : memref<8x96x8xf32, #tpu.memory_space<vmem>>, vector<1x96x8xf32>
    %50 = vector.shape_cast %49 : vector<1x96x8xf32> to vector<96x8xf32>
    %51 = vector.shape_cast %48 : vector<96x8xf32> to vector<1x96x8xf32>
    tpu.vector_store %arg11[%c5_40, %c0_41, %c0_42], %51 {strides = array<i32>} : memref<8x96x8xf32, #tpu.memory_space<vmem>>, vector<1x96x8xf32>,
    %c6 = arith.constant 6 : index
    %c0_43 = arith.constant 0 : index
    %c0_44 = arith.constant 0 : index
    %52 = vector.load %arg1[%c6, %c0_43, %c0_44] : memref<8x32x8xbf16, #tpu.memory_space<vmem>>, vector<1x32x8xbf16>
    %53 = vector.shape_cast %52 : vector<1x32x8xbf16> to vector<32x8xbf16>
    %cst_45 = arith.constant dense<0.000000e+00> : vector<96x8xf32>
    %54 = tpu.matmul %0, %53, %cst_45 {dimension_numbers = #tpu.dot_dimension_numbers<[1], [0], [0], [1], [0, 0, 1, 1], [], []>} : vector<96x32xbf16>, vector<32x8xbf16>, vector<96x8xf32> -> vector<96x8xf32>
    %55 = vector.broadcast %1 : vector<96x1xf32> to vector<96x8xf32>
    %56 = arith.addf %54, %55 : vector<96x8xf32>
    %c6_46 = arith.constant 6 : index
    %c0_47 = arith.constant 0 : index
    %c0_48 = arith.constant 0 : index
    %57 = vector.load %arg11[%c6_46, %c0_47, %c0_48] : memref<8x96x8xf32, #tpu.memory_space<vmem>>, vector<1x96x8xf32>
    %58 = vector.shape_cast %57 : vector<1x96x8xf32> to vector<96x8xf32>
    %59 = vector.shape_cast %56 : vector<96x8xf32> to vector<1x96x8xf32>
    tpu.vector_store %arg11[%c6_46, %c0_47, %c0_48], %59 {strides = array<i32>} : memref<8x96x8xf32, #tpu.memory_space<vmem>>, vector<1x96x8xf32>,
    %c7 = arith.constant 7 : index
    %c0_49 = arith.constant 0 : index
    %c0_50 = arith.constant 0 : index
    %60 = vector.load %arg1[%c7, %c0_49, %c0_50] : memref<8x32x8xbf16, #tpu.memory_space<vmem>>, vector<1x32x8xbf16>
    %61 = vector.shape_cast %60 : vector<1x32x8xbf16> to vector<32x8xbf16>
    %cst_51 = arith.constant dense<0.000000e+00> : vector<96x8xf32>
    %62 = tpu.matmul %0, %61, %cst_51 {dimension_numbers = #tpu.dot_dimension_numbers<[1], [0], [0], [1], [0, 0, 1, 1], [], []>} : vector<96x32xbf16>, vector<32x8xbf16>, vector<96x8xf32> -> vector<96x8xf32>
    %63 = vector.broadcast %1 : vector<96x1xf32> to vector<96x8xf32>
    %64 = arith.addf %62, %63 : vector<96x8xf32>
    %c7_52 = arith.constant 7 : index
    %c0_53 = arith.constant 0 : index
    %c0_54 = arith.constant 0 : index
    %65 = vector.load %arg11[%c7_52, %c0_53, %c0_54] : memref<8x96x8xf32, #tpu.memory_space<vmem>>, vector<1x96x8xf32>
    %66 = vector.shape_cast %65 : vector<1x96x8xf32> to vector<96x8xf32>
    %67 = vector.shape_cast %64 : vector<96x8xf32> to vector<1x96x8xf32>
    tpu.vector_store %arg11[%c7_52, %c0_53, %c0_54], %67 {strides = array<i32>} : memref<8x96x8xf32, #tpu.memory_space<vmem>>, vector<1x96x8xf32>,
    %cst_55 = arith.constant 0.000000e+00 : f32
    %68 = vector.broadcast %cst_55 : f32 to vector<16x8xf32>
    %cst_56 = arith.constant 0.000000e+00 : f32
    %69 = vector.broadcast %cst_56 : f32 to vector<16x8xf32>
    %70 = tpu.concatenate %68, %69 in 0 : vector<16x8xf32>, vector<16x8xf32> -> vector<32x8xf32>
    %71 = arith.truncf %70 : vector<32x8xf32> to vector<32x8xbf16>
    %cst_57 = arith.constant dense<0.000000e+00> : vector<96x8xf32>
    %72 = tpu.matmul %2, %71, %cst_57 {dimension_numbers = #tpu.dot_dimension_numbers<[1], [0], [0], [1], [0, 0, 1, 1], [], []>} : vector<96x32xbf16>, vector<32x8xbf16>, vector<96x8xf32> -> vector<96x8xf32>
    %73 = vector.broadcast %3 : vector<96x1xf32> to vector<96x8xf32>
    %74 = arith.addf %72, %73 : vector<96x8xf32>
    %c0_58 = arith.constant 0 : index
    %c0_59 = arith.constant 0 : index
    %c0_60 = arith.constant 0 : index
    %75 = vector.load %arg11[%c0_58, %c0_59, %c0_60] : memref<8x96x8xf32, #tpu.memory_space<vmem>>, vector<1x48x8xf32>
    %76 = vector.shape_cast %75 : vector<1x48x8xf32> to vector<48x8xf32>
    %77 = vector.extract_strided_slice %74 {offsets = [0, 0], sizes = [48, 8], strides = [1, 1]} : vector<96x8xf32> to vector<48x8xf32>
    %78 = vector.extract_strided_slice %76 {offsets = [0, 0], sizes = [16, 8], strides = [1, 1]} : vector<48x8xf32> to vector<16x8xf32>
    %79 = vector.extract_strided_slice %77 {offsets = [0, 0], sizes = [16, 8], strides = [1, 1]} : vector<48x8xf32> to vector<16x8xf32>
    %80 = arith.addf %78, %79 : vector<16x8xf32>
    %81 = arith.negf %80 : vector<16x8xf32>
    %82 = math.exp %81 : vector<16x8xf32>
    %cst_61 = arith.constant 1.000000e+00 : f32
    %83 = vector.broadcast %cst_61 : f32 to vector<16x8xf32>
    %84 = arith.addf %83, %82 : vector<16x8xf32>
    %85 = arith.divf %83, %84 : vector<16x8xf32>
    %86 = vector.extract_strided_slice %76 {offsets = [16, 0], sizes = [16, 8], strides = [1, 1]} : vector<48x8xf32> to vector<16x8xf32>
    %87 = vector.extract_strided_slice %77 {offsets = [16, 0], sizes = [16, 8], strides = [1, 1]} : vector<48x8xf32> to vector<16x8xf32>
    %88 = arith.addf %86, %87 : vector<16x8xf32>
    %89 = arith.negf %88 : vector<16x8xf32>
    %90 = math.exp %89 : vector<16x8xf32>
    %cst_62 = arith.constant 1.000000e+00 : f32
    %91 = vector.broadcast %cst_62 : f32 to vector<16x8xf32>
    %92 = arith.addf %91, %90 : vector<16x8xf32>
    %93 = arith.divf %91, %92 : vector<16x8xf32>
    %94 = vector.extract_strided_slice %76 {offsets = [32, 0], sizes = [16, 8], strides = [1, 1]} : vector<48x8xf32> to vector<16x8xf32>
    %95 = vector.extract_strided_slice %77 {offsets = [32, 0], sizes = [16, 8], strides = [1, 1]} : vector<48x8xf32> to vector<16x8xf32>
    %96 = arith.mulf %85, %95 : vector<16x8xf32>
    %97 = arith.addf %94, %96 : vector<16x8xf32>
    %98 = math.tanh %97 : vector<16x8xf32>
    %cst_63 = arith.constant 1.000000e+00 : f32
    %99 = vector.broadcast %cst_63 : f32 to vector<16x8xf32>
    %100 = arith.subf %99, %93 : vector<16x8xf32>
    %101 = arith.mulf %100, %98 : vector<16x8xf32>
    %102 = arith.mulf %93, %68 : vector<16x8xf32>
    %103 = arith.addf %101, %102 : vector<16x8xf32>
    %c7_64 = arith.constant 7 : index
    %c48 = arith.constant 48 : index
    %c0_65 = arith.constant 0 : index
    %104 = vector.load %arg11[%c7_64, %c48, %c0_65] : memref<8x96x8xf32, #tpu.memory_space<vmem>>, vector<1x48x8xf32>
    %105 = vector.shape_cast %104 : vector<1x48x8xf32> to vector<48x8xf32>
    %106 = vector.extract_strided_slice %74 {offsets = [48, 0], sizes = [48, 8], strides = [1, 1]} : vector<96x8xf32> to vector<48x8xf32>
    %107 = vector.extract_strided_slice %105 {offsets = [0, 0], sizes = [16, 8], strides = [1, 1]} : vector<48x8xf32> to vector<16x8xf32>
    %108 = vector.extract_strided_slice %106 {offsets = [0, 0], sizes = [16, 8], strides = [1, 1]} : vector<48x8xf32> to vector<16x8xf32>
    %109 = arith.addf %107, %108 : vector<16x8xf32>
    %110 = arith.negf %109 : vector<16x8xf32>
    %111 = math.exp %110 : vector<16x8xf32>
    %cst_66 = arith.constant 1.000000e+00 : f32
    %112 = vector.broadcast %cst_66 : f32 to vector<16x8xf32>
    %113 = arith.addf %112, %111 : vector<16x8xf32>
    %114 = arith.divf %112, %113 : vector<16x8xf32>
    %115 = vector.extract_strided_slice %105 {offsets = [16, 0], sizes = [16, 8], strides = [1, 1]} : vector<48x8xf32> to vector<16x8xf32>
    %116 = vector.extract_strided_slice %106 {offsets = [16, 0], sizes = [16, 8], strides = [1, 1]} : vector<48x8xf32> to vector<16x8xf32>
    %117 = arith.addf %115, %116 : vector<16x8xf32>
    %118 = arith.negf %117 : vector<16x8xf32>
    %119 = math.exp %118 : vector<16x8xf32>
    %cst_67 = arith.constant 1.000000e+00 : f32
    %120 = vector.broadcast %cst_67 : f32 to vector<16x8xf32>
    %121 = arith.addf %120, %119 : vector<16x8xf32>
    %122 = arith.divf %120, %121 : vector<16x8xf32>
    %123 = vector.extract_strided_slice %105 {offsets = [32, 0], sizes = [16, 8], strides = [1, 1]} : vector<48x8xf32> to vector<16x8xf32>
    %124 = vector.extract_strided_slice %106 {offsets = [32, 0], sizes = [16, 8], strides = [1, 1]} : vector<48x8xf32> to vector<16x8xf32>
    %125 = arith.mulf %114, %124 : vector<16x8xf32>
    %126 = arith.addf %123, %125 : vector<16x8xf32>
    %127 = math.tanh %126 : vector<16x8xf32>
    %cst_68 = arith.constant 1.000000e+00 : f32
    %128 = vector.broadcast %cst_68 : f32 to vector<16x8xf32>
    %129 = arith.subf %128, %122 : vector<16x8xf32>
    %130 = arith.mulf %129, %127 : vector<16x8xf32>
    %131 = arith.mulf %122, %69 : vector<16x8xf32>
    %132 = arith.addf %130, %131 : vector<16x8xf32>
    %c0_69 = arith.constant 0 : index
    %c0_70 = arith.constant 0 : index
    %c0_71 = arith.constant 0 : index
    %133 = vector.load %arg12[%c0_69, %c0_70, %c0_71] : memref<8x32x8xf32, #tpu.memory_space<vmem>>, vector<1x16x8xf32>
    %134 = vector.shape_cast %133 : vector<1x16x8xf32> to vector<16x8xf32>
    %135 = vector.shape_cast %103 : vector<16x8xf32> to vector<1x16x8xf32>
    tpu.vector_store %arg12[%c0_69, %c0_70, %c0_71], %135 {strides = array<i32>} : memref<8x32x8xf32, #tpu.memory_space<vmem>>, vector<1x16x8xf32>,
    %c7_72 = arith.constant 7 : index
    %c16 = arith.constant 16 : index
    %c0_73 = arith.constant 0 : index
    %136 = vector.load %arg12[%c7_72, %c16, %c0_73] : memref<8x32x8xf32, #tpu.memory_space<vmem>>, vector<1x16x8xf32>
    %137 = vector.shape_cast %136 : vector<1x16x8xf32> to vector<16x8xf32>
    %138 = vector.shape_cast %132 : vector<16x8xf32> to vector<1x16x8xf32>
    tpu.vector_store %arg12[%c7_72, %c16, %c0_73], %138 {strides = array<i32>} : memref<8x32x8xf32, #tpu.memory_space<vmem>>, vector<1x16x8xf32>,
    %139 = tpu.concatenate %103, %132 in 0 : vector<16x8xf32>, vector<16x8xf32> -> vector<32x8xf32>
    %140 = arith.truncf %139 : vector<32x8xf32> to vector<32x8xbf16>
    %cst_74 = arith.constant dense<0.000000e+00> : vector<96x8xf32>
    %141 = tpu.matmul %2, %140, %cst_74 {dimension_numbers = #tpu.dot_dimension_numbers<[1], [0], [0], [1], [0, 0, 1, 1], [], []>} : vector<96x32xbf16>, vector<32x8xbf16>, vector<96x8xf32> -> vector<96x8xf32>
    %142 = vector.broadcast %3 : vector<96x1xf32> to vector<96x8xf32>
    %143 = arith.addf %141, %142 : vector<96x8xf32>
    %c1_75 = arith.constant 1 : index
    %c0_76 = arith.constant 0 : index
    %c0_77 = arith.constant 0 : index
    %144 = vector.load %arg11[%c1_75, %c0_76, %c0_77] : memref<8x96x8xf32, #tpu.memory_space<vmem>>, vector<1x48x8xf32>
    %145 = vector.shape_cast %144 : vector<1x48x8xf32> to vector<48x8xf32>
    %146 = vector.extract_strided_slice %143 {offsets = [0, 0], sizes = [48, 8], strides = [1, 1]} : vector<96x8xf32> to vector<48x8xf32>
    %147 = vector.extract_strided_slice %145 {offsets = [0, 0], sizes = [16, 8], strides = [1, 1]} : vector<48x8xf32> to vector<16x8xf32>
    %148 = vector.extract_strided_slice %146 {offsets = [0, 0], sizes = [16, 8], strides = [1, 1]} : vector<48x8xf32> to vector<16x8xf32>
    %149 = arith.addf %147, %148 : vector<16x8xf32>
    %150 = arith.negf %149 : vector<16x8xf32>
    %151 = math.exp %150 : vector<16x8xf32>
    %cst_78 = arith.constant 1.000000e+00 : f32
    %152 = vector.broadcast %cst_78 : f32 to vector<16x8xf32>
    %153 = arith.addf %152, %151 : vector<16x8xf32>
    %154 = arith.divf %152, %153 : vector<16x8xf32>
    %155 = vector.extract_strided_slice %145 {offsets = [16, 0], sizes = [16, 8], strides = [1, 1]} : vector<48x8xf32> to vector<16x8xf32>
    %156 = vector.extract_strided_slice %146 {offsets = [16, 0], sizes = [16, 8], strides = [1, 1]} : vector<48x8xf32> to vector<16x8xf32>
    %157 = arith.addf %155, %156 : vector<16x8xf32>
    %158 = arith.negf %157 : vector<16x8xf32>
    %159 = math.exp %158 : vector<16x8xf32>
    %cst_79 = arith.constant 1.000000e+00 : f32
    %160 = vector.broadcast %cst_79 : f32 to vector<16x8xf32>
    %161 = arith.addf %160, %159 : vector<16x8xf32>
    %162 = arith.divf %160, %161 : vector<16x8xf32>
    %163 = vector.extract_strided_slice %145 {offsets = [32, 0], sizes = [16, 8], strides = [1, 1]} : vector<48x8xf32> to vector<16x8xf32>
    %164 = vector.extract_strided_slice %146 {offsets = [32, 0], sizes = [16, 8], strides = [1, 1]} : vector<48x8xf32> to vector<16x8xf32>
    %165 = arith.mulf %154, %164 : vector<16x8xf32>
    %166 = arith.addf %163, %165 : vector<16x8xf32>
    %167 = math.tanh %166 : vector<16x8xf32>
    %cst_80 = arith.constant 1.000000e+00 : f32
    %168 = vector.broadcast %cst_80 : f32 to vector<16x8xf32>
    %169 = arith.subf %168, %162 : vector<16x8xf32>
    %170 = arith.mulf %169, %167 : vector<16x8xf32>
    %171 = arith.mulf %162, %103 : vector<16x8xf32>
    %172 = arith.addf %170, %171 : vector<16x8xf32>
    %c6_81 = arith.constant 6 : index
    %c48_82 = arith.constant 48 : index
    %c0_83 = arith.constant 0 : index
    %173 = vector.load %arg11[%c6_81, %c48_82, %c0_83] : memref<8x96x8xf32, #tpu.memory_space<vmem>>, vector<1x48x8xf32>
    %174 = vector.shape_cast %173 : vector<1x48x8xf32> to vector<48x8xf32>
    %175 = vector.extract_strided_slice %143 {offsets = [48, 0], sizes = [48, 8], strides = [1, 1]} : vector<96x8xf32> to vector<48x8xf32>
    %176 = vector.extract_strided_slice %174 {offsets = [0, 0], sizes = [16, 8], strides = [1, 1]} : vector<48x8xf32> to vector<16x8xf32>
    %177 = vector.extract_strided_slice %175 {offsets = [0, 0], sizes = [16, 8], strides = [1, 1]} : vector<48x8xf32> to vector<16x8xf32>
    %178 = arith.addf %176, %177 : vector<16x8xf32>
    %179 = arith.negf %178 : vector<16x8xf32>
    %180 = math.exp %179 : vector<16x8xf32>
    %cst_84 = arith.constant 1.000000e+00 : f32
    %181 = vector.broadcast %cst_84 : f32 to vector<16x8xf32>
    %182 = arith.addf %181, %180 : vector<16x8xf32>
    %183 = arith.divf %181, %182 : vector<16x8xf32>
    %184 = vector.extract_strided_slice %174 {offsets = [16, 0], sizes = [16, 8], strides = [1, 1]} : vector<48x8xf32> to vector<16x8xf32>
    %185 = vector.extract_strided_slice %175 {offsets = [16, 0], sizes = [16, 8], strides = [1, 1]} : vector<48x8xf32> to vector<16x8xf32>
    %186 = arith.addf %184, %185 : vector<16x8xf32>
    %187 = arith.negf %186 : vector<16x8xf32>
    %188 = math.exp %187 : vector<16x8xf32>
    %cst_85 = arith.constant 1.000000e+00 : f32
    %189 = vector.broadcast %cst_85 : f32 to vector<16x8xf32>
    %190 = arith.addf %189, %188 : vector<16x8xf32>
    %191 = arith.divf %189, %190 : vector<16x8xf32>
    %192 = vector.extract_strided_slice %174 {offsets = [32, 0], sizes = [16, 8], strides = [1, 1]} : vector<48x8xf32> to vector<16x8xf32>
    %193 = vector.extract_strided_slice %175 {offsets = [32, 0], sizes = [16, 8], strides = [1, 1]} : vector<48x8xf32> to vector<16x8xf32>
    %194 = arith.mulf %183, %193 : vector<16x8xf32>
    %195 = arith.addf %192, %194 : vector<16x8xf32>
    %196 = math.tanh %195 : vector<16x8xf32>
    %cst_86 = arith.constant 1.000000e+00 : f32
    %197 = vector.broadcast %cst_86 : f32 to vector<16x8xf32>
    %198 = arith.subf %197, %191 : vector<16x8xf32>
    %199 = arith.mulf %198, %196 : vector<16x8xf32>
    %200 = arith.mulf %191, %132 : vector<16x8xf32>
    %201 = arith.addf %199, %200 : vector<16x8xf32>
    %c1_87 = arith.constant 1 : index
    %c0_88 = arith.constant 0 : index
    %c0_89 = arith.constant 0 : index
    %202 = vector.load %arg12[%c1_87, %c0_88, %c0_89] : memref<8x32x8xf32, #tpu.memory_space<vmem>>, vector<1x16x8xf32>
    %203 = vector.shape_cast %202 : vector<1x16x8xf32> to vector<16x8xf32>
    %204 = vector.shape_cast %172 : vector<16x8xf32> to vector<1x16x8xf32>
    tpu.vector_store %arg12[%c1_87, %c0_88, %c0_89], %204 {strides = array<i32>} : memref<8x32x8xf32, #tpu.memory_space<vmem>>, vector<1x16x8xf32>,
    %c6_90 = arith.constant 6 : index
    %c16_91 = arith.constant 16 : index
    %c0_92 = arith.constant 0 : index
    %205 = vector.load %arg12[%c6_90, %c16_91, %c0_92] : memref<8x32x8xf32, #tpu.memory_space<vmem>>, vector<1x16x8xf32>
    %206 = vector.shape_cast %205 : vector<1x16x8xf32> to vector<16x8xf32>
    %207 = vector.shape_cast %201 : vector<16x8xf32> to vector<1x16x8xf32>
    tpu.vector_store %arg12[%c6_90, %c16_91, %c0_92], %207 {strides = array<i32>} : memref<8x32x8xf32, #tpu.memory_space<vmem>>, vector<1x16x8xf32>,
    %208 = tpu.concatenate %172, %201 in 0 : vector<16x8xf32>, vector<16x8xf32> -> vector<32x8xf32>
    %209 = arith.truncf %208 : vector<32x8xf32> to vector<32x8xbf16>
    %cst_93 = arith.constant dense<0.000000e+00> : vector<96x8xf32>
    %210 = tpu.matmul %2, %209, %cst_93 {dimension_numbers = #tpu.dot_dimension_numbers<[1], [0], [0], [1], [0, 0, 1, 1], [], []>} : vector<96x32xbf16>, vector<32x8xbf16>, vector<96x8xf32> -> vector<96x8xf32>
    %211 = vector.broadcast %3 : vector<96x1xf32> to vector<96x8xf32>
    %212 = arith.addf %210, %211 : vector<96x8xf32>
    %c2_94 = arith.constant 2 : index
    %c0_95 = arith.constant 0 : index
    %c0_96 = arith.constant 0 : index
    %213 = vector.load %arg11[%c2_94, %c0_95, %c0_96] : memref<8x96x8xf32, #tpu.memory_space<vmem>>, vector<1x48x8xf32>
    %214 = vector.shape_cast %213 : vector<1x48x8xf32> to vector<48x8xf32>
    %215 = vector.extract_strided_slice %212 {offsets = [0, 0], sizes = [48, 8], strides = [1, 1]} : vector<96x8xf32> to vector<48x8xf32>
    %216 = vector.extract_strided_slice %214 {offsets = [0, 0], sizes = [16, 8], strides = [1, 1]} : vector<48x8xf32> to vector<16x8xf32>
    %217 = vector.extract_strided_slice %215 {offsets = [0, 0], sizes = [16, 8], strides = [1, 1]} : vector<48x8xf32> to vector<16x8xf32>
    %218 = arith.addf %216, %217 : vector<16x8xf32>
    %219 = arith.negf %218 : vector<16x8xf32>
    %220 = math.exp %219 : vector<16x8xf32>
    %cst_97 = arith.constant 1.000000e+00 : f32
    %221 = vector.broadcast %cst_97 : f32 to vector<16x8xf32>
    %222 = arith.addf %221, %220 : vector<16x8xf32>
    %223 = arith.divf %221, %222 : vector<16x8xf32>
    %224 = vector.extract_strided_slice %214 {offsets = [16, 0], sizes = [16, 8], strides = [1, 1]} : vector<48x8xf32> to vector<16x8xf32>
    %225 = vector.extract_strided_slice %215 {offsets = [16, 0], sizes = [16, 8], strides = [1, 1]} : vector<48x8xf32> to vector<16x8xf32>
    %226 = arith.addf %224, %225 : vector<16x8xf32>
    %227 = arith.negf %226 : vector<16x8xf32>
    %228 = math.exp %227 : vector<16x8xf32>
    %cst_98 = arith.constant 1.000000e+00 : f32
    %229 = vector.broadcast %cst_98 : f32 to vector<16x8xf32>
    %230 = arith.addf %229, %228 : vector<16x8xf32>
    %231 = arith.divf %229, %230 : vector<16x8xf32>
    %232 = vector.extract_strided_slice %214 {offsets = [32, 0], sizes = [16, 8], strides = [1, 1]} : vector<48x8xf32> to vector<16x8xf32>
    %233 = vector.extract_strided_slice %215 {offsets = [32, 0], sizes = [16, 8], strides = [1, 1]} : vector<48x8xf32> to vector<16x8xf32>
    %234 = arith.mulf %223, %233 : vector<16x8xf32>
    %235 = arith.addf %232, %234 : vector<16x8xf32>
    %236 = math.tanh %235 : vector<16x8xf32>
    %cst_99 = arith.constant 1.000000e+00 : f32
    %237 = vector.broadcast %cst_99 : f32 to vector<16x8xf32>
    %238 = arith.subf %237, %231 : vector<16x8xf32>
    %239 = arith.mulf %238, %236 : vector<16x8xf32>
    %240 = arith.mulf %231, %172 : vector<16x8xf32>
    %241 = arith.addf %239, %240 : vector<16x8xf32>
    %c5_100 = arith.constant 5 : index
    %c48_101 = arith.constant 48 : index
    %c0_102 = arith.constant 0 : index
    %242 = vector.load %arg11[%c5_100, %c48_101, %c0_102] : memref<8x96x8xf32, #tpu.memory_space<vmem>>, vector<1x48x8xf32>
    %243 = vector.shape_cast %242 : vector<1x48x8xf32> to vector<48x8xf32>
    %244 = vector.extract_strided_slice %212 {offsets = [48, 0], sizes = [48, 8], strides = [1, 1]} : vector<96x8xf32> to vector<48x8xf32>
    %245 = vector.extract_strided_slice %243 {offsets = [0, 0], sizes = [16, 8], strides = [1, 1]} : vector<48x8xf32> to vector<16x8xf32>
    %246 = vector.extract_strided_slice %244 {offsets = [0, 0], sizes = [16, 8], strides = [1, 1]} : vector<48x8xf32> to vector<16x8xf32>
    %247 = arith.addf %245, %246 : vector<16x8xf32>
    %248 = arith.negf %247 : vector<16x8xf32>
    %249 = math.exp %248 : vector<16x8xf32>
    %cst_103 = arith.constant 1.000000e+00 : f32
    %250 = vector.broadcast %cst_103 : f32 to vector<16x8xf32>
    %251 = arith.addf %250, %249 : vector<16x8xf32>
    %252 = arith.divf %250, %251 : vector<16x8xf32>
    %253 = vector.extract_strided_slice %243 {offsets = [16, 0], sizes = [16, 8], strides = [1, 1]} : vector<48x8xf32> to vector<16x8xf32>
    %254 = vector.extract_strided_slice %244 {offsets = [16, 0], sizes = [16, 8], strides = [1, 1]} : vector<48x8xf32> to vector<16x8xf32>
    %255 = arith.addf %253, %254 : vector<16x8xf32>
    %256 = arith.negf %255 : vector<16x8xf32>
    %257 = math.exp %256 : vector<16x8xf32>
    %cst_104 = arith.constant 1.000000e+00 : f32
    %258 = vector.broadcast %cst_104 : f32 to vector<16x8xf32>
    %259 = arith.addf %258, %257 : vector<16x8xf32>
    %260 = arith.divf %258, %259 : vector<16x8xf32>
    %261 = vector.extract_strided_slice %243 {offsets = [32, 0], sizes = [16, 8], strides = [1, 1]} : vector<48x8xf32> to vector<16x8xf32>
    %262 = vector.extract_strided_slice %244 {offsets = [32, 0], sizes = [16, 8], strides = [1, 1]} : vector<48x8xf32> to vector<16x8xf32>
    %263 = arith.mulf %252, %262 : vector<16x8xf32>
    %264 = arith.addf %261, %263 : vector<16x8xf32>
    %265 = math.tanh %264 : vector<16x8xf32>
    %cst_105 = arith.constant 1.000000e+00 : f32
    %266 = vector.broadcast %cst_105 : f32 to vector<16x8xf32>
    %267 = arith.subf %266, %260 : vector<16x8xf32>
    %268 = arith.mulf %267, %265 : vector<16x8xf32>
    %269 = arith.mulf %260, %201 : vector<16x8xf32>
    %270 = arith.addf %268, %269 : vector<16x8xf32>
    %c2_106 = arith.constant 2 : index
    %c0_107 = arith.constant 0 : index
    %c0_108 = arith.constant 0 : index
    %271 = vector.load %arg12[%c2_106, %c0_107, %c0_108] : memref<8x32x8xf32, #tpu.memory_space<vmem>>, vector<1x16x8xf32>
    %272 = vector.shape_cast %271 : vector<1x16x8xf32> to vector<16x8xf32>
    %273 = vector.shape_cast %241 : vector<16x8xf32> to vector<1x16x8xf32>
    tpu.vector_store %arg12[%c2_106, %c0_107, %c0_108], %273 {strides = array<i32>} : memref<8x32x8xf32, #tpu.memory_space<vmem>>, vector<1x16x8xf32>,
    %c5_109 = arith.constant 5 : index
    %c16_110 = arith.constant 16 : index
    %c0_111 = arith.constant 0 : index
    %274 = vector.load %arg12[%c5_109, %c16_110, %c0_111] : memref<8x32x8xf32, #tpu.memory_space<vmem>>, vector<1x16x8xf32>
    %275 = vector.shape_cast %274 : vector<1x16x8xf32> to vector<16x8xf32>
    %276 = vector.shape_cast %270 : vector<16x8xf32> to vector<1x16x8xf32>
    tpu.vector_store %arg12[%c5_109, %c16_110, %c0_111], %276 {strides = array<i32>} : memref<8x32x8xf32, #tpu.memory_space<vmem>>, vector<1x16x8xf32>,
    %277 = tpu.concatenate %241, %270 in 0 : vector<16x8xf32>, vector<16x8xf32> -> vector<32x8xf32>
    %278 = arith.truncf %277 : vector<32x8xf32> to vector<32x8xbf16>
    %cst_112 = arith.constant dense<0.000000e+00> : vector<96x8xf32>
    %279 = tpu.matmul %2, %278, %cst_112 {dimension_numbers = #tpu.dot_dimension_numbers<[1], [0], [0], [1], [0, 0, 1, 1], [], []>} : vector<96x32xbf16>, vector<32x8xbf16>, vector<96x8xf32> -> vector<96x8xf32>
    %280 = vector.broadcast %3 : vector<96x1xf32> to vector<96x8xf32>
    %281 = arith.addf %279, %280 : vector<96x8xf32>
    %c3_113 = arith.constant 3 : index
    %c0_114 = arith.constant 0 : index
    %c0_115 = arith.constant 0 : index
    %282 = vector.load %arg11[%c3_113, %c0_114, %c0_115] : memref<8x96x8xf32, #tpu.memory_space<vmem>>, vector<1x48x8xf32>
    %283 = vector.shape_cast %282 : vector<1x48x8xf32> to vector<48x8xf32>
    %284 = vector.extract_strided_slice %281 {offsets = [0, 0], sizes = [48, 8], strides = [1, 1]} : vector<96x8xf32> to vector<48x8xf32>
    %285 = vector.extract_strided_slice %283 {offsets = [0, 0], sizes = [16, 8], strides = [1, 1]} : vector<48x8xf32> to vector<16x8xf32>
    %286 = vector.extract_strided_slice %284 {offsets = [0, 0], sizes = [16, 8], strides = [1, 1]} : vector<48x8xf32> to vector<16x8xf32>
    %287 = arith.addf %285, %286 : vector<16x8xf32>
    %288 = arith.negf %287 : vector<16x8xf32>
    %289 = math.exp %288 : vector<16x8xf32>
    %cst_116 = arith.constant 1.000000e+00 : f32
    %290 = vector.broadcast %cst_116 : f32 to vector<16x8xf32>
    %291 = arith.addf %290, %289 : vector<16x8xf32>
    %292 = arith.divf %290, %291 : vector<16x8xf32>
    %293 = vector.extract_strided_slice %283 {offsets = [16, 0], sizes = [16, 8], strides = [1, 1]} : vector<48x8xf32> to vector<16x8xf32>
    %294 = vector.extract_strided_slice %284 {offsets = [16, 0], sizes = [16, 8], strides = [1, 1]} : vector<48x8xf32> to vector<16x8xf32>
    %295 = arith.addf %293, %294 : vector<16x8xf32>
    %296 = arith.negf %295 : vector<16x8xf32>
    %297 = math.exp %296 : vector<16x8xf32>
    %cst_117 = arith.constant 1.000000e+00 : f32
    %298 = vector.broadcast %cst_117 : f32 to vector<16x8xf32>
    %299 = arith.addf %298, %297 : vector<16x8xf32>
    %300 = arith.divf %298, %299 : vector<16x8xf32>
    %301 = vector.extract_strided_slice %283 {offsets = [32, 0], sizes = [16, 8], strides = [1, 1]} : vector<48x8xf32> to vector<16x8xf32>
    %302 = vector.extract_strided_slice %284 {offsets = [32, 0], sizes = [16, 8], strides = [1, 1]} : vector<48x8xf32> to vector<16x8xf32>
    %303 = arith.mulf %292, %302 : vector<16x8xf32>
    %304 = arith.addf %301, %303 : vector<16x8xf32>
    %305 = math.tanh %304 : vector<16x8xf32>
    %cst_118 = arith.constant 1.000000e+00 : f32
    %306 = vector.broadcast %cst_118 : f32 to vector<16x8xf32>
    %307 = arith.subf %306, %300 : vector<16x8xf32>
    %308 = arith.mulf %307, %305 : vector<16x8xf32>
    %309 = arith.mulf %300, %241 : vector<16x8xf32>
    %310 = arith.addf %308, %309 : vector<16x8xf32>
    %c4_119 = arith.constant 4 : index
    %c48_120 = arith.constant 48 : index
    %c0_121 = arith.constant 0 : index
    %311 = vector.load %arg11[%c4_119, %c48_120, %c0_121] : memref<8x96x8xf32, #tpu.memory_space<vmem>>, vector<1x48x8xf32>
    %312 = vector.shape_cast %311 : vector<1x48x8xf32> to vector<48x8xf32>
    %313 = vector.extract_strided_slice %281 {offsets = [48, 0], sizes = [48, 8], strides = [1, 1]} : vector<96x8xf32> to vector<48x8xf32>
    %314 = vector.extract_strided_slice %312 {offsets = [0, 0], sizes = [16, 8], strides = [1, 1]} : vector<48x8xf32> to vector<16x8xf32>
    %315 = vector.extract_strided_slice %313 {offsets = [0, 0], sizes = [16, 8], strides = [1, 1]} : vector<48x8xf32> to vector<16x8xf32>
    %316 = arith.addf %314, %315 : vector<16x8xf32>
    %317 = arith.negf %316 : vector<16x8xf32>
    %318 = math.exp %317 : vector<16x8xf32>
    %cst_122 = arith.constant 1.000000e+00 : f32
    %319 = vector.broadcast %cst_122 : f32 to vector<16x8xf32>
    %320 = arith.addf %319, %318 : vector<16x8xf32>
    %321 = arith.divf %319, %320 : vector<16x8xf32>
    %322 = vector.extract_strided_slice %312 {offsets = [16, 0], sizes = [16, 8], strides = [1, 1]} : vector<48x8xf32> to vector<16x8xf32>
    %323 = vector.extract_strided_slice %313 {offsets = [16, 0], sizes = [16, 8], strides = [1, 1]} : vector<48x8xf32> to vector<16x8xf32>
    %324 = arith.addf %322, %323 : vector<16x8xf32>
    %325 = arith.negf %324 : vector<16x8xf32>
    %326 = math.exp %325 : vector<16x8xf32>
    %cst_123 = arith.constant 1.000000e+00 : f32
    %327 = vector.broadcast %cst_123 : f32 to vector<16x8xf32>
    %328 = arith.addf %327, %326 : vector<16x8xf32>
    %329 = arith.divf %327, %328 : vector<16x8xf32>
    %330 = vector.extract_strided_slice %312 {offsets = [32, 0], sizes = [16, 8], strides = [1, 1]} : vector<48x8xf32> to vector<16x8xf32>
    %331 = vector.extract_strided_slice %313 {offsets = [32, 0], sizes = [16, 8], strides = [1, 1]} : vector<48x8xf32> to vector<16x8xf32>
    %332 = arith.mulf %321, %331 : vector<16x8xf32>
    %333 = arith.addf %330, %332 : vector<16x8xf32>
    %334 = math.tanh %333 : vector<16x8xf32>
    %cst_124 = arith.constant 1.000000e+00 : f32
    %335 = vector.broadcast %cst_124 : f32 to vector<16x8xf32>
    %336 = arith.subf %335, %329 : vector<16x8xf32>
    %337 = arith.mulf %336, %334 : vector<16x8xf32>
    %338 = arith.mulf %329, %270 : vector<16x8xf32>
    %339 = arith.addf %337, %338 : vector<16x8xf32>
    %c3_125 = arith.constant 3 : index
    %c0_126 = arith.constant 0 : index
    %c0_127 = arith.constant 0 : index
    %340 = vector.load %arg12[%c3_125, %c0_126, %c0_127] : memref<8x32x8xf32, #tpu.memory_space<vmem>>, vector<1x16x8xf32>
    %341 = vector.shape_cast %340 : vector<1x16x8xf32> to vector<16x8xf32>
    %342 = vector.shape_cast %310 : vector<16x8xf32> to vector<1x16x8xf32>
    tpu.vector_store %arg12[%c3_125, %c0_126, %c0_127], %342 {strides = array<i32>} : memref<8x32x8xf32, #tpu.memory_space<vmem>>, vector<1x16x8xf32>,
    %c4_128 = arith.constant 4 : index
    %c16_129 = arith.constant 16 : index
    %c0_130 = arith.constant 0 : index
    %343 = vector.load %arg12[%c4_128, %c16_129, %c0_130] : memref<8x32x8xf32, #tpu.memory_space<vmem>>, vector<1x16x8xf32>
    %344 = vector.shape_cast %343 : vector<1x16x8xf32> to vector<16x8xf32>
    %345 = vector.shape_cast %339 : vector<16x8xf32> to vector<1x16x8xf32>
    tpu.vector_store %arg12[%c4_128, %c16_129, %c0_130], %345 {strides = array<i32>} : memref<8x32x8xf32, #tpu.memory_space<vmem>>, vector<1x16x8xf32>,
    %346 = tpu.concatenate %310, %339 in 0 : vector<16x8xf32>, vector<16x8xf32> -> vector<32x8xf32>
    %347 = arith.truncf %346 : vector<32x8xf32> to vector<32x8xbf16>
    %cst_131 = arith.constant dense<0.000000e+00> : vector<96x8xf32>
    %348 = tpu.matmul %2, %347, %cst_131 {dimension_numbers = #tpu.dot_dimension_numbers<[1], [0], [0], [1], [0, 0, 1, 1], [], []>} : vector<96x32xbf16>, vector<32x8xbf16>, vector<96x8xf32> -> vector<96x8xf32>
    %349 = vector.broadcast %3 : vector<96x1xf32> to vector<96x8xf32>
    %350 = arith.addf %348, %349 : vector<96x8xf32>
    %c4_132 = arith.constant 4 : index
    %c0_133 = arith.constant 0 : index
    %c0_134 = arith.constant 0 : index
    %351 = vector.load %arg11[%c4_132, %c0_133, %c0_134] : memref<8x96x8xf32, #tpu.memory_space<vmem>>, vector<1x48x8xf32>
    %352 = vector.shape_cast %351 : vector<1x48x8xf32> to vector<48x8xf32>
    %353 = vector.extract_strided_slice %350 {offsets = [0, 0], sizes = [48, 8], strides = [1, 1]} : vector<96x8xf32> to vector<48x8xf32>
    %354 = vector.extract_strided_slice %352 {offsets = [0, 0], sizes = [16, 8], strides = [1, 1]} : vector<48x8xf32> to vector<16x8xf32>
    %355 = vector.extract_strided_slice %353 {offsets = [0, 0], sizes = [16, 8], strides = [1, 1]} : vector<48x8xf32> to vector<16x8xf32>
    %356 = arith.addf %354, %355 : vector<16x8xf32>
    %357 = arith.negf %356 : vector<16x8xf32>
    %358 = math.exp %357 : vector<16x8xf32>
    %cst_135 = arith.constant 1.000000e+00 : f32
    %359 = vector.broadcast %cst_135 : f32 to vector<16x8xf32>
    %360 = arith.addf %359, %358 : vector<16x8xf32>
    %361 = arith.divf %359, %360 : vector<16x8xf32>
    %362 = vector.extract_strided_slice %352 {offsets = [16, 0], sizes = [16, 8], strides = [1, 1]} : vector<48x8xf32> to vector<16x8xf32>
    %363 = vector.extract_strided_slice %353 {offsets = [16, 0], sizes = [16, 8], strides = [1, 1]} : vector<48x8xf32> to vector<16x8xf32>
    %364 = arith.addf %362, %363 : vector<16x8xf32>
    %365 = arith.negf %364 : vector<16x8xf32>
    %366 = math.exp %365 : vector<16x8xf32>
    %cst_136 = arith.constant 1.000000e+00 : f32
    %367 = vector.broadcast %cst_136 : f32 to vector<16x8xf32>
    %368 = arith.addf %367, %366 : vector<16x8xf32>
    %369 = arith.divf %367, %368 : vector<16x8xf32>
    %370 = vector.extract_strided_slice %352 {offsets = [32, 0], sizes = [16, 8], strides = [1, 1]} : vector<48x8xf32> to vector<16x8xf32>
    %371 = vector.extract_strided_slice %353 {offsets = [32, 0], sizes = [16, 8], strides = [1, 1]} : vector<48x8xf32> to vector<16x8xf32>
    %372 = arith.mulf %361, %371 : vector<16x8xf32>
    %373 = arith.addf %370, %372 : vector<16x8xf32>
    %374 = math.tanh %373 : vector<16x8xf32>
    %cst_137 = arith.constant 1.000000e+00 : f32
    %375 = vector.broadcast %cst_137 : f32 to vector<16x8xf32>
    %376 = arith.subf %375, %369 : vector<16x8xf32>
    %377 = arith.mulf %376, %374 : vector<16x8xf32>
    %378 = arith.mulf %369, %310 : vector<16x8xf32>
    %379 = arith.addf %377, %378 : vector<16x8xf32>
    %c3_138 = arith.constant 3 : index
    %c48_139 = arith.constant 48 : index
    %c0_140 = arith.constant 0 : index
    %380 = vector.load %arg11[%c3_138, %c48_139, %c0_140] : memref<8x96x8xf32, #tpu.memory_space<vmem>>, vector<1x48x8xf32>
    %381 = vector.shape_cast %380 : vector<1x48x8xf32> to vector<48x8xf32>
    %382 = vector.extract_strided_slice %350 {offsets = [48, 0], sizes = [48, 8], strides = [1, 1]} : vector<96x8xf32> to vector<48x8xf32>
    %383 = vector.extract_strided_slice %381 {offsets = [0, 0], sizes = [16, 8], strides = [1, 1]} : vector<48x8xf32> to vector<16x8xf32>
    %384 = vector.extract_strided_slice %382 {offsets = [0, 0], sizes = [16, 8], strides = [1, 1]} : vector<48x8xf32> to vector<16x8xf32>
    %385 = arith.addf %383, %384 : vector<16x8xf32>
    %386 = arith.negf %385 : vector<16x8xf32>
    %387 = math.exp %386 : vector<16x8xf32>
    %cst_141 = arith.constant 1.000000e+00 : f32
    %388 = vector.broadcast %cst_141 : f32 to vector<16x8xf32>
    %389 = arith.addf %388, %387 : vector<16x8xf32>
    %390 = arith.divf %388, %389 : vector<16x8xf32>
    %391 = vector.extract_strided_slice %381 {offsets = [16, 0], sizes = [16, 8], strides = [1, 1]} : vector<48x8xf32> to vector<16x8xf32>
    %392 = vector.extract_strided_slice %382 {offsets = [16, 0], sizes = [16, 8], strides = [1, 1]} : vector<48x8xf32> to vector<16x8xf32>
    %393 = arith.addf %391, %392 : vector<16x8xf32>
    %394 = arith.negf %393 : vector<16x8xf32>
    %395 = math.exp %394 : vector<16x8xf32>
    %cst_142 = arith.constant 1.000000e+00 : f32
    %396 = vector.broadcast %cst_142 : f32 to vector<16x8xf32>
    %397 = arith.addf %396, %395 : vector<16x8xf32>
    %398 = arith.divf %396, %397 : vector<16x8xf32>
    %399 = vector.extract_strided_slice %381 {offsets = [32, 0], sizes = [16, 8], strides = [1, 1]} : vector<48x8xf32> to vector<16x8xf32>
    %400 = vector.extract_strided_slice %382 {offsets = [32, 0], sizes = [16, 8], strides = [1, 1]} : vector<48x8xf32> to vector<16x8xf32>
    %401 = arith.mulf %390, %400 : vector<16x8xf32>
    %402 = arith.addf %399, %401 : vector<16x8xf32>
    %403 = math.tanh %402 : vector<16x8xf32>
    %cst_143 = arith.constant 1.000000e+00 : f32
    %404 = vector.broadcast %cst_143 : f32 to vector<16x8xf32>
    %405 = arith.subf %404, %398 : vector<16x8xf32>
    %406 = arith.mulf %405, %403 : vector<16x8xf32>
    %407 = arith.mulf %398, %339 : vector<16x8xf32>
    %408 = arith.addf %406, %407 : vector<16x8xf32>
    %c4_144 = arith.constant 4 : index
    %c0_145 = arith.constant 0 : index
    %c0_146 = arith.constant 0 : index
    %409 = vector.load %arg12[%c4_144, %c0_145, %c0_146] : memref<8x32x8xf32, #tpu.memory_space<vmem>>, vector<1x16x8xf32>
    %410 = vector.shape_cast %409 : vector<1x16x8xf32> to vector<16x8xf32>
    %411 = vector.shape_cast %379 : vector<16x8xf32> to vector<1x16x8xf32>
    tpu.vector_store %arg12[%c4_144, %c0_145, %c0_146], %411 {strides = array<i32>} : memref<8x32x8xf32, #tpu.memory_space<vmem>>, vector<1x16x8xf32>,
    %c3_147 = arith.constant 3 : index
    %c16_148 = arith.constant 16 : index
    %c0_149 = arith.constant 0 : index
    %412 = vector.load %arg12[%c3_147, %c16_148, %c0_149] : memref<8x32x8xf32, #tpu.memory_space<vmem>>, vector<1x16x8xf32>
    %413 = vector.shape_cast %412 : vector<1x16x8xf32> to vector<16x8xf32>
    %414 = vector.shape_cast %408 : vector<16x8xf32> to vector<1x16x8xf32>
    tpu.vector_store %arg12[%c3_147, %c16_148, %c0_149], %414 {strides = array<i32>} : memref<8x32x8xf32, #tpu.memory_space<vmem>>, vector<1x16x8xf32>,
    %415 = tpu.concatenate %379, %408 in 0 : vector<16x8xf32>, vector<16x8xf32> -> vector<32x8xf32>
    %416 = arith.truncf %415 : vector<32x8xf32> to vector<32x8xbf16>
    %cst_150 = arith.constant dense<0.000000e+00> : vector<96x8xf32>
    %417 = tpu.matmul %2, %416, %cst_150 {dimension_numbers = #tpu.dot_dimension_numbers<[1], [0], [0], [1], [0, 0, 1, 1], [], []>} : vector<96x32xbf16>, vector<32x8xbf16>, vector<96x8xf32> -> vector<96x8xf32>
    %418 = vector.broadcast %3 : vector<96x1xf32> to vector<96x8xf32>
    %419 = arith.addf %417, %418 : vector<96x8xf32>
    %c5_151 = arith.constant 5 : index
    %c0_152 = arith.constant 0 : index
    %c0_153 = arith.constant 0 : index
    %420 = vector.load %arg11[%c5_151, %c0_152, %c0_153] : memref<8x96x8xf32, #tpu.memory_space<vmem>>, vector<1x48x8xf32>
    %421 = vector.shape_cast %420 : vector<1x48x8xf32> to vector<48x8xf32>
    %422 = vector.extract_strided_slice %419 {offsets = [0, 0], sizes = [48, 8], strides = [1, 1]} : vector<96x8xf32> to vector<48x8xf32>
    %423 = vector.extract_strided_slice %421 {offsets = [0, 0], sizes = [16, 8], strides = [1, 1]} : vector<48x8xf32> to vector<16x8xf32>
    %424 = vector.extract_strided_slice %422 {offsets = [0, 0], sizes = [16, 8], strides = [1, 1]} : vector<48x8xf32> to vector<16x8xf32>
    %425 = arith.addf %423, %424 : vector<16x8xf32>
    %426 = arith.negf %425 : vector<16x8xf32>
    %427 = math.exp %426 : vector<16x8xf32>
    %cst_154 = arith.constant 1.000000e+00 : f32
    %428 = vector.broadcast %cst_154 : f32 to vector<16x8xf32>
    %429 = arith.addf %428, %427 : vector<16x8xf32>
    %430 = arith.divf %428, %429 : vector<16x8xf32>
    %431 = vector.extract_strided_slice %421 {offsets = [16, 0], sizes = [16, 8], strides = [1, 1]} : vector<48x8xf32> to vector<16x8xf32>
    %432 = vector.extract_strided_slice %422 {offsets = [16, 0], sizes = [16, 8], strides = [1, 1]} : vector<48x8xf32> to vector<16x8xf32>
    %433 = arith.addf %431, %432 : vector<16x8xf32>
    %434 = arith.negf %433 : vector<16x8xf32>
    %435 = math.exp %434 : vector<16x8xf32>
    %cst_155 = arith.constant 1.000000e+00 : f32
    %436 = vector.broadcast %cst_155 : f32 to vector<16x8xf32>
    %437 = arith.addf %436, %435 : vector<16x8xf32>
    %438 = arith.divf %436, %437 : vector<16x8xf32>
    %439 = vector.extract_strided_slice %421 {offsets = [32, 0], sizes = [16, 8], strides = [1, 1]} : vector<48x8xf32> to vector<16x8xf32>
    %440 = vector.extract_strided_slice %422 {offsets = [32, 0], sizes = [16, 8], strides = [1, 1]} : vector<48x8xf32> to vector<16x8xf32>
    %441 = arith.mulf %430, %440 : vector<16x8xf32>
    %442 = arith.addf %439, %441 : vector<16x8xf32>
    %443 = math.tanh %442 : vector<16x8xf32>
    %cst_156 = arith.constant 1.000000e+00 : f32
    %444 = vector.broadcast %cst_156 : f32 to vector<16x8xf32>
    %445 = arith.subf %444, %438 : vector<16x8xf32>
    %446 = arith.mulf %445, %443 : vector<16x8xf32>
    %447 = arith.mulf %438, %379 : vector<16x8xf32>
    %448 = arith.addf %446, %447 : vector<16x8xf32>
    %c2_157 = arith.constant 2 : index
    %c48_158 = arith.constant 48 : index
    %c0_159 = arith.constant 0 : index
    %449 = vector.load %arg11[%c2_157, %c48_158, %c0_159] : memref<8x96x8xf32, #tpu.memory_space<vmem>>, vector<1x48x8xf32>
    %450 = vector.shape_cast %449 : vector<1x48x8xf32> to vector<48x8xf32>
    %451 = vector.extract_strided_slice %419 {offsets = [48, 0], sizes = [48, 8], strides = [1, 1]} : vector<96x8xf32> to vector<48x8xf32>
    %452 = vector.extract_strided_slice %450 {offsets = [0, 0], sizes = [16, 8], strides = [1, 1]} : vector<48x8xf32> to vector<16x8xf32>
    %453 = vector.extract_strided_slice %451 {offsets = [0, 0], sizes = [16, 8], strides = [1, 1]} : vector<48x8xf32> to vector<16x8xf32>
    %454 = arith.addf %452, %453 : vector<16x8xf32>
    %455 = arith.negf %454 : vector<16x8xf32>
    %456 = math.exp %455 : vector<16x8xf32>
    %cst_160 = arith.constant 1.000000e+00 : f32
    %457 = vector.broadcast %cst_160 : f32 to vector<16x8xf32>
    %458 = arith.addf %457, %456 : vector<16x8xf32>
    %459 = arith.divf %457, %458 : vector<16x8xf32>
    %460 = vector.extract_strided_slice %450 {offsets = [16, 0], sizes = [16, 8], strides = [1, 1]} : vector<48x8xf32> to vector<16x8xf32>
    %461 = vector.extract_strided_slice %451 {offsets = [16, 0], sizes = [16, 8], strides = [1, 1]} : vector<48x8xf32> to vector<16x8xf32>
    %462 = arith.addf %460, %461 : vector<16x8xf32>
    %463 = arith.negf %462 : vector<16x8xf32>
    %464 = math.exp %463 : vector<16x8xf32>
    %cst_161 = arith.constant 1.000000e+00 : f32
    %465 = vector.broadcast %cst_161 : f32 to vector<16x8xf32>
    %466 = arith.addf %465, %464 : vector<16x8xf32>
    %467 = arith.divf %465, %466 : vector<16x8xf32>
    %468 = vector.extract_strided_slice %450 {offsets = [32, 0], sizes = [16, 8], strides = [1, 1]} : vector<48x8xf32> to vector<16x8xf32>
    %469 = vector.extract_strided_slice %451 {offsets = [32, 0], sizes = [16, 8], strides = [1, 1]} : vector<48x8xf32> to vector<16x8xf32>
    %470 = arith.mulf %459, %469 : vector<16x8xf32>
    %471 = arith.addf %468, %470 : vector<16x8xf32>
    %472 = math.tanh %471 : vector<16x8xf32>
    %cst_162 = arith.constant 1.000000e+00 : f32
    %473 = vector.broadcast %cst_162 : f32 to vector<16x8xf32>
    %474 = arith.subf %473, %467 : vector<16x8xf32>
    %475 = arith.mulf %474, %472 : vector<16x8xf32>
    %476 = arith.mulf %467, %408 : vector<16x8xf32>
    %477 = arith.addf %475, %476 : vector<16x8xf32>
    %c5_163 = arith.constant 5 : index
    %c0_164 = arith.constant 0 : index
    %c0_165 = arith.constant 0 : index
    %478 = vector.load %arg12[%c5_163, %c0_164, %c0_165] : memref<8x32x8xf32, #tpu.memory_space<vmem>>, vector<1x16x8xf32>
    %479 = vector.shape_cast %478 : vector<1x16x8xf32> to vector<16x8xf32>
    %480 = vector.shape_cast %448 : vector<16x8xf32> to vector<1x16x8xf32>
    tpu.vector_store %arg12[%c5_163, %c0_164, %c0_165], %480 {strides = array<i32>} : memref<8x32x8xf32, #tpu.memory_space<vmem>>, vector<1x16x8xf32>,
    %c2_166 = arith.constant 2 : index
    %c16_167 = arith.constant 16 : index
    %c0_168 = arith.constant 0 : index
    %481 = vector.load %arg12[%c2_166, %c16_167, %c0_168] : memref<8x32x8xf32, #tpu.memory_space<vmem>>, vector<1x16x8xf32>
    %482 = vector.shape_cast %481 : vector<1x16x8xf32> to vector<16x8xf32>
    %483 = vector.shape_cast %477 : vector<16x8xf32> to vector<1x16x8xf32>
    tpu.vector_store %arg12[%c2_166, %c16_167, %c0_168], %483 {strides = array<i32>} : memref<8x32x8xf32, #tpu.memory_space<vmem>>, vector<1x16x8xf32>,
    %484 = tpu.concatenate %448, %477 in 0 : vector<16x8xf32>, vector<16x8xf32> -> vector<32x8xf32>
    %485 = arith.truncf %484 : vector<32x8xf32> to vector<32x8xbf16>
    %cst_169 = arith.constant dense<0.000000e+00> : vector<96x8xf32>
    %486 = tpu.matmul %2, %485, %cst_169 {dimension_numbers = #tpu.dot_dimension_numbers<[1], [0], [0], [1], [0, 0, 1, 1], [], []>} : vector<96x32xbf16>, vector<32x8xbf16>, vector<96x8xf32> -> vector<96x8xf32>
    %487 = vector.broadcast %3 : vector<96x1xf32> to vector<96x8xf32>
    %488 = arith.addf %486, %487 : vector<96x8xf32>
    %c6_170 = arith.constant 6 : index
    %c0_171 = arith.constant 0 : index
    %c0_172 = arith.constant 0 : index
    %489 = vector.load %arg11[%c6_170, %c0_171, %c0_172] : memref<8x96x8xf32, #tpu.memory_space<vmem>>, vector<1x48x8xf32>
    %490 = vector.shape_cast %489 : vector<1x48x8xf32> to vector<48x8xf32>
    %491 = vector.extract_strided_slice %488 {offsets = [0, 0], sizes = [48, 8], strides = [1, 1]} : vector<96x8xf32> to vector<48x8xf32>
    %492 = vector.extract_strided_slice %490 {offsets = [0, 0], sizes = [16, 8], strides = [1, 1]} : vector<48x8xf32> to vector<16x8xf32>
    %493 = vector.extract_strided_slice %491 {offsets = [0, 0], sizes = [16, 8], strides = [1, 1]} : vector<48x8xf32> to vector<16x8xf32>
    %494 = arith.addf %492, %493 : vector<16x8xf32>
    %495 = arith.negf %494 : vector<16x8xf32>
    %496 = math.exp %495 : vector<16x8xf32>
    %cst_173 = arith.constant 1.000000e+00 : f32
    %497 = vector.broadcast %cst_173 : f32 to vector<16x8xf32>
    %498 = arith.addf %497, %496 : vector<16x8xf32>
    %499 = arith.divf %497, %498 : vector<16x8xf32>
    %500 = vector.extract_strided_slice %490 {offsets = [16, 0], sizes = [16, 8], strides = [1, 1]} : vector<48x8xf32> to vector<16x8xf32>
    %501 = vector.extract_strided_slice %491 {offsets = [16, 0], sizes = [16, 8], strides = [1, 1]} : vector<48x8xf32> to vector<16x8xf32>
    %502 = arith.addf %500, %501 : vector<16x8xf32>
    %503 = arith.negf %502 : vector<16x8xf32>
    %504 = math.exp %503 : vector<16x8xf32>
    %cst_174 = arith.constant 1.000000e+00 : f32
    %505 = vector.broadcast %cst_174 : f32 to vector<16x8xf32>
    %506 = arith.addf %505, %504 : vector<16x8xf32>
    %507 = arith.divf %505, %506 : vector<16x8xf32>
    %508 = vector.extract_strided_slice %490 {offsets = [32, 0], sizes = [16, 8], strides = [1, 1]} : vector<48x8xf32> to vector<16x8xf32>
    %509 = vector.extract_strided_slice %491 {offsets = [32, 0], sizes = [16, 8], strides = [1, 1]} : vector<48x8xf32> to vector<16x8xf32>
    %510 = arith.mulf %499, %509 : vector<16x8xf32>
    %511 = arith.addf %508, %510 : vector<16x8xf32>
    %512 = math.tanh %511 : vector<16x8xf32>
    %cst_175 = arith.constant 1.000000e+00 : f32
    %513 = vector.broadcast %cst_175 : f32 to vector<16x8xf32>
    %514 = arith.subf %513, %507 : vector<16x8xf32>
    %515 = arith.mulf %514, %512 : vector<16x8xf32>
    %516 = arith.mulf %507, %448 : vector<16x8xf32>
    %517 = arith.addf %515, %516 : vector<16x8xf32>
    %c1_176 = arith.constant 1 : index
    %c48_177 = arith.constant 48 : index
    %c0_178 = arith.constant 0 : index
    %518 = vector.load %arg11[%c1_176, %c48_177, %c0_178] : memref<8x96x8xf32, #tpu.memory_space<vmem>>, vector<1x48x8xf32>
    %519 = vector.shape_cast %518 : vector<1x48x8xf32> to vector<48x8xf32>
    %520 = vector.extract_strided_slice %488 {offsets = [48, 0], sizes = [48, 8], strides = [1, 1]} : vector<96x8xf32> to vector<48x8xf32>
    %521 = vector.extract_strided_slice %519 {offsets = [0, 0], sizes = [16, 8], strides = [1, 1]} : vector<48x8xf32> to vector<16x8xf32>
    %522 = vector.extract_strided_slice %520 {offsets = [0, 0], sizes = [16, 8], strides = [1, 1]} : vector<48x8xf32> to vector<16x8xf32>
    %523 = arith.addf %521, %522 : vector<16x8xf32>
    %524 = arith.negf %523 : vector<16x8xf32>
    %525 = math.exp %524 : vector<16x8xf32>
    %cst_179 = arith.constant 1.000000e+00 : f32
    %526 = vector.broadcast %cst_179 : f32 to vector<16x8xf32>
    %527 = arith.addf %526, %525 : vector<16x8xf32>
    %528 = arith.divf %526, %527 : vector<16x8xf32>
    %529 = vector.extract_strided_slice %519 {offsets = [16, 0], sizes = [16, 8], strides = [1, 1]} : vector<48x8xf32> to vector<16x8xf32>
    %530 = vector.extract_strided_slice %520 {offsets = [16, 0], sizes = [16, 8], strides = [1, 1]} : vector<48x8xf32> to vector<16x8xf32>
    %531 = arith.addf %529, %530 : vector<16x8xf32>
    %532 = arith.negf %531 : vector<16x8xf32>
    %533 = math.exp %532 : vector<16x8xf32>
    %cst_180 = arith.constant 1.000000e+00 : f32
    %534 = vector.broadcast %cst_180 : f32 to vector<16x8xf32>
    %535 = arith.addf %534, %533 : vector<16x8xf32>
    %536 = arith.divf %534, %535 : vector<16x8xf32>
    %537 = vector.extract_strided_slice %519 {offsets = [32, 0], sizes = [16, 8], strides = [1, 1]} : vector<48x8xf32> to vector<16x8xf32>
    %538 = vector.extract_strided_slice %520 {offsets = [32, 0], sizes = [16, 8], strides = [1, 1]} : vector<48x8xf32> to vector<16x8xf32>
    %539 = arith.mulf %528, %538 : vector<16x8xf32>
    %540 = arith.addf %537, %539 : vector<16x8xf32>
    %541 = math.tanh %540 : vector<16x8xf32>
    %cst_181 = arith.constant 1.000000e+00 : f32
    %542 = vector.broadcast %cst_181 : f32 to vector<16x8xf32>
    %543 = arith.subf %542, %536 : vector<16x8xf32>
    %544 = arith.mulf %543, %541 : vector<16x8xf32>
    %545 = arith.mulf %536, %477 : vector<16x8xf32>
    %546 = arith.addf %544, %545 : vector<16x8xf32>
    %c6_182 = arith.constant 6 : index
    %c0_183 = arith.constant 0 : index
    %c0_184 = arith.constant 0 : index
    %547 = vector.load %arg12[%c6_182, %c0_183, %c0_184] : memref<8x32x8xf32, #tpu.memory_space<vmem>>, vector<1x16x8xf32>
    %548 = vector.shape_cast %547 : vector<1x16x8xf32> to vector<16x8xf32>
    %549 = vector.shape_cast %517 : vector<16x8xf32> to vector<1x16x8xf32>
    tpu.vector_store %arg12[%c6_182, %c0_183, %c0_184], %549 {strides = array<i32>} : memref<8x32x8xf32, #tpu.memory_space<vmem>>, vector<1x16x8xf32>,
    %c1_185 = arith.constant 1 : index
    %c16_186 = arith.constant 16 : index
    %c0_187 = arith.constant 0 : index
    %550 = vector.load %arg12[%c1_185, %c16_186, %c0_187] : memref<8x32x8xf32, #tpu.memory_space<vmem>>, vector<1x16x8xf32>
    %551 = vector.shape_cast %550 : vector<1x16x8xf32> to vector<16x8xf32>
    %552 = vector.shape_cast %546 : vector<16x8xf32> to vector<1x16x8xf32>
    tpu.vector_store %arg12[%c1_185, %c16_186, %c0_187], %552 {strides = array<i32>} : memref<8x32x8xf32, #tpu.memory_space<vmem>>, vector<1x16x8xf32>,
    %553 = tpu.concatenate %517, %546 in 0 : vector<16x8xf32>, vector<16x8xf32> -> vector<32x8xf32>
    %554 = arith.truncf %553 : vector<32x8xf32> to vector<32x8xbf16>
    %cst_188 = arith.constant dense<0.000000e+00> : vector<96x8xf32>
    %555 = tpu.matmul %2, %554, %cst_188 {dimension_numbers = #tpu.dot_dimension_numbers<[1], [0], [0], [1], [0, 0, 1, 1], [], []>} : vector<96x32xbf16>, vector<32x8xbf16>, vector<96x8xf32> -> vector<96x8xf32>
    %556 = vector.broadcast %3 : vector<96x1xf32> to vector<96x8xf32>
    %557 = arith.addf %555, %556 : vector<96x8xf32>
    %c7_189 = arith.constant 7 : index
    %c0_190 = arith.constant 0 : index
    %c0_191 = arith.constant 0 : index
    %558 = vector.load %arg11[%c7_189, %c0_190, %c0_191] : memref<8x96x8xf32, #tpu.memory_space<vmem>>, vector<1x48x8xf32>
    %559 = vector.shape_cast %558 : vector<1x48x8xf32> to vector<48x8xf32>
    %560 = vector.extract_strided_slice %557 {offsets = [0, 0], sizes = [48, 8], strides = [1, 1]} : vector<96x8xf32> to vector<48x8xf32>
    %561 = vector.extract_strided_slice %559 {offsets = [0, 0], sizes = [16, 8], strides = [1, 1]} : vector<48x8xf32> to vector<16x8xf32>
    %562 = vector.extract_strided_slice %560 {offsets = [0, 0], sizes = [16, 8], strides = [1, 1]} : vector<48x8xf32> to vector<16x8xf32>
    %563 = arith.addf %561, %562 : vector<16x8xf32>
    %564 = arith.negf %563 : vector<16x8xf32>
    %565 = math.exp %564 : vector<16x8xf32>
    %cst_192 = arith.constant 1.000000e+00 : f32
    %566 = vector.broadcast %cst_192 : f32 to vector<16x8xf32>
    %567 = arith.addf %566, %565 : vector<16x8xf32>
    %568 = arith.divf %566, %567 : vector<16x8xf32>
    %569 = vector.extract_strided_slice %559 {offsets = [16, 0], sizes = [16, 8], strides = [1, 1]} : vector<48x8xf32> to vector<16x8xf32>
    %570 = vector.extract_strided_slice %560 {offsets = [16, 0], sizes = [16, 8], strides = [1, 1]} : vector<48x8xf32> to vector<16x8xf32>
    %571 = arith.addf %569, %570 : vector<16x8xf32>
    %572 = arith.negf %571 : vector<16x8xf32>
    %573 = math.exp %572 : vector<16x8xf32>
    %cst_193 = arith.constant 1.000000e+00 : f32
    %574 = vector.broadcast %cst_193 : f32 to vector<16x8xf32>
    %575 = arith.addf %574, %573 : vector<16x8xf32>
    %576 = arith.divf %574, %575 : vector<16x8xf32>
    %577 = vector.extract_strided_slice %559 {offsets = [32, 0], sizes = [16, 8], strides = [1, 1]} : vector<48x8xf32> to vector<16x8xf32>
    %578 = vector.extract_strided_slice %560 {offsets = [32, 0], sizes = [16, 8], strides = [1, 1]} : vector<48x8xf32> to vector<16x8xf32>
    %579 = arith.mulf %568, %578 : vector<16x8xf32>
    %580 = arith.addf %577, %579 : vector<16x8xf32>
    %581 = math.tanh %580 : vector<16x8xf32>
    %cst_194 = arith.constant 1.000000e+00 : f32
    %582 = vector.broadcast %cst_194 : f32 to vector<16x8xf32>
    %583 = arith.subf %582, %576 : vector<16x8xf32>
    %584 = arith.mulf %583, %581 : vector<16x8xf32>
    %585 = arith.mulf %576, %517 : vector<16x8xf32>
    %586 = arith.addf %584, %585 : vector<16x8xf32>
    %c0_195 = arith.constant 0 : index
    %c48_196 = arith.constant 48 : index
    %c0_197 = arith.constant 0 : index
    %587 = vector.load %arg11[%c0_195, %c48_196, %c0_197] : memref<8x96x8xf32, #tpu.memory_space<vmem>>, vector<1x48x8xf32>
    %588 = vector.shape_cast %587 : vector<1x48x8xf32> to vector<48x8xf32>
    %589 = vector.extract_strided_slice %557 {offsets = [48, 0], sizes = [48, 8], strides = [1, 1]} : vector<96x8xf32> to vector<48x8xf32>
    %590 = vector.extract_strided_slice %588 {offsets = [0, 0], sizes = [16, 8], strides = [1, 1]} : vector<48x8xf32> to vector<16x8xf32>
    %591 = vector.extract_strided_slice %589 {offsets = [0, 0], sizes = [16, 8], strides = [1, 1]} : vector<48x8xf32> to vector<16x8xf32>
    %592 = arith.addf %590, %591 : vector<16x8xf32>
    %593 = arith.negf %592 : vector<16x8xf32>
    %594 = math.exp %593 : vector<16x8xf32>
    %cst_198 = arith.constant 1.000000e+00 : f32
    %595 = vector.broadcast %cst_198 : f32 to vector<16x8xf32>
    %596 = arith.addf %595, %594 : vector<16x8xf32>
    %597 = arith.divf %595, %596 : vector<16x8xf32>
    %598 = vector.extract_strided_slice %588 {offsets = [16, 0], sizes = [16, 8], strides = [1, 1]} : vector<48x8xf32> to vector<16x8xf32>
    %599 = vector.extract_strided_slice %589 {offsets = [16, 0], sizes = [16, 8], strides = [1, 1]} : vector<48x8xf32> to vector<16x8xf32>
    %600 = arith.addf %598, %599 : vector<16x8xf32>
    %601 = arith.negf %600 : vector<16x8xf32>
    %602 = math.exp %601 : vector<16x8xf32>
    %cst_199 = arith.constant 1.000000e+00 : f32
    %603 = vector.broadcast %cst_199 : f32 to vector<16x8xf32>
    %604 = arith.addf %603, %602 : vector<16x8xf32>
    %605 = arith.divf %603, %604 : vector<16x8xf32>
    %606 = vector.extract_strided_slice %588 {offsets = [32, 0], sizes = [16, 8], strides = [1, 1]} : vector<48x8xf32> to vector<16x8xf32>
    %607 = vector.extract_strided_slice %589 {offsets = [32, 0], sizes = [16, 8], strides = [1, 1]} : vector<48x8xf32> to vector<16x8xf32>
    %608 = arith.mulf %597, %607 : vector<16x8xf32>
    %609 = arith.addf %606, %608 : vector<16x8xf32>
    %610 = math.tanh %609 : vector<16x8xf32>
    %cst_200 = arith.constant 1.000000e+00 : f32
    %611 = vector.broadcast %cst_200 : f32 to vector<16x8xf32>
    %612 = arith.subf %611, %605 : vector<16x8xf32>
    %613 = arith.mulf %612, %610 : vector<16x8xf32>
    %614 = arith.mulf %605, %546 : vector<16x8xf32>
    %615 = arith.addf %613, %614 : vector<16x8xf32>
    %c7_201 = arith.constant 7 : index
    %c0_202 = arith.constant 0 : index
    %c0_203 = arith.constant 0 : index
    %616 = vector.load %arg12[%c7_201, %c0_202, %c0_203] : memref<8x32x8xf32, #tpu.memory_space<vmem>>, vector<1x16x8xf32>
    %617 = vector.shape_cast %616 : vector<1x16x8xf32> to vector<16x8xf32>
    %618 = vector.shape_cast %586 : vector<16x8xf32> to vector<1x16x8xf32>
    tpu.vector_store %arg12[%c7_201, %c0_202, %c0_203], %618 {strides = array<i32>} : memref<8x32x8xf32, #tpu.memory_space<vmem>>, vector<1x16x8xf32>,
    %c0_204 = arith.constant 0 : index
    %c16_205 = arith.constant 16 : index
    %c0_206 = arith.constant 0 : index
    %619 = vector.load %arg12[%c0_204, %c16_205, %c0_206] : memref<8x32x8xf32, #tpu.memory_space<vmem>>, vector<1x16x8xf32>
    %620 = vector.shape_cast %619 : vector<1x16x8xf32> to vector<16x8xf32>
    %621 = vector.shape_cast %615 : vector<16x8xf32> to vector<1x16x8xf32>
    tpu.vector_store %arg12[%c0_204, %c16_205, %c0_206], %621 {strides = array<i32>} : memref<8x32x8xf32, #tpu.memory_space<vmem>>, vector<1x16x8xf32>,
    %c0_207 = arith.constant 0 : index
    %c0_208 = arith.constant 0 : index
    %622 = vector.load %arg7[%c0_207, %c0_208] : memref<32x32xbf16, #tpu.memory_space<vmem>>, vector<32x32xbf16>
    %c0_209 = arith.constant 0 : index
    %c0_210 = arith.constant 0 : index
    %623 = vector.load %arg8[%c0_209, %c0_210] : memref<32x1xf32, #tpu.memory_space<vmem>>, vector<32x1xf32>
    %c0_211 = arith.constant 0 : index
    %c0_212 = arith.constant 0 : index
    %624 = vector.load %arg9[%c0_211, %c0_212] : memref<32x1xf32, #tpu.memory_space<vmem>>, vector<32x1xf32>
    %c0_213 = arith.constant 0 : index
    %c0_214 = arith.constant 0 : index
    %625 = vector.load %arg2[%c0_213, %c0_214] : memref<8x8xf32, #tpu.memory_space<vmem>>, vector<8x8xf32>
    %c0_215 = arith.constant 0 : index
    %c0_216 = arith.constant 0 : index
    %c0_217 = arith.constant 0 : index
    %626 = vector.load %arg12[%c0_215, %c0_216, %c0_217] : memref<8x32x8xf32, #tpu.memory_space<vmem>>, vector<1x32x8xf32>
    %627 = vector.shape_cast %626 : vector<1x32x8xf32> to vector<32x8xf32>
    %628 = arith.truncf %627 : vector<32x8xf32> to vector<32x8xbf16>
    %cst_218 = arith.constant dense<0.000000e+00> : vector<32x8xf32>
    %629 = tpu.matmul %622, %628, %cst_218 {dimension_numbers = #tpu.dot_dimension_numbers<[1], [0], [0], [1], [0, 0, 1, 1], [], []>} : vector<32x32xbf16>, vector<32x8xbf16>, vector<32x8xf32> -> vector<32x8xf32>
    %630 = vector.broadcast %623 : vector<32x1xf32> to vector<32x8xf32>
    %631 = arith.addf %629, %630 : vector<32x8xf32>
    %632 = math.tanh %631 : vector<32x8xf32>
    %633 = vector.broadcast %624 : vector<32x1xf32> to vector<32x8xf32>
    %634 = arith.mulf %633, %632 : vector<32x8xf32>
    %cst_219 = arith.constant dense<0.000000e+00> : vector<8xf32>
    %635 = vector.multi_reduction <add>, %634, %cst_219 [0] : vector<32x8xf32> to vector<8xf32>
    %636 = vector.shape_cast %635 : vector<8xf32> to vector<1x8xf32>
    %637 = vector.extract_strided_slice %625 {offsets = [0, 0], sizes = [1, 8], strides = [1, 1]} : vector<8x8xf32> to vector<1x8xf32>
    %cst_220 = arith.constant 5.000000e-01 : f32
    %638 = vector.broadcast %cst_220 : f32 to vector<1x8xf32>
    %639 = arith.cmpf olt, %637, %638 : vector<1x8xf32>
    %cst_221 = arith.constant -1.000000e+09 : f32
    %640 = vector.broadcast %cst_221 : f32 to vector<1x8xf32>
    %641 = arith.select %639, %640, %636 : vector<1x8xi1>, vector<1x8xf32>
    %c1_222 = arith.constant 1 : index
    %c0_223 = arith.constant 0 : index
    %c0_224 = arith.constant 0 : index
    %642 = vector.load %arg12[%c1_222, %c0_223, %c0_224] : memref<8x32x8xf32, #tpu.memory_space<vmem>>, vector<1x32x8xf32>
    %643 = vector.shape_cast %642 : vector<1x32x8xf32> to vector<32x8xf32>
    %644 = arith.truncf %643 : vector<32x8xf32> to vector<32x8xbf16>
    %cst_225 = arith.constant dense<0.000000e+00> : vector<32x8xf32>
    %645 = tpu.matmul %622, %644, %cst_225 {dimension_numbers = #tpu.dot_dimension_numbers<[1], [0], [0], [1], [0, 0, 1, 1], [], []>} : vector<32x32xbf16>, vector<32x8xbf16>, vector<32x8xf32> -> vector<32x8xf32>
    %646 = vector.broadcast %623 : vector<32x1xf32> to vector<32x8xf32>
    %647 = arith.addf %645, %646 : vector<32x8xf32>
    %648 = math.tanh %647 : vector<32x8xf32>
    %649 = vector.broadcast %624 : vector<32x1xf32> to vector<32x8xf32>
    %650 = arith.mulf %649, %648 : vector<32x8xf32>
    %cst_226 = arith.constant dense<0.000000e+00> : vector<8xf32>
    %651 = vector.multi_reduction <add>, %650, %cst_226 [0] : vector<32x8xf32> to vector<8xf32>
    %652 = vector.shape_cast %651 : vector<8xf32> to vector<1x8xf32>
    %653 = vector.extract_strided_slice %625 {offsets = [1, 0], sizes = [1, 8], strides = [1, 1]} : vector<8x8xf32> to vector<1x8xf32>
    %cst_227 = arith.constant 5.000000e-01 : f32
    %654 = vector.broadcast %cst_227 : f32 to vector<1x8xf32>
    %655 = arith.cmpf olt, %653, %654 : vector<1x8xf32>
    %cst_228 = arith.constant -1.000000e+09 : f32
    %656 = vector.broadcast %cst_228 : f32 to vector<1x8xf32>
    %657 = arith.select %655, %656, %652 : vector<1x8xi1>, vector<1x8xf32>
    %c2_229 = arith.constant 2 : index
    %c0_230 = arith.constant 0 : index
    %c0_231 = arith.constant 0 : index
    %658 = vector.load %arg12[%c2_229, %c0_230, %c0_231] : memref<8x32x8xf32, #tpu.memory_space<vmem>>, vector<1x32x8xf32>
    %659 = vector.shape_cast %658 : vector<1x32x8xf32> to vector<32x8xf32>
    %660 = arith.truncf %659 : vector<32x8xf32> to vector<32x8xbf16>
    %cst_232 = arith.constant dense<0.000000e+00> : vector<32x8xf32>
    %661 = tpu.matmul %622, %660, %cst_232 {dimension_numbers = #tpu.dot_dimension_numbers<[1], [0], [0], [1], [0, 0, 1, 1], [], []>} : vector<32x32xbf16>, vector<32x8xbf16>, vector<32x8xf32> -> vector<32x8xf32>
    %662 = vector.broadcast %623 : vector<32x1xf32> to vector<32x8xf32>
    %663 = arith.addf %661, %662 : vector<32x8xf32>
    %664 = math.tanh %663 : vector<32x8xf32>
    %665 = vector.broadcast %624 : vector<32x1xf32> to vector<32x8xf32>
    %666 = arith.mulf %665, %664 : vector<32x8xf32>
    %cst_233 = arith.constant dense<0.000000e+00> : vector<8xf32>
    %667 = vector.multi_reduction <add>, %666, %cst_233 [0] : vector<32x8xf32> to vector<8xf32>
    %668 = vector.shape_cast %667 : vector<8xf32> to vector<1x8xf32>
    %669 = vector.extract_strided_slice %625 {offsets = [2, 0], sizes = [1, 8], strides = [1, 1]} : vector<8x8xf32> to vector<1x8xf32>
    %cst_234 = arith.constant 5.000000e-01 : f32
    %670 = vector.broadcast %cst_234 : f32 to vector<1x8xf32>
    %671 = arith.cmpf olt, %669, %670 : vector<1x8xf32>
    %cst_235 = arith.constant -1.000000e+09 : f32
    %672 = vector.broadcast %cst_235 : f32 to vector<1x8xf32>
    %673 = arith.select %671, %672, %668 : vector<1x8xi1>, vector<1x8xf32>
    %c3_236 = arith.constant 3 : index
    %c0_237 = arith.constant 0 : index
    %c0_238 = arith.constant 0 : index
    %674 = vector.load %arg12[%c3_236, %c0_237, %c0_238] : memref<8x32x8xf32, #tpu.memory_space<vmem>>, vector<1x32x8xf32>
    %675 = vector.shape_cast %674 : vector<1x32x8xf32> to vector<32x8xf32>
    %676 = arith.truncf %675 : vector<32x8xf32> to vector<32x8xbf16>
    %cst_239 = arith.constant dense<0.000000e+00> : vector<32x8xf32>
    %677 = tpu.matmul %622, %676, %cst_239 {dimension_numbers = #tpu.dot_dimension_numbers<[1], [0], [0], [1], [0, 0, 1, 1], [], []>} : vector<32x32xbf16>, vector<32x8xbf16>, vector<32x8xf32> -> vector<32x8xf32>
    %678 = vector.broadcast %623 : vector<32x1xf32> to vector<32x8xf32>
    %679 = arith.addf %677, %678 : vector<32x8xf32>
    %680 = math.tanh %679 : vector<32x8xf32>
    %681 = vector.broadcast %624 : vector<32x1xf32> to vector<32x8xf32>
    %682 = arith.mulf %681, %680 : vector<32x8xf32>
    %cst_240 = arith.constant dense<0.000000e+00> : vector<8xf32>
    %683 = vector.multi_reduction <add>, %682, %cst_240 [0] : vector<32x8xf32> to vector<8xf32>
    %684 = vector.shape_cast %683 : vector<8xf32> to vector<1x8xf32>
    %685 = vector.extract_strided_slice %625 {offsets = [3, 0], sizes = [1, 8], strides = [1, 1]} : vector<8x8xf32> to vector<1x8xf32>
    %cst_241 = arith.constant 5.000000e-01 : f32
    %686 = vector.broadcast %cst_241 : f32 to vector<1x8xf32>
    %687 = arith.cmpf olt, %685, %686 : vector<1x8xf32>
    %cst_242 = arith.constant -1.000000e+09 : f32
    %688 = vector.broadcast %cst_242 : f32 to vector<1x8xf32>
    %689 = arith.select %687, %688, %684 : vector<1x8xi1>, vector<1x8xf32>
    %c4_243 = arith.constant 4 : index
    %c0_244 = arith.constant 0 : index
    %c0_245 = arith.constant 0 : index
    %690 = vector.load %arg12[%c4_243, %c0_244, %c0_245] : memref<8x32x8xf32, #tpu.memory_space<vmem>>, vector<1x32x8xf32>
    %691 = vector.shape_cast %690 : vector<1x32x8xf32> to vector<32x8xf32>
    %692 = arith.truncf %691 : vector<32x8xf32> to vector<32x8xbf16>
    %cst_246 = arith.constant dense<0.000000e+00> : vector<32x8xf32>
    %693 = tpu.matmul %622, %692, %cst_246 {dimension_numbers = #tpu.dot_dimension_numbers<[1], [0], [0], [1], [0, 0, 1, 1], [], []>} : vector<32x32xbf16>, vector<32x8xbf16>, vector<32x8xf32> -> vector<32x8xf32>
    %694 = vector.broadcast %623 : vector<32x1xf32> to vector<32x8xf32>
    %695 = arith.addf %693, %694 : vector<32x8xf32>
    %696 = math.tanh %695 : vector<32x8xf32>
    %697 = vector.broadcast %624 : vector<32x1xf32> to vector<32x8xf32>
    %698 = arith.mulf %697, %696 : vector<32x8xf32>
    %cst_247 = arith.constant dense<0.000000e+00> : vector<8xf32>
    %699 = vector.multi_reduction <add>, %698, %cst_247 [0] : vector<32x8xf32> to vector<8xf32>
    %700 = vector.shape_cast %699 : vector<8xf32> to vector<1x8xf32>
    %701 = vector.extract_strided_slice %625 {offsets = [4, 0], sizes = [1, 8], strides = [1, 1]} : vector<8x8xf32> to vector<1x8xf32>
    %cst_248 = arith.constant 5.000000e-01 : f32
    %702 = vector.broadcast %cst_248 : f32 to vector<1x8xf32>
    %703 = arith.cmpf olt, %701, %702 : vector<1x8xf32>
    %cst_249 = arith.constant -1.000000e+09 : f32
    %704 = vector.broadcast %cst_249 : f32 to vector<1x8xf32>
    %705 = arith.select %703, %704, %700 : vector<1x8xi1>, vector<1x8xf32>
    %c5_250 = arith.constant 5 : index
    %c0_251 = arith.constant 0 : index
    %c0_252 = arith.constant 0 : index
    %706 = vector.load %arg12[%c5_250, %c0_251, %c0_252] : memref<8x32x8xf32, #tpu.memory_space<vmem>>, vector<1x32x8xf32>
    %707 = vector.shape_cast %706 : vector<1x32x8xf32> to vector<32x8xf32>
    %708 = arith.truncf %707 : vector<32x8xf32> to vector<32x8xbf16>
    %cst_253 = arith.constant dense<0.000000e+00> : vector<32x8xf32>
    %709 = tpu.matmul %622, %708, %cst_253 {dimension_numbers = #tpu.dot_dimension_numbers<[1], [0], [0], [1], [0, 0, 1, 1], [], []>} : vector<32x32xbf16>, vector<32x8xbf16>, vector<32x8xf32> -> vector<32x8xf32>
    %710 = vector.broadcast %623 : vector<32x1xf32> to vector<32x8xf32>
    %711 = arith.addf %709, %710 : vector<32x8xf32>
    %712 = math.tanh %711 : vector<32x8xf32>
    %713 = vector.broadcast %624 : vector<32x1xf32> to vector<32x8xf32>
    %714 = arith.mulf %713, %712 : vector<32x8xf32>
    %cst_254 = arith.constant dense<0.000000e+00> : vector<8xf32>
    %715 = vector.multi_reduction <add>, %714, %cst_254 [0] : vector<32x8xf32> to vector<8xf32>
    %716 = vector.shape_cast %715 : vector<8xf32> to vector<1x8xf32>
    %717 = vector.extract_strided_slice %625 {offsets = [5, 0], sizes = [1, 8], strides = [1, 1]} : vector<8x8xf32> to vector<1x8xf32>
    %cst_255 = arith.constant 5.000000e-01 : f32
    %718 = vector.broadcast %cst_255 : f32 to vector<1x8xf32>
    %719 = arith.cmpf olt, %717, %718 : vector<1x8xf32>
    %cst_256 = arith.constant -1.000000e+09 : f32
    %720 = vector.broadcast %cst_256 : f32 to vector<1x8xf32>
    %721 = arith.select %719, %720, %716 : vector<1x8xi1>, vector<1x8xf32>
    %c6_257 = arith.constant 6 : index
    %c0_258 = arith.constant 0 : index
    %c0_259 = arith.constant 0 : index
    %722 = vector.load %arg12[%c6_257, %c0_258, %c0_259] : memref<8x32x8xf32, #tpu.memory_space<vmem>>, vector<1x32x8xf32>
    %723 = vector.shape_cast %722 : vector<1x32x8xf32> to vector<32x8xf32>
    %724 = arith.truncf %723 : vector<32x8xf32> to vector<32x8xbf16>
    %cst_260 = arith.constant dense<0.000000e+00> : vector<32x8xf32>
    %725 = tpu.matmul %622, %724, %cst_260 {dimension_numbers = #tpu.dot_dimension_numbers<[1], [0], [0], [1], [0, 0, 1, 1], [], []>} : vector<32x32xbf16>, vector<32x8xbf16>, vector<32x8xf32> -> vector<32x8xf32>
    %726 = vector.broadcast %623 : vector<32x1xf32> to vector<32x8xf32>
    %727 = arith.addf %725, %726 : vector<32x8xf32>
    %728 = math.tanh %727 : vector<32x8xf32>
    %729 = vector.broadcast %624 : vector<32x1xf32> to vector<32x8xf32>
    %730 = arith.mulf %729, %728 : vector<32x8xf32>
    %cst_261 = arith.constant dense<0.000000e+00> : vector<8xf32>
    %731 = vector.multi_reduction <add>, %730, %cst_261 [0] : vector<32x8xf32> to vector<8xf32>
    %732 = vector.shape_cast %731 : vector<8xf32> to vector<1x8xf32>
    %733 = vector.extract_strided_slice %625 {offsets = [6, 0], sizes = [1, 8], strides = [1, 1]} : vector<8x8xf32> to vector<1x8xf32>
    %cst_262 = arith.constant 5.000000e-01 : f32
    %734 = vector.broadcast %cst_262 : f32 to vector<1x8xf32>
    %735 = arith.cmpf olt, %733, %734 : vector<1x8xf32>
    %cst_263 = arith.constant -1.000000e+09 : f32
    %736 = vector.broadcast %cst_263 : f32 to vector<1x8xf32>
    %737 = arith.select %735, %736, %732 : vector<1x8xi1>, vector<1x8xf32>
    %c7_264 = arith.constant 7 : index
    %c0_265 = arith.constant 0 : index
    %c0_266 = arith.constant 0 : index
    %738 = vector.load %arg12[%c7_264, %c0_265, %c0_266] : memref<8x32x8xf32, #tpu.memory_space<vmem>>, vector<1x32x8xf32>
    %739 = vector.shape_cast %738 : vector<1x32x8xf32> to vector<32x8xf32>
    %740 = arith.truncf %739 : vector<32x8xf32> to vector<32x8xbf16>
    %cst_267 = arith.constant dense<0.000000e+00> : vector<32x8xf32>
    %741 = tpu.matmul %622, %740, %cst_267 {dimension_numbers = #tpu.dot_dimension_numbers<[1], [0], [0], [1], [0, 0, 1, 1], [], []>} : vector<32x32xbf16>, vector<32x8xbf16>, vector<32x8xf32> -> vector<32x8xf32>
    %742 = vector.broadcast %623 : vector<32x1xf32> to vector<32x8xf32>
    %743 = arith.addf %741, %742 : vector<32x8xf32>
    %744 = math.tanh %743 : vector<32x8xf32>
    %745 = vector.broadcast %624 : vector<32x1xf32> to vector<32x8xf32>
    %746 = arith.mulf %745, %744 : vector<32x8xf32>
    %cst_268 = arith.constant dense<0.000000e+00> : vector<8xf32>
    %747 = vector.multi_reduction <add>, %746, %cst_268 [0] : vector<32x8xf32> to vector<8xf32>
    %748 = vector.shape_cast %747 : vector<8xf32> to vector<1x8xf32>
    %749 = vector.extract_strided_slice %625 {offsets = [7, 0], sizes = [1, 8], strides = [1, 1]} : vector<8x8xf32> to vector<1x8xf32>
    %cst_269 = arith.constant 5.000000e-01 : f32
    %750 = vector.broadcast %cst_269 : f32 to vector<1x8xf32>
    %751 = arith.cmpf olt, %749, %750 : vector<1x8xf32>
    %cst_270 = arith.constant -1.000000e+09 : f32
    %752 = vector.broadcast %cst_270 : f32 to vector<1x8xf32>
    %753 = arith.select %751, %752, %748 : vector<1x8xi1>, vector<1x8xf32>
    %754 = arith.maximumf %641, %657 : vector<1x8xf32>
    %755 = arith.maximumf %754, %673 : vector<1x8xf32>
    %756 = arith.maximumf %755, %689 : vector<1x8xf32>
    %757 = arith.maximumf %756, %705 : vector<1x8xf32>
    %758 = arith.maximumf %757, %721 : vector<1x8xf32>
    %759 = arith.maximumf %758, %737 : vector<1x8xf32>
    %760 = arith.maximumf %759, %753 : vector<1x8xf32>
    %761 = arith.subf %641, %760 : vector<1x8xf32>
    %762 = math.exp %761 : vector<1x8xf32>
    %763 = arith.subf %657, %760 : vector<1x8xf32>
    %764 = math.exp %763 : vector<1x8xf32>
    %765 = arith.subf %673, %760 : vector<1x8xf32>
    %766 = math.exp %765 : vector<1x8xf32>
    %767 = arith.subf %689, %760 : vector<1x8xf32>
    %768 = math.exp %767 : vector<1x8xf32>
    %769 = arith.subf %705, %760 : vector<1x8xf32>
    %770 = math.exp %769 : vector<1x8xf32>
    %771 = arith.subf %721, %760 : vector<1x8xf32>
    %772 = math.exp %771 : vector<1x8xf32>
    %773 = arith.subf %737, %760 : vector<1x8xf32>
    %774 = math.exp %773 : vector<1x8xf32>
    %775 = arith.subf %753, %760 : vector<1x8xf32>
    %776 = math.exp %775 : vector<1x8xf32>
    %777 = arith.addf %762, %764 : vector<1x8xf32>
    %778 = arith.addf %777, %766 : vector<1x8xf32>
    %779 = arith.addf %778, %768 : vector<1x8xf32>
    %780 = arith.addf %779, %770 : vector<1x8xf32>
    %781 = arith.addf %780, %772 : vector<1x8xf32>
    %782 = arith.addf %781, %774 : vector<1x8xf32>
    %783 = arith.addf %782, %776 : vector<1x8xf32>
    %784 = tpu.reciprocal %783 {approx = true} : vector<1x8xf32> -> vector<1x8xf32>
    %cst_271 = arith.constant 0.000000e+00 : f32
    %785 = vector.broadcast %cst_271 : f32 to vector<32x8xf32>
    %786 = arith.mulf %762, %784 : vector<1x8xf32>
    %c0_272 = arith.constant 0 : index
    %c0_273 = arith.constant 0 : index
    %c0_274 = arith.constant 0 : index
    %787 = vector.load %arg12[%c0_272, %c0_273, %c0_274] : memref<8x32x8xf32, #tpu.memory_space<vmem>>, vector<1x32x8xf32>
    %788 = vector.shape_cast %787 : vector<1x32x8xf32> to vector<32x8xf32>
    %789 = vector.broadcast %786 : vector<1x8xf32> to vector<32x8xf32>
    %790 = arith.mulf %789, %788 : vector<32x8xf32>
    %791 = arith.addf %785, %790 : vector<32x8xf32>
    %792 = arith.mulf %764, %784 : vector<1x8xf32>
    %c1_275 = arith.constant 1 : index
    %c0_276 = arith.constant 0 : index
    %c0_277 = arith.constant 0 : index
    %793 = vector.load %arg12[%c1_275, %c0_276, %c0_277] : memref<8x32x8xf32, #tpu.memory_space<vmem>>, vector<1x32x8xf32>
    %794 = vector.shape_cast %793 : vector<1x32x8xf32> to vector<32x8xf32>
    %795 = vector.broadcast %792 : vector<1x8xf32> to vector<32x8xf32>
    %796 = arith.mulf %795, %794 : vector<32x8xf32>
    %797 = arith.addf %791, %796 : vector<32x8xf32>
    %798 = arith.mulf %766, %784 : vector<1x8xf32>
    %c2_278 = arith.constant 2 : index
    %c0_279 = arith.constant 0 : index
    %c0_280 = arith.constant 0 : index
    %799 = vector.load %arg12[%c2_278, %c0_279, %c0_280] : memref<8x32x8xf32, #tpu.memory_space<vmem>>, vector<1x32x8xf32>
    %800 = vector.shape_cast %799 : vector<1x32x8xf32> to vector<32x8xf32>
    %801 = vector.broadcast %798 : vector<1x8xf32> to vector<32x8xf32>
    %802 = arith.mulf %801, %800 : vector<32x8xf32>
    %803 = arith.addf %797, %802 : vector<32x8xf32>
    %804 = arith.mulf %768, %784 : vector<1x8xf32>
    %c3_281 = arith.constant 3 : index
    %c0_282 = arith.constant 0 : index
    %c0_283 = arith.constant 0 : index
    %805 = vector.load %arg12[%c3_281, %c0_282, %c0_283] : memref<8x32x8xf32, #tpu.memory_space<vmem>>, vector<1x32x8xf32>
    %806 = vector.shape_cast %805 : vector<1x32x8xf32> to vector<32x8xf32>
    %807 = vector.broadcast %804 : vector<1x8xf32> to vector<32x8xf32>
    %808 = arith.mulf %807, %806 : vector<32x8xf32>
    %809 = arith.addf %803, %808 : vector<32x8xf32>
    %810 = arith.mulf %770, %784 : vector<1x8xf32>
    %c4_284 = arith.constant 4 : index
    %c0_285 = arith.constant 0 : index
    %c0_286 = arith.constant 0 : index
    %811 = vector.load %arg12[%c4_284, %c0_285, %c0_286] : memref<8x32x8xf32, #tpu.memory_space<vmem>>, vector<1x32x8xf32>
    %812 = vector.shape_cast %811 : vector<1x32x8xf32> to vector<32x8xf32>
    %813 = vector.broadcast %810 : vector<1x8xf32> to vector<32x8xf32>
    %814 = arith.mulf %813, %812 : vector<32x8xf32>
    %815 = arith.addf %809, %814 : vector<32x8xf32>
    %816 = arith.mulf %772, %784 : vector<1x8xf32>
    %c5_287 = arith.constant 5 : index
    %c0_288 = arith.constant 0 : index
    %c0_289 = arith.constant 0 : index
    %817 = vector.load %arg12[%c5_287, %c0_288, %c0_289] : memref<8x32x8xf32, #tpu.memory_space<vmem>>, vector<1x32x8xf32>
    %818 = vector.shape_cast %817 : vector<1x32x8xf32> to vector<32x8xf32>
    %819 = vector.broadcast %816 : vector<1x8xf32> to vector<32x8xf32>
    %820 = arith.mulf %819, %818 : vector<32x8xf32>
    %821 = arith.addf %815, %820 : vector<32x8xf32>
    %822 = arith.mulf %774, %784 : vector<1x8xf32>
    %c6_290 = arith.constant 6 : index
    %c0_291 = arith.constant 0 : index
    %c0_292 = arith.constant 0 : index
    %823 = vector.load %arg12[%c6_290, %c0_291, %c0_292] : memref<8x32x8xf32, #tpu.memory_space<vmem>>, vector<1x32x8xf32>
    %824 = vector.shape_cast %823 : vector<1x32x8xf32> to vector<32x8xf32>
    %825 = vector.broadcast %822 : vector<1x8xf32> to vector<32x8xf32>
    %826 = arith.mulf %825, %824 : vector<32x8xf32>
    %827 = arith.addf %821, %826 : vector<32x8xf32>
    %828 = arith.mulf %776, %784 : vector<1x8xf32>
    %c7_293 = arith.constant 7 : index
    %c0_294 = arith.constant 0 : index
    %c0_295 = arith.constant 0 : index
    %829 = vector.load %arg12[%c7_293, %c0_294, %c0_295] : memref<8x32x8xf32, #tpu.memory_space<vmem>>, vector<1x32x8xf32>
    %830 = vector.shape_cast %829 : vector<1x32x8xf32> to vector<32x8xf32>
    %831 = vector.broadcast %828 : vector<1x8xf32> to vector<32x8xf32>
    %832 = arith.mulf %831, %830 : vector<32x8xf32>
    %833 = arith.addf %827, %832 : vector<32x8xf32>
    %c0_296 = arith.constant 0 : index
    %c0_297 = arith.constant 0 : index
    %834 = vector.load %arg10[%c0_296, %c0_297] : memref<32x8xf32, #tpu.memory_space<vmem>>, vector<32x8xf32>
    tpu.vector_store %arg10[%c0_296, %c0_297], %833 {strides = array<i32>} : memref<32x8xf32, #tpu.memory_space<vmem>>, vector<32x8xf32>,
    return
  }
  func.func @transform_0(%arg0: i32) -> (i32, i32, i32) {
    %c0_i32 = arith.constant 0 : i32
    %c0_i32_0 = arith.constant 0 : i32
    %c0_i32_1 = arith.constant 0 : i32
    return %c0_i32, %c0_i32_0, %arg0 : i32, i32, i32
  }
  func.func @transform_1(%arg0: i32) -> (i32, i32) {
    %c0_i32 = arith.constant 0 : i32
    %c0_i32_0 = arith.constant 0 : i32
    return %c0_i32, %arg0 : i32, i32
  }
  func.func @transform_2(%arg0: i32) -> (i32, i32) {
    %c0_i32 = arith.constant 0 : i32
    %c0_i32_0 = arith.constant 0 : i32
    %c0_i32_1 = arith.constant 0 : i32
    return %c0_i32, %c0_i32_0 : i32, i32
  }
  func.func @transform_3(%arg0: i32) -> (i32, i32) {
    %c0_i32 = arith.constant 0 : i32
    %c0_i32_0 = arith.constant 0 : i32
    %c0_i32_1 = arith.constant 0 : i32
    return %c0_i32, %c0_i32_0 : i32, i32
  }
  func.func @transform_4(%arg0: i32) -> (i32, i32) {
    %c0_i32 = arith.constant 0 : i32
    %c0_i32_0 = arith.constant 0 : i32
    %c0_i32_1 = arith.constant 0 : i32
    return %c0_i32, %c0_i32_0 : i32, i32
  }
  func.func @transform_5(%arg0: i32) -> (i32, i32) {
    %c0_i32 = arith.constant 0 : i32
    %c0_i32_0 = arith.constant 0 : i32
    %c0_i32_1 = arith.constant 0 : i32
    return %c0_i32, %c0_i32_0 : i32, i32
  }
  func.func @transform_6(%arg0: i32) -> (i32, i32) {
    %c0_i32 = arith.constant 0 : i32
    %c0_i32_0 = arith.constant 0 : i32
    %c0_i32_1 = arith.constant 0 : i32
    return %c0_i32, %c0_i32_0 : i32, i32
  }
  func.func @transform_7(%arg0: i32) -> (i32, i32) {
    %c0_i32 = arith.constant 0 : i32
    %c0_i32_0 = arith.constant 0 : i32
    %c0_i32_1 = arith.constant 0 : i32
    return %c0_i32, %c0_i32_0 : i32, i32
  }
  func.func @transform_8(%arg0: i32) -> (i32, i32) {
    %c0_i32 = arith.constant 0 : i32
    %c0_i32_0 = arith.constant 0 : i32
    %c0_i32_1 = arith.constant 0 : i32
    return %c0_i32, %c0_i32_0 : i32, i32
  }
  func.func @transform_9(%arg0: i32) -> (i32, i32) {
    %c0_i32 = arith.constant 0 : i32
    %c0_i32_0 = arith.constant 0 : i32
    return %c0_i32, %arg0 : i32, i32
  }
}

</mosaic_0001>

<bundles_post_ra>
// kernel: tpu_custom_call.1
= control target key start
LH: loop header
LB: loop body
LE: loop exit
PB: predicated region body
PF: predicated region fallthrough
CT: control target
= control target key end

     0   :  { %v4736_v1 = vmov 0   ;;  %vm187_vm0 = vcmask 261120   ;;  %v4737_v44 = vmov 0.0|0.0   ;;  %vm287_vm1 = vcmask 64512   ;;  %s6041_s0 = inlined_call_operand.vmem [shape: bf16[8,32,8], index: 0, kind: input, shape index: {}]   ;;  %s6042_s2 = inlined_call_operand.vmem [shape: bf16[96,32], index: 2, kind: input, shape index: {}]   ;;  %s6043_s3 = inlined_call_operand.vmem [shape: f32[96,1], index: 3, kind: input, shape index: {}]   ;;  %s6044_s5 = inlined_call_operand.vmem [shape: f32[96,1], index: 5, kind: input, shape index: {}]   ;;  %s6045_s4 = inlined_call_operand.vmem [shape: bf16[96,32], index: 4, kind: input, shape index: {}]   ;;  %s6046_s7 = inlined_call_operand.vmem [shape: f32[32,1], index: 7, kind: input, shape index: {}]   ;;  %s6047_s8 = inlined_call_operand.vmem [shape: f32[32,1], index: 8, kind: input, shape index: {}]   ;;  %s6048_s6 = inlined_call_operand.vmem [shape: bf16[32,32], index: 6, kind: input, shape index: {}]   ;;  %s6049_s1 = inlined_call_operand.vmem [shape: f32[8,8], index: 1, kind: input, shape index: {}]   ;;  %s6050_s9 = inlined_call_operand.vmem [shape: f32[32,8], index: 9, kind: output, shape index: {}]  }
   0x1   :  { %v4279_v0 = vld [vmem:[%s6041_s0] sm:$0xff]   ;;  %4277 = vset.pattern.permute.xlu0 %v4736_v1  ;;  %4278 = vset.pattern.permute.xlu1 %v4736_v1  ;;  %v4280_v2 = vld [vmem:[%s6041_s0 + $0x10] sm:$0xff]   ;;  %v4281_v3 = vld [vmem:[%s6041_s0 + $0x8] sm:$0xff]  }
   0x2   :  { %3957 = vmatprep.subr.bf16.mxu0 %v4279_v0  ;;  %3973 = vmatprep.subr.bf16.mxu1 %v4280_v2  ;;  %v4282_v4 = vld [vmem:[%s6041_s0 + $0x18] sm:$0xff]   ;;  %v4803_v5 = vld [vmem:[%s6042_s2] sm:$0xff]   ;;  %v4812_v6 = vld [vmem:[%s6042_s2 + $0x8] sm:$0xff]  }
   0x3   :  { %3958 = vmatpush3.bf16.msra.mxu0 %v4279_v0  ;;  %3974 = vmatpush3.bf16.msra.mxu1 %v4280_v2  ;;  %v4817_v7 = vld [vmem:[%s6042_s2 + $0x10] sm:$0xff]   ;;  %v4287_v8 = vld [vmem:[%s6041_s0 + $0x20] sm:$0xff]   ;;  %v4836_v10 = vld [vmem:[%s6042_s2 + $0x18] sm:$0xff]  }
   0x4   :  { %3959 = vmatprep.subr.bf16.mxu0 %v4281_v3  ;;  %3975 = vmatprep.subr.bf16.mxu1 %v4282_v4  ;;  %v4290_v9 = vld [vmem:[%s6041_s0 + $0x30] sm:$0xff]   ;;  %v4291_v11 = vld [vmem:[%s6041_s0 + $0x28] sm:$0xff]   ;;  %v4292_v12 = vld [vmem:[%s6041_s0 + $0x38] sm:$0xff]  }
   0x5   :  { %3961 = vmatprep.mubr.msk.bf16.mxu0 %vm187_vm0, %v4803_v5  ;;  %3977 = vmatprep.mubr.msk.bf16.mxu1 %vm187_vm0, %v4803_v5  ;;  %v4293_v13 = vld [vmem:[%s6041_s0 + $0x40] sm:$0xff]   ;;  %v4294_v15 = vld [vmem:[%s6041_s0 + $0x50] sm:$0xff]   ;;  %v4872_v18 = vld [vmem:[%s6042_s2 + $0x28] sm:$0xff]  }
   0x6   :  { %v4850_v14 = vld [vmem:[%s6042_s2 + $0x20] sm:$0xff]   ;;  %v51_v17 = vld [vmem:[%s6043_s3 + $0x30] sm:$0xff]  ;;  %v46_v19 = vld [vmem:[%s6043_s3 + $0x8] sm:$0xff] }
   0x7   :  { %3960 = vmatpush3.bf16.msra.mxu0 %v4281_v3  ;;  %3976 = vmatpush3.bf16.msra.mxu1 %v4282_v4  ;;  %v45_v16 = vld [vmem:[%s6043_s3] sm:$0xff]  ;;  %v52_v20 = vld [vmem:[%s6043_s3 + $0x38] sm:$0xff]  ;;  %v70_v22 = vld [vmem:[%s6044_s5 + $0x8] sm:$0xff] }
   0x8   :  { %3989 = vmatprep.subr.bf16.mxu0 %v4287_v8  ;;  %4005 = vmatprep.subr.bf16.mxu1 %v4290_v9  ;;  %v69_v21 = vld [vmem:[%s6044_s5] sm:$0xff]  ;;  %v75_v23 = vld [vmem:[%s6044_s5 + $0x30] sm:$0xff]  ;;  %v76_v24 = vld [vmem:[%s6044_s5 + $0x38] sm:$0xff] }
   0x9   :  { %87 = vperm.xlu0 %4277, %v45_v16   ;;  %117 = vperm.xlu1 %4278, %v51_v17   ;;  %v4295_v25 = vld [vmem:[%s6041_s0 + $0x48] sm:$0xff]   ;;  %v4296_v26 = vld [vmem:[%s6041_s0 + $0x58] sm:$0xff]   ;;  %v47_v27 = vld [vmem:[%s6043_s3 + $0x10] sm:$0xff] }
   0xa   :  { %3962 = vmatmul.mubr.msk.bf16.vlgmr.msra.gmra.mrb[0].mxu0 %vm187_vm0, %v4812_v6  ;;  %3978 = vmatmul.mubr.msk.bf16.vlgmr.msra.gmra.mrb[0].mxu1 %vm187_vm0, %v4812_v6  ;;  %v48_v28 = vld [vmem:[%s6043_s3 + $0x18] sm:$0xff]  ;;  %v4297_v29 = vld [vmem:[%s6041_s0 + $0x60] sm:$0xff]   ;;  %v4298_v30 = vld [vmem:[%s6041_s0 + $0x70] sm:$0xff]  }
   0xb   :  { %3965 = vmatprep.mubr.msk.bf16.mxu0 %vm187_vm0, %v4817_v7  ;;  %3981 = vmatprep.mubr.msk.bf16.mxu1 %vm187_vm0, %v4817_v7  ;;  %v53_v31 = vld [vmem:[%s6043_s3 + $0x40] sm:$0xff]  ;;  %v54_v32 = vld [vmem:[%s6043_s3 + $0x48] sm:$0xff]  ;;  %v71_v33 = vld [vmem:[%s6044_s5 + $0x10] sm:$0xff] }
   0xc   :  { %3990 = vmatpush3.bf16.msra.mxu0 %v4287_v8  ;;  %4006 = vmatpush3.bf16.msra.mxu1 %v4290_v9  ;;  %v72_v34 = vld [vmem:[%s6044_s5 + $0x18] sm:$0xff]  ;;  %v77_v35 = vld [vmem:[%s6044_s5 + $0x40] sm:$0xff]  ;;  %v78_v36 = vld [vmem:[%s6044_s5 + $0x48] sm:$0xff] }
   0xd   :  { %3991 = vmatprep.subr.bf16.mxu0 %v4291_v11  ;;  %4007 = vmatprep.subr.bf16.mxu1 %v4292_v12  ;;  %v49_v37 = vld [vmem:[%s6043_s3 + $0x20] sm:$0xff]  ;;  %v50_v38 = vld [vmem:[%s6043_s3 + $0x28] sm:$0xff]  ;;  %v4300_v40 = vld [vmem:[%s6041_s0 + $0x78] sm:$0xff]  }
   0xe   :  { %92 = vperm.xlu0 %4277, %v46_v19   ;;  %122 = vperm.xlu1 %4278, %v52_v20   ;;  %v4299_v39 = vld [vmem:[%s6041_s0 + $0x68] sm:$0xff]   ;;  %v55_v41 = vld [vmem:[%s6043_s3 + $0x50] sm:$0xff]  ;;  %v56_v42 = vld [vmem:[%s6043_s3 + $0x58] sm:$0xff] }
   0xf   :  { %v73_v43 = vld [vmem:[%s6044_s5 + $0x20] sm:$0xff]  ;;  %v74_v45 = vld [vmem:[%s6044_s5 + $0x28] sm:$0xff]  ;;  %v79_v46 = vld [vmem:[%s6044_s5 + $0x50] sm:$0xff] }
  0x10   :  { %3992 = vmatpush3.bf16.msra.mxu0 %v4291_v11  ;;  %4008 = vmatpush3.bf16.msra.mxu1 %v4292_v12  ;;  %v80_v47 = vld [vmem:[%s6044_s5 + $0x58] sm:$0xff]  ;;  %v2659_v48 = vld [vmem:[%s6046_s7] sm:$0xff]  ;;  %v2660_v49 = vld [vmem:[%s6046_s7 + $0x8] sm:$0xff] }
  0x11   :  { %4021 = vmatprep.subr.bf16.mxu0 %v4293_v13  ;;  %4037 = vmatprep.subr.bf16.mxu1 %v4294_v15  ;;  %v2661_v50 = vld [vmem:[%s6046_s7 + $0x10] sm:$0xff]  ;;  %v2662_v51 = vld [vmem:[%s6046_s7 + $0x18] sm:$0xff]  ;;  %v2663_v52 = vld [vmem:[%s6047_s8] sm:$0xff] }
  0x12   :  { %3966 = vmatmul.mubr.msk.bf16.gmra.mrb[4].mxu0 %vm187_vm0, %v4836_v10  ;;  %3982 = vmatmul.mubr.msk.bf16.gmra.mrb[4].mxu1 %vm187_vm0, %v4836_v10  ;;  %v2664_v53 = vld [vmem:[%s6047_s8 + $0x8] sm:$0xff]  ;;  %v2665_v54 = vld [vmem:[%s6047_s8 + $0x10] sm:$0xff]  ;;  %v2666_v55 = vld [vmem:[%s6047_s8 + $0x18] sm:$0xff] }
  0x13   :  { %3969 = vmatprep.mubr.msk.bf16.mxu0 %vm187_vm0, %v4850_v14  ;;  %3985 = vmatprep.mubr.msk.bf16.mxu1 %vm187_vm0, %v4850_v14  ;;  %v5057_v56 = vld [vmem:[%s6045_s4] sm:$0xff]   ;;  %v5070_v57 = vld [vmem:[%s6045_s4 + $0x8] sm:$0xff]   ;;  %v5075_v58 = vld [vmem:[%s6045_s4 + $0x10] sm:$0xff]  }
  0x14   :  { %1080 = vperm.xlu0 %4277, %v69_v21   ;;  %1085 = vperm.xlu1 %4278, %v70_v22   ;;  %v5084_v59 = vld [vmem:[%s6045_s4 + $0x18] sm:$0xff]   ;;  %v5089_v60 = vld [vmem:[%s6045_s4 + $0x20] sm:$0xff]   ;;  %v5098_v61 = vld [vmem:[%s6045_s4 + $0x28] sm:$0xff]  }
  0x18   :  { %1110 = vperm.xlu0 %4277, %v75_v23   ;;  %1115 = vperm.xlu1 %4278, %v76_v24  }
  0x1a   :  { %3970 = vmatmul.mubr.msk.bf16.gmra.mrb[8].mxu0 %vm187_vm0, %v4872_v18  ;;  %3986 = vmatmul.mubr.msk.bf16.gmra.mrb[8].mxu1 %vm187_vm0, %v4872_v18 }
  0x1b   :  { %3993 = vmatprep.mubr.msk.bf16.mxu0 %vm187_vm0, %v4803_v5  ;;  %4009 = vmatprep.mubr.msk.bf16.mxu1 %vm187_vm0, %v4803_v5 }
  0x1c   :  { %97 = vperm.xlu0 %4277, %v47_v27   ;;  %102 = vperm.xlu1 %4278, %v48_v28  }
  0x20   :  { %127 = vperm.xlu0 %4277, %v53_v31   ;;  %132 = vperm.xlu1 %4278, %v54_v32  }
  0x22   :  { %3994 = vmatmul.mubr.msk.bf16.vlgmr.msra.gmra.mrb[12].mxu0 %vm187_vm0, %v4812_v6  ;;  %4010 = vmatmul.mubr.msk.bf16.vlgmr.msra.gmra.mrb[12].mxu1 %vm187_vm0, %v4812_v6 }
  0x23   :  { %3997 = vmatprep.mubr.msk.bf16.mxu0 %vm187_vm0, %v4817_v7  ;;  %4013 = vmatprep.mubr.msk.bf16.mxu1 %vm187_vm0, %v4817_v7 }
  0x24   :  { %4022 = vmatpush3.bf16.msra.mxu0 %v4293_v13  ;;  %4038 = vmatpush3.bf16.msra.mxu1 %v4294_v15 }
  0x25   :  { %4023 = vmatprep.subr.bf16.mxu0 %v4295_v25  ;;  %4039 = vmatprep.subr.bf16.mxu1 %v4296_v26 }
  0x26   :  { %1090 = vperm.xlu0 %4277, %v71_v33   ;;  %1095 = vperm.xlu1 %4278, %v72_v34  }
  0x28   :  { %4024 = vmatpush3.bf16.msra.mxu0 %v4295_v25  ;;  %4040 = vmatpush3.bf16.msra.mxu1 %v4296_v26 }
  0x29   :  { %4053 = vmatprep.subr.bf16.mxu0 %v4297_v29  ;;  %4069 = vmatprep.subr.bf16.mxu1 %v4298_v30 }
  0x2a   :  { %3998 = vmatmul.mubr.msk.bf16.gmra.mrb[16].mxu0 %vm187_vm0, %v4836_v10  ;;  %4014 = vmatmul.mubr.msk.bf16.gmra.mrb[16].mxu1 %vm187_vm0, %v4836_v10 }
  0x2b   :  { %4001 = vmatprep.mubr.msk.bf16.mxu0 %vm187_vm0, %v4850_v14  ;;  %4017 = vmatprep.mubr.msk.bf16.mxu1 %vm187_vm0, %v4850_v14 }
  0x2c   :  { %1120 = vperm.xlu0 %4277, %v77_v35   ;;  %1125 = vperm.xlu1 %4278, %v78_v36  }
  0x30   :  { %107 = vperm.xlu0 %4277, %v49_v37   ;;  %112 = vperm.xlu1 %4278, %v50_v38  }
  0x32   :  { %4002 = vmatmul.mubr.msk.bf16.gmra.mrb[20].mxu0 %vm187_vm0, %v4872_v18  ;;  %4018 = vmatmul.mubr.msk.bf16.gmra.mrb[20].mxu1 %vm187_vm0, %v4872_v18 }
  0x33   :  { %4025 = vmatprep.mubr.msk.bf16.mxu0 %vm187_vm0, %v4803_v5  ;;  %4041 = vmatprep.mubr.msk.bf16.mxu1 %vm187_vm0, %v4803_v5 }
  0x34   :  { %137 = vperm.xlu0 %4277, %v55_v41   ;;  %142 = vperm.xlu1 %4278, %v56_v42  }
  0x38   :  { %1100 = vperm.xlu0 %4277, %v73_v43   ;;  %1105 = vperm.xlu1 %4278, %v74_v45  }
  0x3a   :  { %4026 = vmatmul.mubr.msk.bf16.vlgmr.msra.gmra.mrb[24].mxu0 %vm187_vm0, %v4812_v6  ;;  %4042 = vmatmul.mubr.msk.bf16.vlgmr.msra.gmra.mrb[24].mxu1 %vm187_vm0, %v4812_v6 }
  0x3b   :  { %4029 = vmatprep.mubr.msk.bf16.mxu0 %vm187_vm0, %v4817_v7  ;;  %4045 = vmatprep.mubr.msk.bf16.mxu1 %vm187_vm0, %v4817_v7 }
  0x3c   :  { %4054 = vmatpush3.bf16.msra.mxu0 %v4297_v29  ;;  %4070 = vmatpush3.bf16.msra.mxu1 %v4298_v30 }
  0x3d   :  { %4055 = vmatprep.subr.bf16.mxu0 %v4299_v39  ;;  %4071 = vmatprep.subr.bf16.mxu1 %v4300_v40 }
  0x3e   :  { %1130 = vperm.xlu0 %4277, %v79_v46   ;;  %1135 = vperm.xlu1 %4278, %v80_v47  }
  0x40   :  { %4056 = vmatpush3.bf16.msra.mxu0 %v4299_v39  ;;  %4072 = vmatpush3.bf16.msra.mxu1 %v4300_v40 }
  0x41   :  { %4085 = vmatprep.subr.bf16.mxu0 %v4737_v44 }
  0x42   :  { %4030 = vmatmul.mubr.msk.bf16.gmra.mrb[28].mxu0 %vm187_vm0, %v4836_v10  ;;  %4046 = vmatmul.mubr.msk.bf16.gmra.mrb[28].mxu1 %vm187_vm0, %v4836_v10 }
  0x43   :  { %4033 = vmatprep.mubr.msk.bf16.mxu0 %vm187_vm0, %v4850_v14  ;;  %4049 = vmatprep.mubr.msk.bf16.mxu1 %vm187_vm0, %v4850_v14 }
  0x44   :  { %2676 = vperm.xlu0 %4277, %v2659_v48   ;;  %2681 = vperm.xlu1 %4278, %v2660_v49  }
  0x48   :  { %2686 = vperm.xlu0 %4277, %v2661_v50   ;;  %2691 = vperm.xlu1 %4278, %v2662_v51  }
  0x4a   :  { %4034 = vmatmul.mubr.msk.bf16.gmra.mrb[32].mxu0 %vm187_vm0, %v4872_v18  ;;  %4050 = vmatmul.mubr.msk.bf16.gmra.mrb[32].mxu1 %vm187_vm0, %v4872_v18 }
  0x4b   :  { %4057 = vmatprep.mubr.msk.bf16.mxu0 %vm187_vm0, %v4803_v5  ;;  %4073 = vmatprep.mubr.msk.bf16.mxu1 %vm187_vm0, %v4803_v5 }
  0x4c   :  { %2765 = vperm.xlu0 %4277, %v2663_v52   ;;  %2770 = vperm.xlu1 %4278, %v2664_v53  }
  0x50   :  { %2775 = vperm.xlu0 %4277, %v2665_v54   ;;  %2780 = vperm.xlu1 %4278, %v2666_v55  }
  0x52   :  { %4058 = vmatmul.mubr.msk.bf16.vlgmr.msra.gmra.mrb[36].mxu0 %vm187_vm0, %v4812_v6  ;;  %4074 = vmatmul.mubr.msk.bf16.vlgmr.msra.gmra.mrb[36].mxu1 %vm187_vm0, %v4812_v6 }
  0x53   :  { %4061 = vmatprep.mubr.msk.bf16.mxu0 %vm187_vm0, %v4817_v7  ;;  %4077 = vmatprep.mubr.msk.bf16.mxu1 %vm187_vm0, %v4817_v7 }
  0x54   :  { %4086 = vmatpush3.bf16.msra.mxu0 %v4737_v44 }
  0x5a   :  { %4062 = vmatmul.mubr.msk.bf16.gmra.mrb[40].mxu0 %vm187_vm0, %v4836_v10  ;;  %4078 = vmatmul.mubr.msk.bf16.gmra.mrb[40].mxu1 %vm187_vm0, %v4836_v10 }
  0x5b   :  { %4065 = vmatprep.mubr.msk.bf16.mxu0 %vm187_vm0, %v4850_v14  ;;  %4081 = vmatprep.mubr.msk.bf16.mxu1 %vm187_vm0, %v4850_v14 }
  0x62   :  { %4066 = vmatmul.mubr.msk.bf16.gmra.mrb[44].mxu0 %vm187_vm0, %v4872_v18  ;;  %4082 = vmatmul.mubr.msk.bf16.gmra.mrb[44].mxu1 %vm187_vm0, %v4872_v18 }
  0x63   :  { %4087 = vmatprep.mubr.msk.bf16.mxu0 %vm187_vm0, %v5057_v56  ;;  %4103 = vmatprep.mubr.msk.bf16.mxu1 %vm187_vm0, %v5057_v56 }
  0x6a   :  { %4088 = vmatmul.mubr.msk.bf16.vlgmr.msra.gmra.mrb[48].mxu0 %vm187_vm0, %v5070_v57 }
  0x6b   :  { %4091 = vmatprep.mubr.msk.bf16.mxu0 %vm187_vm0, %v5075_v58 }
  0x72   :  { %4092 = vmatmul.mubr.msk.bf16.gmra.mrb[52].mxu0 %vm187_vm0, %v5084_v59 }
  0x73   :  { %4095 = vmatprep.mubr.msk.bf16.mxu0 %vm187_vm0, %v5089_v60 }
  0x7a   :  { %4096 = vmatmul.mubr.msk.bf16.gmra.mrb[56].mxu0 %vm187_vm0, %v5098_v61 }
  0x7b   :  { %4119 = vmatprep.mubr.msk.bf16.mxu0 %vm187_vm0, %v5057_v56 }
  0x88   :  { %v5104_v62 = vpop.permute.xlu0 %87  ;;  %v5106_v63 = vpop.permute.xlu1 %117 }
  0x8d   :  { %v5108_v0 = vpop.permute.xlu0 %92  ;;  %v5110_v1 = vpop.permute.xlu1 %122 }
  0x93   :  { %v5112_v2 = vpop.permute.xlu0 %1080  ;;  %v5114_v3 = vpop.permute.xlu1 %1085 }
  0x97   :  { %v5116_v4 = vpop.permute.xlu0 %1110  ;;  %v5118_v5 = vpop.permute.xlu1 %1115 }
  0x9b   :  { %v5120_v6 = vpop.permute.xlu0 %97  ;;  %v5122_v7 = vpop.permute.xlu1 %102 }
  0x9f   :  { %v5124_v8 = vpop.permute.xlu0 %127  ;;  %v5126_v9 = vpop.permute.xlu1 %132 }
  0xa5   :  { %v5128_v10 = vpop.permute.xlu0 %1090  ;;  %v5130_v11 = vpop.permute.xlu1 %1095 }
  0xab   :  { %v5132_v12 = vpop.permute.xlu0 %1120  ;;  %v5134_v14 = vpop.permute.xlu1 %1125 }
  0xaf   :  { %v5151_v30 = vpop.permute.xlu0 %107  ;;  %v5154_v32 = vpop.permute.xlu1 %112 }
  0xb3   :  { %v5170_v48 = vpop.permute.xlu0 %137  ;;  %v5174_v50 = vpop.permute.xlu1 %142 }
  0xdd   :  { %v3963_v13 = vpop.f32.mrb[0].mxu0  ;;  %v3979_v17 = vpop.f32.mrb[0].mxu1 }
  0xde   :  { %v249_v15 = vadd.f32 %v3963_v13, %v5120_v6  ;;  %v240_v16 = vpop.f32.mrb[1].mxu0  ;;  %v360_v20 = vadd.f32 %v3979_v17, %v5120_v6  ;;  %v351_v21 = vpop.f32.mrb[1].mxu1 }
  0xdf   :  { %v241_v18 = vadd.f32 %v240_v16, %v5104_v62  ;;  %v3964_v19 = vpop.f32.mrb[2].mxu0  ;;  %v352_v24 = vadd.f32 %v351_v21, %v5104_v62  ;;  %v3980_v25 = vpop.f32.mrb[2].mxu1 }
  0xe0   :  { %290 = vst.msk [vmem:[#allocation2 + $0x10] sm:$0xff] %vm287_vm1, %v249_v15  ;;  %v252_v22 = vadd.f32 %v3964_v19, %v5122_v7  ;;  %v243_v23 = vpop.f32.mrb[3].mxu0  ;;  %401 = vst.msk [vmem:[#allocation2 + $0x70] sm:$0xff] %vm287_vm1, %v360_v20  ;;  %v363_v27 = vadd.f32 %v3980_v25, %v5122_v7  ;;  %v354_v28 = vpop.f32.mrb[3].mxu1 }
  0xe1   :  { %288 = vst.msk [vmem:[#allocation2] sm:$0xff] %vm287_vm1, %v241_v18  ;;  %v244_v26 = vadd.f32 %v243_v23, %v5108_v0  ;;  %399 = vst.msk [vmem:[#allocation2 + $0x60] sm:$0xff] %vm287_vm1, %v352_v24  ;;  %v355_v29 = vadd.f32 %v354_v28, %v5108_v0 }
  0xe2   :  { %291 = vst.msk [vmem:[#allocation2 + $0x18] sm:$0xff] %vm287_vm1, %v252_v22  ;;  %402 = vst.msk [vmem:[#allocation2 + $0x78] sm:$0xff] %vm287_vm1, %v363_v27 }
  0xe3   :  { %289 = vst.msk [vmem:[#allocation2 + $0x8] sm:$0xff] %vm287_vm1, %v244_v26  ;;  %400 = vst.msk [vmem:[#allocation2 + $0x68] sm:$0xff] %vm287_vm1, %v355_v29 }
  0xe5   :  { %v3967_v31 = vpop.f32.mrb[4].mxu0  ;;  %v3983_v35 = vpop.f32.mrb[4].mxu1 }
  0xe6   :  { %v265_v33 = vadd.f32 %v3967_v31, %v5106_v63  ;;  %v256_v34 = vpop.f32.mrb[5].mxu0  ;;  %v376_v38 = vadd.f32 %v3983_v35, %v5106_v63  ;;  %v367_v39 = vpop.f32.mrb[5].mxu1 }
  0xe7   :  { %v257_v36 = vadd.f32 %v256_v34, %v5151_v30  ;;  %v3968_v37 = vpop.f32.mrb[6].mxu0  ;;  %v368_v42 = vadd.f32 %v367_v39, %v5151_v30  ;;  %v3984_v43 = vpop.f32.mrb[6].mxu1 }
  0xe8   :  { %294 = vst.msk [vmem:[#allocation2 + $0x30] sm:$0xff] %vm287_vm1, %v265_v33  ;;  %v268_v40 = vadd.f32 %v3968_v37, %v5110_v1  ;;  %v259_v41 = vpop.f32.mrb[7].mxu0  ;;  %405 = vst.msk [vmem:[#allocation2 + $0x90] sm:$0xff] %vm287_vm1, %v376_v38  ;;  %v379_v45 = vadd.f32 %v3984_v43, %v5110_v1  ;;  %v370_v46 = vpop.f32.mrb[7].mxu1 }
  0xe9   :  { %292 = vst.msk [vmem:[#allocation2 + $0x20] sm:$0xff] %vm287_vm1, %v257_v36  ;;  %v260_v44 = vadd.f32 %v259_v41, %v5154_v32  ;;  %403 = vst.msk [vmem:[#allocation2 + $0x80] sm:$0xff] %vm287_vm1, %v368_v42  ;;  %v371_v47 = vadd.f32 %v370_v46, %v5154_v32 }
  0xea   :  { %295 = vst.msk [vmem:[#allocation2 + $0x38] sm:$0xff] %vm287_vm1, %v268_v40  ;;  %406 = vst.msk [vmem:[#allocation2 + $0x98] sm:$0xff] %vm287_vm1, %v379_v45 }
  0xeb   :  { %293 = vst.msk [vmem:[#allocation2 + $0x28] sm:$0xff] %vm287_vm1, %v260_v44  ;;  %404 = vst.msk [vmem:[#allocation2 + $0x88] sm:$0xff] %vm287_vm1, %v371_v47 }
  0xed   :  { %v3971_v49 = vpop.f32.mrb[8].mxu0  ;;  %v3987_v53 = vpop.f32.mrb[8].mxu1 }
  0xee   :  { %v281_v51 = vadd.f32 %v3971_v49, %v5170_v48  ;;  %v272_v52 = vpop.f32.mrb[9].mxu0  ;;  %v392_v13 = vadd.f32 %v3987_v53, %v5170_v48  ;;  %v383_v15 = vpop.f32.mrb[9].mxu1 }
  0xef   :  { %v273_v54 = vadd.f32 %v272_v52, %v5124_v8  ;;  %v3972_v55 = vpop.f32.mrb[10].mxu0  ;;  %v384_v18 = vadd.f32 %v383_v15, %v5124_v8  ;;  %v3988_v19 = vpop.f32.mrb[10].mxu1 }
  0xf0   :  { %298 = vst.msk [vmem:[#allocation2 + $0x50] sm:$0xff] %vm287_vm1, %v281_v51  ;;  %v284_v16 = vadd.f32 %v3972_v55, %v5174_v50  ;;  %v275_v17 = vpop.f32.mrb[11].mxu0  ;;  %409 = vst.msk [vmem:[#allocation2 + $0xb0] sm:$0xff] %vm287_vm1, %v392_v13  ;;  %v395_v21 = vadd.f32 %v3988_v19, %v5174_v50  ;;  %v386_v22 = vpop.f32.mrb[11].mxu1 }
  0xf1   :  { %296 = vst.msk [vmem:[#allocation2 + $0x40] sm:$0xff] %vm287_vm1, %v273_v54  ;;  %v276_v20 = vadd.f32 %v275_v17, %v5126_v9  ;;  %407 = vst.msk [vmem:[#allocation2 + $0xa0] sm:$0xff] %vm287_vm1, %v384_v18  ;;  %v387_v23 = vadd.f32 %v386_v22, %v5126_v9 }
  0xf2   :  { %299 = vst.msk [vmem:[#allocation2 + $0x58] sm:$0xff] %vm287_vm1, %v284_v16  ;;  %410 = vst.msk [vmem:[#allocation2 + $0xb8] sm:$0xff] %vm287_vm1, %v395_v21 }
  0xf3   :  { %297 = vst.msk [vmem:[#allocation2 + $0x48] sm:$0xff] %vm287_vm1, %v276_v20  ;;  %408 = vst.msk [vmem:[#allocation2 + $0xa8] sm:$0xff] %vm287_vm1, %v387_v23 }
  0xf5   :  { %v3995_v24 = vpop.f32.mrb[12].mxu0  ;;  %v4011_v27 = vpop.f32.mrb[12].mxu1 }
  0xf6   :  { %v471_v25 = vadd.f32 %v3995_v24, %v5120_v6  ;;  %v462_v26 = vpop.f32.mrb[13].mxu0  ;;  %v582_v31 = vadd.f32 %v4011_v27, %v5120_v6  ;;  %v573_v33 = vpop.f32.mrb[13].mxu1 }
  0xf7   :  { %v463_v28 = vadd.f32 %v462_v26, %v5104_v62  ;;  %v3996_v29 = vpop.f32.mrb[14].mxu0  ;;  %v574_v36 = vadd.f32 %v573_v33, %v5104_v62  ;;  %v4012_v37 = vpop.f32.mrb[14].mxu1 }
  0xf8   :  { %512 = vst.msk [vmem:[#allocation2 + $0xd0] sm:$0xff] %vm287_vm1, %v471_v25  ;;  %v474_v34 = vadd.f32 %v3996_v29, %v5122_v7  ;;  %v465_v35 = vpop.f32.mrb[15].mxu0  ;;  %623 = vst.msk [vmem:[#allocation2 + $0x130] sm:$0xff] %vm287_vm1, %v582_v31  ;;  %v585_v39 = vadd.f32 %v4012_v37, %v5122_v7  ;;  %v576_v40 = vpop.f32.mrb[15].mxu1 }
  0xf9   :  { %510 = vst.msk [vmem:[#allocation2 + $0xc0] sm:$0xff] %vm287_vm1, %v463_v28  ;;  %v466_v38 = vadd.f32 %v465_v35, %v5108_v0  ;;  %621 = vst.msk [vmem:[#allocation2 + $0x120] sm:$0xff] %vm287_vm1, %v574_v36  ;;  %v577_v41 = vadd.f32 %v576_v40, %v5108_v0 }
  0xfa   :  { %513 = vst.msk [vmem:[#allocation2 + $0xd8] sm:$0xff] %vm287_vm1, %v474_v34  ;;  %624 = vst.msk [vmem:[#allocation2 + $0x138] sm:$0xff] %vm287_vm1, %v585_v39 }
  0xfb   :  { %511 = vst.msk [vmem:[#allocation2 + $0xc8] sm:$0xff] %vm287_vm1, %v466_v38  ;;  %622 = vst.msk [vmem:[#allocation2 + $0x128] sm:$0xff] %vm287_vm1, %v577_v41 }
  0xfd   :  { %v3999_v42 = vpop.f32.mrb[16].mxu0  ;;  %v4015_v45 = vpop.f32.mrb[16].mxu1 }
  0xfe   :  { %v487_v43 = vadd.f32 %v3999_v42, %v5106_v63  ;;  %v478_v44 = vpop.f32.mrb[17].mxu0  ;;  %v598_v49 = vadd.f32 %v4015_v45, %v5106_v63  ;;  %v589_v51 = vpop.f32.mrb[17].mxu1 }
  0xff   :  { %v479_v46 = vadd.f32 %v478_v44, %v5151_v30  ;;  %v4000_v47 = vpop.f32.mrb[18].mxu0  ;;  %v590_v54 = vadd.f32 %v589_v51, %v5151_v30  ;;  %v4016_v55 = vpop.f32.mrb[18].mxu1 }
 0x100   :  { %516 = vst.msk [vmem:[#allocation2 + $0xf0] sm:$0xff] %vm287_vm1, %v487_v43  ;;  %v490_v52 = vadd.f32 %v4000_v47, %v5110_v1  ;;  %v481_v53 = vpop.f32.mrb[19].mxu0  ;;  %627 = vst.msk [vmem:[#allocation2 + $0x150] sm:$0xff] %vm287_vm1, %v598_v49  ;;  %v601_v15 = vadd.f32 %v4016_v55, %v5110_v1  ;;  %v592_v16 = vpop.f32.mrb[19].mxu1 }
 0x101   :  { %514 = vst.msk [vmem:[#allocation2 + $0xe0] sm:$0xff] %vm287_vm1, %v479_v46  ;;  %v482_v13 = vadd.f32 %v481_v53, %v5154_v32  ;;  %625 = vst.msk [vmem:[#allocation2 + $0x140] sm:$0xff] %vm287_vm1, %v590_v54  ;;  %v593_v17 = vadd.f32 %v592_v16, %v5154_v32 }
 0x102   :  { %517 = vst.msk [vmem:[#allocation2 + $0xf8] sm:$0xff] %vm287_vm1, %v490_v52  ;;  %628 = vst.msk [vmem:[#allocation2 + $0x158] sm:$0xff] %vm287_vm1, %v601_v15 }
 0x103   :  { %515 = vst.msk [vmem:[#allocation2 + $0xe8] sm:$0xff] %vm287_vm1, %v482_v13  ;;  %626 = vst.msk [vmem:[#allocation2 + $0x148] sm:$0xff] %vm287_vm1, %v593_v17 }
 0x105   :  { %v4003_v18 = vpop.f32.mrb[20].mxu0  ;;  %v4019_v21 = vpop.f32.mrb[20].mxu1 }
 0x106   :  { %v503_v19 = vadd.f32 %v4003_v18, %v5170_v48  ;;  %v494_v20 = vpop.f32.mrb[21].mxu0  ;;  %v614_v24 = vadd.f32 %v4019_v21, %v5170_v48  ;;  %v605_v25 = vpop.f32.mrb[21].mxu1 }
 0x107   :  { %v495_v22 = vadd.f32 %v494_v20, %v5124_v8  ;;  %v4004_v23 = vpop.f32.mrb[22].mxu0  ;;  %v606_v28 = vadd.f32 %v605_v25, %v5124_v8  ;;  %v4020_v29 = vpop.f32.mrb[22].mxu1 }
 0x108   :  { %520 = vst.msk [vmem:[#allocation2 + $0x110] sm:$0xff] %vm287_vm1, %v503_v19  ;;  %v506_v26 = vadd.f32 %v4004_v23, %v5174_v50  ;;  %v497_v27 = vpop.f32.mrb[23].mxu0  ;;  %631 = vst.msk [vmem:[#allocation2 + $0x170] sm:$0xff] %vm287_vm1, %v614_v24  ;;  %v617_v33 = vadd.f32 %v4020_v29, %v5174_v50  ;;  %v608_v34 = vpop.f32.mrb[23].mxu1 }
 0x109   :  { %518 = vst.msk [vmem:[#allocation2 + $0x100] sm:$0xff] %vm287_vm1, %v495_v22  ;;  %v498_v31 = vadd.f32 %v497_v27, %v5126_v9  ;;  %629 = vst.msk [vmem:[#allocation2 + $0x160] sm:$0xff] %vm287_vm1, %v606_v28  ;;  %v609_v35 = vadd.f32 %v608_v34, %v5126_v9 }
 0x10a   :  { %521 = vst.msk [vmem:[#allocation2 + $0x118] sm:$0xff] %vm287_vm1, %v506_v26  ;;  %632 = vst.msk [vmem:[#allocation2 + $0x178] sm:$0xff] %vm287_vm1, %v617_v33 }
 0x10b   :  { %519 = vst.msk [vmem:[#allocation2 + $0x108] sm:$0xff] %vm287_vm1, %v498_v31  ;;  %630 = vst.msk [vmem:[#allocation2 + $0x168] sm:$0xff] %vm287_vm1, %v609_v35 }
 0x10d   :  { %v4027_v36 = vpop.f32.mrb[24].mxu0  ;;  %v4043_v39 = vpop.f32.mrb[24].mxu1 }
 0x10e   :  { %v693_v37 = vadd.f32 %v4027_v36, %v5120_v6  ;;  %v684_v38 = vpop.f32.mrb[25].mxu0  ;;  %v804_v42 = vadd.f32 %v4043_v39, %v5120_v6  ;;  %v795_v43 = vpop.f32.mrb[25].mxu1 }
 0x10f   :  { %v685_v40 = vadd.f32 %v684_v38, %v5104_v62  ;;  %v4028_v41 = vpop.f32.mrb[26].mxu0  ;;  %v796_v46 = vadd.f32 %v795_v43, %v5104_v62  ;;  %v4044_v47 = vpop.f32.mrb[26].mxu1 }
 0x110   :  { %734 = vst.msk [vmem:[#allocation2 + $0x190] sm:$0xff] %vm287_vm1, %v693_v37  ;;  %v696_v44 = vadd.f32 %v4028_v41, %v5122_v7  ;;  %v687_v45 = vpop.f32.mrb[27].mxu0  ;;  %845 = vst.msk [vmem:[#allocation2 + $0x1f0] sm:$0xff] %vm287_vm1, %v804_v42  ;;  %v807_v51 = vadd.f32 %v4044_v47, %v5122_v7  ;;  %v798_v52 = vpop.f32.mrb[27].mxu1 }
 0x111   :  { %732 = vst.msk [vmem:[#allocation2 + $0x180] sm:$0xff] %vm287_vm1, %v685_v40  ;;  %v688_v49 = vadd.f32 %v687_v45, %v5108_v0  ;;  %843 = vst.msk [vmem:[#allocation2 + $0x1e0] sm:$0xff] %vm287_vm1, %v796_v46  ;;  %v799_v53 = vadd.f32 %v798_v52, %v5108_v0 }
 0x112   :  { %735 = vst.msk [vmem:[#allocation2 + $0x198] sm:$0xff] %vm287_vm1, %v696_v44  ;;  %846 = vst.msk [vmem:[#allocation2 + $0x1f8] sm:$0xff] %vm287_vm1, %v807_v51 }
 0x113   :  { %733 = vst.msk [vmem:[#allocation2 + $0x188] sm:$0xff] %vm287_vm1, %v688_v49  ;;  %844 = vst.msk [vmem:[#allocation2 + $0x1e8] sm:$0xff] %vm287_vm1, %v799_v53 }
 0x115   :  { %v4031_v54 = vpop.f32.mrb[28].mxu0  ;;  %v4047_v15 = vpop.f32.mrb[28].mxu1 }
 0x116   :  { %v709_v55 = vadd.f32 %v4031_v54, %v5106_v63  ;;  %v700_v13 = vpop.f32.mrb[29].mxu0  ;;  %v820_v18 = vadd.f32 %v4047_v15, %v5106_v63  ;;  %v811_v19 = vpop.f32.mrb[29].mxu1 }
 0x117   :  { %v701_v16 = vadd.f32 %v700_v13, %v5151_v30  ;;  %v4032_v17 = vpop.f32.mrb[30].mxu0  ;;  %v812_v22 = vadd.f32 %v811_v19, %v5151_v30  ;;  %v4048_v23 = vpop.f32.mrb[30].mxu1 }
 0x118   :  { %738 = vst.msk [vmem:[#allocation2 + $0x1b0] sm:$0xff] %vm287_vm1, %v709_v55  ;;  %v712_v20 = vadd.f32 %v4032_v17, %v5110_v1  ;;  %v703_v21 = vpop.f32.mrb[31].mxu0  ;;  %849 = vst.msk [vmem:[#allocation2 + $0x210] sm:$0xff] %vm287_vm1, %v820_v18  ;;  %v823_v25 = vadd.f32 %v4048_v23, %v5110_v1  ;;  %v814_v26 = vpop.f32.mrb[31].mxu1 }
 0x119   :  { %736 = vst.msk [vmem:[#allocation2 + $0x1a0] sm:$0xff] %vm287_vm1, %v701_v16  ;;  %v704_v24 = vadd.f32 %v703_v21, %v5154_v32  ;;  %847 = vst.msk [vmem:[#allocation2 + $0x200] sm:$0xff] %vm287_vm1, %v812_v22  ;;  %v815_v27 = vadd.f32 %v814_v26, %v5154_v32 }
 0x11a   :  { %739 = vst.msk [vmem:[#allocation2 + $0x1b8] sm:$0xff] %vm287_vm1, %v712_v20  ;;  %850 = vst.msk [vmem:[#allocation2 + $0x218] sm:$0xff] %vm287_vm1, %v823_v25 }
 0x11b   :  { %737 = vst.msk [vmem:[#allocation2 + $0x1a8] sm:$0xff] %vm287_vm1, %v704_v24  ;;  %848 = vst.msk [vmem:[#allocation2 + $0x208] sm:$0xff] %vm287_vm1, %v815_v27 }
 0x11d   :  { %v4035_v28 = vpop.f32.mrb[32].mxu0  ;;  %v4051_v33 = vpop.f32.mrb[32].mxu1 }
 0x11e   :  { %v725_v29 = vadd.f32 %v4035_v28, %v5170_v48  ;;  %v716_v31 = vpop.f32.mrb[33].mxu0  ;;  %v836_v36 = vadd.f32 %v4051_v33, %v5170_v48  ;;  %v827_v37 = vpop.f32.mrb[33].mxu1 }
 0x11f   :  { %v717_v34 = vadd.f32 %v716_v31, %v5124_v8  ;;  %v4036_v35 = vpop.f32.mrb[34].mxu0  ;;  %v828_v40 = vadd.f32 %v827_v37, %v5124_v8  ;;  %v4052_v41 = vpop.f32.mrb[34].mxu1 }
 0x120   :  { %742 = vst.msk [vmem:[#allocation2 + $0x1d0] sm:$0xff] %vm287_vm1, %v725_v29  ;;  %v728_v38 = vadd.f32 %v4036_v35, %v5174_v50  ;;  %v719_v39 = vpop.f32.mrb[35].mxu0  ;;  %853 = vst.msk [vmem:[#allocation2 + $0x230] sm:$0xff] %vm287_vm1, %v836_v36  ;;  %v839_v43 = vadd.f32 %v4052_v41, %v5174_v50  ;;  %v830_v44 = vpop.f32.mrb[35].mxu1 }
 0x121   :  { %740 = vst.msk [vmem:[#allocation2 + $0x1c0] sm:$0xff] %vm287_vm1, %v717_v34  ;;  %v720_v42 = vadd.f32 %v719_v39, %v5126_v9  ;;  %851 = vst.msk [vmem:[#allocation2 + $0x220] sm:$0xff] %vm287_vm1, %v828_v40  ;;  %v831_v45 = vadd.f32 %v830_v44, %v5126_v9 }
 0x122   :  { %743 = vst.msk [vmem:[#allocation2 + $0x1d8] sm:$0xff] %vm287_vm1, %v728_v38  ;;  %854 = vst.msk [vmem:[#allocation2 + $0x238] sm:$0xff] %vm287_vm1, %v839_v43 }
 0x123   :  { %741 = vst.msk [vmem:[#allocation2 + $0x1c8] sm:$0xff] %vm287_vm1, %v720_v42  ;;  %852 = vst.msk [vmem:[#allocation2 + $0x228] sm:$0xff] %vm287_vm1, %v831_v45 }
 0x125   :  { %v4059_v46 = vpop.f32.mrb[36].mxu0  ;;  %v4075_v51 = vpop.f32.mrb[36].mxu1 }
 0x126   :  { %v915_v47 = vadd.f32 %v4059_v46, %v5120_v6  ;;  %v906_v49 = vpop.f32.mrb[37].mxu0  ;;  %v1026_v54 = vadd.f32 %v4075_v51, %v5120_v6  ;;  %v1017_v55 = vpop.f32.mrb[37].mxu1 }
 0x127   :  { %v907_v52 = vadd.f32 %v906_v49, %v5104_v62  ;;  %v4060_v53 = vpop.f32.mrb[38].mxu0  ;;  %v1018_v16 = vadd.f32 %v1017_v55, %v5104_v62  ;;  %v4076_v17 = vpop.f32.mrb[38].mxu1 }
 0x128   :  { %956 = vst.msk [vmem:[#allocation2 + $0x250] sm:$0xff] %vm287_vm1, %v915_v47  ;;  %v918_v13 = vadd.f32 %v4060_v53, %v5122_v7  ;;  %v909_v15 = vpop.f32.mrb[39].mxu0  ;;  %1067 = vst.msk [vmem:[#allocation2 + $0x2b0] sm:$0xff] %vm287_vm1, %v1026_v54  ;;  %v1029_v19 = vadd.f32 %v4076_v17, %v5122_v7  ;;  %v1020_v20 = vpop.f32.mrb[39].mxu1 }
 0x129   :  { %954 = vst.msk [vmem:[#allocation2 + $0x240] sm:$0xff] %vm287_vm1, %v907_v52  ;;  %v910_v18 = vadd.f32 %v909_v15, %v5108_v0  ;;  %1065 = vst.msk [vmem:[#allocation2 + $0x2a0] sm:$0xff] %vm287_vm1, %v1018_v16  ;;  %v1021_v6 = vadd.f32 %v1020_v20, %v5108_v0  ;;  %v1267_v52 = vld [vmem:[#allocation2] sm:$0xff]  ;;  %v1268_v15 = vld [vmem:[#allocation2 + $0x8] sm:$0xff] }
 0x12a   :  { %957 = vst.msk [vmem:[#allocation2 + $0x258] sm:$0xff] %vm287_vm1, %v918_v13  ;;  %1068 = vst.msk [vmem:[#allocation2 + $0x2b8] sm:$0xff] %vm287_vm1, %v1029_v19  ;;  %v1269_v13 = vld [vmem:[#allocation2 + $0x10] sm:$0xff]  ;;  %v1270_v19 = vld [vmem:[#allocation2 + $0x18] sm:$0xff] }
 0x12b   :  { %955 = vst.msk [vmem:[#allocation2 + $0x248] sm:$0xff] %vm287_vm1, %v910_v18  ;;  %1066 = vst.msk [vmem:[#allocation2 + $0x2a8] sm:$0xff] %vm287_vm1, %v1021_v6 }
 0x12d   :  { %v4063_v62 = vpop.f32.mrb[40].mxu0  ;;  %v4079_v23 = vpop.f32.mrb[40].mxu1 }
 0x12e   :  { %v931_v21 = vadd.f32 %v4063_v62, %v5106_v63  ;;  %v922_v22 = vpop.f32.mrb[41].mxu0  ;;  %v1042_v25 = vadd.f32 %v4079_v23, %v5106_v63  ;;  %v1033_v26 = vpop.f32.mrb[41].mxu1 }
 0x12f   :  { %v923_v7 = vadd.f32 %v922_v22, %v5151_v30  ;;  %v4064_v24 = vpop.f32.mrb[42].mxu0  ;;  %v1034_v28 = vadd.f32 %v1033_v26, %v5151_v30  ;;  %v4080_v29 = vpop.f32.mrb[42].mxu1 }
 0x130   :  { %960 = vst.msk [vmem:[#allocation2 + $0x270] sm:$0xff] %vm287_vm1, %v931_v21  ;;  %v934_v0 = vadd.f32 %v4064_v24, %v5110_v1  ;;  %v925_v27 = vpop.f32.mrb[43].mxu0  ;;  %1071 = vst.msk [vmem:[#allocation2 + $0x2d0] sm:$0xff] %vm287_vm1, %v1042_v25  ;;  %v1045_v33 = vadd.f32 %v4080_v29, %v5110_v1  ;;  %v1036_v34 = vpop.f32.mrb[43].mxu1 }
 0x131   :  { %958 = vst.msk [vmem:[#allocation2 + $0x260] sm:$0xff] %vm287_vm1, %v923_v7  ;;  %v926_v31 = vadd.f32 %v925_v27, %v5154_v32  ;;  %1069 = vst.msk [vmem:[#allocation2 + $0x2c0] sm:$0xff] %vm287_vm1, %v1034_v28  ;;  %v1037_v63 = vadd.f32 %v1036_v34, %v5154_v32 }
 0x132   :  { %961 = vst.msk [vmem:[#allocation2 + $0x278] sm:$0xff] %vm287_vm1, %v934_v0  ;;  %1072 = vst.msk [vmem:[#allocation2 + $0x2d8] sm:$0xff] %vm287_vm1, %v1045_v33 }
 0x133   :  { %959 = vst.msk [vmem:[#allocation2 + $0x268] sm:$0xff] %vm287_vm1, %v926_v31  ;;  %1070 = vst.msk [vmem:[#allocation2 + $0x2c8] sm:$0xff] %vm287_vm1, %v1037_v63 }
 0x135   :  { %v4067_v30 = vpop.f32.mrb[44].mxu0  ;;  %v4083_v36 = vpop.f32.mrb[44].mxu1 }
 0x136   :  { %v947_v35 = vadd.f32 %v4067_v30, %v5170_v48  ;;  %v938_v37 = vpop.f32.mrb[45].mxu0  ;;  %v1058_v1 = vadd.f32 %v4083_v36, %v5170_v48  ;;  %v1049_v39 = vpop.f32.mrb[45].mxu1 }
 0x137   :  { %v939_v38 = vadd.f32 %v938_v37, %v5124_v8  ;;  %v4068_v40 = vpop.f32.mrb[46].mxu0  ;;  %v1050_v32 = vadd.f32 %v1049_v39, %v5124_v8  ;;  %v4084_v42 = vpop.f32.mrb[46].mxu1  ;;  %v1315_v7 = vld [vmem:[#allocation2 + $0x2d0] sm:$0xff] }
 0x138   :  { %964 = vst.msk [vmem:[#allocation2 + $0x290] sm:$0xff] %vm287_vm1, %v947_v35  ;;  %v950_v41 = vadd.f32 %v4068_v40, %v5174_v50  ;;  %v941_v43 = vpop.f32.mrb[47].mxu0  ;;  %1075 = vst.msk [vmem:[#allocation2 + $0x2f0] sm:$0xff] %vm287_vm1, %v1058_v1  ;;  %v1061_v44 = vadd.f32 %v4084_v42, %v5174_v50  ;;  %v1052_v45 = vpop.f32.mrb[47].mxu1 }
 0x139   :  { %962 = vst.msk [vmem:[#allocation2 + $0x280] sm:$0xff] %vm287_vm1, %v939_v38  ;;  %v942_v48 = vadd.f32 %v941_v43, %v5126_v9  ;;  %1073 = vst.msk [vmem:[#allocation2 + $0x2e0] sm:$0xff] %vm287_vm1, %v1050_v32  ;;  %v1053_v46 = vadd.f32 %v1052_v45, %v5126_v9  ;;  %v1316_v28 = vld [vmem:[#allocation2 + $0x2d8] sm:$0xff] }
 0x13a   :  { %965 = vst.msk [vmem:[#allocation2 + $0x298] sm:$0xff] %vm287_vm1, %v950_v41  ;;  %1076 = vst.msk [vmem:[#allocation2 + $0x2f8] sm:$0xff] %vm287_vm1, %v1061_v44 }
 0x13b   :  { %963 = vst.msk [vmem:[#allocation2 + $0x288] sm:$0xff] %vm287_vm1, %v942_v48  ;;  %1074 = vst.msk [vmem:[#allocation2 + $0x2e8] sm:$0xff] %vm287_vm1, %v1053_v46 }
 0x13d   :  { %v4089_v8 = vpop.f32.mrb[48].mxu0 }
 0x13e   :  { %v1220_v47 = vpop.f32.mrb[49].mxu0  ;;  %v1229_v49 = vadd.f32 %v4089_v8, %v5128_v10 }
 0x13f   :  { %v1221_v50 = vadd.f32 %v1220_v47, %v5112_v2  ;;  %v4090_v51 = vpop.f32.mrb[50].mxu0 }
 0x140   :  { %v1223_v53 = vpop.f32.mrb[51].mxu0  ;;  %v1232_v55 = vadd.f32 %v4090_v51, %v5130_v11  ;;  %v1287_v16 = vadd.f32 %v1269_v13, %v1229_v49  ;;  %v1317_v1 = vld [vmem:[#allocation2 + $0x2e0] sm:$0xff] }
 0x141   :  { %v1273_v54 = vadd.f32 %v1267_v52, %v1221_v50  ;;  %v1224_v9 = vadd.f32 %v1223_v53, %v5114_v3  ;;  %v5344_v52 = vpop.permute.xlu0 %1100 }
 0x142   :  { %v1288_v20 = vadd.f32 %v1270_v19, %v1232_v55  ;;  %v3676_v23 = vmul.f32 -1.442695, %v1287_v16  ;;  %v1318_v42 = vld [vmem:[#allocation2 + $0x2e8] sm:$0xff] }
 0x143   :  { %v3674_v17 = vmul.f32 -1.442695, %v1273_v54  ;;  %v1274_v18 = vadd.f32 %v1268_v15, %v1224_v9  ;;  %v5347_v9 = vpop.permute.xlu1 %1105 }
 0x144   :  { %v3677_v27 = vmul.f32 -1.442695, %v1288_v20 }
 0x145   :  { %4309 = vpow2.f32 %v3674_v17  ;;  %v3675_v6 = vmul.f32 -1.442695, %v1274_v18  ;;  %v4093_v62 = vpop.f32.mrb[52].mxu0  ;;  %v1271_v17 = vld [vmem:[#allocation2 + $0x20] sm:$0xff] }
 0x146   :  { %v1245_v21 = vadd.f32 %v4093_v62, %v5116_v4  ;;  %v1236_v22 = vpop.f32.mrb[53].mxu0 }
 0x147   :  { %4311 = vpow2.f32 %v3675_v6  ;;  %v4094_v24 = vpop.f32.mrb[54].mxu0  ;;  %v1237_v54 = vadd.f32 %v1236_v22, %v5344_v52  ;;  %v1272_v6 = vld [vmem:[#allocation2 + $0x28] sm:$0xff] }
 0x148   :  { %v1321_v25 = vadd.f32 %v1315_v7, %v1245_v21  ;;  %v1248_v26 = vadd.f32 %v4094_v24, %v5118_v5  ;;  %v1239_v0 = vpop.f32.mrb[55].mxu0  ;;  %4313 = vpow2.f32 %v3676_v23  ;;  %v5350_v23 = vpop.permute.xlu0 %1130 }
 0x149   :  { %v1240_v15 = vadd.f32 %v1239_v0, %v5347_v9 }
 0x14a   :  { %v3678_v29 = vmul.f32 -1.442695, %v1321_v25  ;;  %v1322_v31 = vadd.f32 %v1316_v28, %v1248_v26  ;;  %v5353_v26 = vpop.permute.xlu1 %1135 }
 0x14c   :  { %4315 = vpow2.f32 %v3678_v29  ;;  %v3679_v33 = vmul.f32 -1.442695, %v1322_v31  ;;  %v1319_v29 = vld [vmem:[#allocation2 + $0x2f0] sm:$0xff] }
 0x14d   :  { %4317 = vpow2.f32 %v3677_v27  ;;  %v4097_v34 = vpop.f32.mrb[56].mxu0 }
 0x14e   :  { %4319 = vpow2.f32 %v3679_v33  ;;  %v1252_v63 = vpop.f32.mrb[57].mxu0  ;;  %v1261_v7 = vadd.f32 %v4097_v34, %v5350_v23 }
 0x14f   :  { %v4310_v30 = vpop.eup %4309  ;;  %v1253_v35 = vadd.f32 %v1252_v63, %v5132_v12  ;;  %v4098_v36 = vpop.f32.mrb[58].mxu0 }
 0x150   :  { %v1281_v37 = vadd.f32 1.0, %v4310_v30  ;;  %v1255_v38 = vpop.f32.mrb[59].mxu0  ;;  %v1264_v27 = vadd.f32 %v4098_v36, %v5353_v26  ;;  %v1320_v30 = vld [vmem:[#allocation2 + $0x2f8] sm:$0xff] }
 0x151   :  { %v4312_v39 = vpop.eup %4311  ;;  %v1335_v40 = vadd.f32 %v1317_v1, %v1253_v35  ;;  %v1256_v32 = vadd.f32 %v1255_v38, %v5134_v14 }
 0x152   :  { %4321 = vrcp.f32 %v1281_v37  ;;  %v1282_v41 = vadd.f32 1.0, %v4312_v39  ;;  %v4314_v48 = vpop.eup %4313 }
 0x153   :  { %v3680_v43 = vmul.f32 -1.442695, %v1335_v40  ;;  %v1336_v44 = vadd.f32 %v1318_v42, %v1256_v32  ;;  %v1295_v50 = vadd.f32 1.0, %v4314_v48 }
 0x154   :  { %4323 = vrcp.f32 %v1282_v41 }
 0x155   :  { %4325 = vpow2.f32 %v3680_v43  ;;  %v3681_v45 = vmul.f32 -1.442695, %v1336_v44 }
 0x156   :  { %v4316_v46 = vpop.eup %4315 }
 0x157   :  { %v4318_v8 = vpop.eup %4317  ;;  %v1329_v47 = vadd.f32 1.0, %v4316_v46  ;;  %4327 = vpow2.f32 %v3681_v45 }
 0x158   :  { %v4320_v49 = vpop.eup %4319  ;;  %v1296_v53 = vadd.f32 1.0, %v4318_v8 }
 0x159   :  { %4329 = vrcp.f32 %v1329_v47  ;;  %v1330_v51 = vadd.f32 1.0, %v4320_v49 }
 0x15b   :  { %4331 = vrcp.f32 %v1330_v51 }
 0x15c   :  { %v4322_v55 = vpop.eup %4321  ;;  %4333 = vrcp.f32 %v1295_v50 }
 0x15d   :  { %v1301_v13 = vmul.f32 %v4322_v55, %v1237_v54  ;;  %4335 = vrcp.f32 %v1296_v53 }
 0x15e   :  { %v4324_v16 = vpop.eup %4323 }
 0x15f   :  { %v4326_v18 = vpop.eup %4325  ;;  %v1303_v19 = vadd.f32 %v1301_v13, %v1271_v17  ;;  %v1302_v20 = vmul.f32 %v4324_v16, %v1240_v15 }
 0x160   :  { %v1343_v62 = vadd.f32 1.0, %v4326_v18 }
 0x161   :  { %v4328_v21 = vpop.eup %4327  ;;  %4337 = vtanh.f32 %v1303_v19  ;;  %v1304_v22 = vadd.f32 %v1302_v20, %v1272_v6 }
 0x162   :  { %v1344_v24 = vadd.f32 1.0, %v4328_v21  ;;  %v1452_v21 = vld [vmem:[#allocation2 + $0x68] sm:$0xff] }
 0x163   :  { %v4330_v25 = vpop.eup %4329  ;;  %4339 = vtanh.f32 %v1304_v22 }
 0x164   :  { %v1349_v0 = vmul.f32 %v4330_v25, %v1261_v7  ;;  %4341 = vrcp.f32 %v1343_v62  ;;  %v1453_v62 = vld [vmem:[#allocation2 + $0x70] sm:$0xff] }
 0x165   :  { %v4332_v28 = vpop.eup %4331  ;;  %4343 = vrcp.f32 %v1344_v24 }
 0x166   :  { %v1351_v31 = vadd.f32 %v1349_v0, %v1319_v29  ;;  %v1350_v33 = vmul.f32 %v4332_v28, %v1264_v27  ;;  %v4334_v63 = vpop.eup %4333 }
 0x167   :  { %v4336_v37 = vpop.eup %4335  ;;  %v1307_v34 = vsub.f32 1.0, %v4334_v63  ;;  %v1311_v40 = vmul.f32 0.0, %v4334_v63 }
 0x168   :  { %4345 = vtanh.f32 %v1351_v31  ;;  %v1352_v35 = vadd.f32 %v1350_v33, %v1320_v30  ;;  %v1308_v38 = vsub.f32 1.0, %v4336_v37  ;;  %v1312_v36 = vmul.f32 0.0, %v4336_v37  ;;  %v1499_v31 = vld [vmem:[#allocation2 + $0x270] sm:$0xff] }
 0x16a   :  { %4347 = vtanh.f32 %v1352_v35 }
 0x16b   :  { %v4338_v1 = vpop.eup %4337 }
 0x16c   :  { %v1309_v39 = vmul.f32 %v4338_v1, %v1307_v34  ;;  %v1500_v34 = vld [vmem:[#allocation2 + $0x278] sm:$0xff] }
 0x16d   :  { %v4340_v32 = vpop.eup %4339 }
 0x16e   :  { %v4342_v41 = vpop.eup %4341  ;;  %v1310_v42 = vmul.f32 %v4340_v32, %v1308_v38  ;;  %v5356_v43 = vadd.f32 %v1311_v40, %v1309_v39 }
 0x16f   :  { %v4344_v44 = vpop.eup %4343  ;;  %v1355_v45 = vsub.f32 1.0, %v4342_v41  ;;  %v1359_v50 = vmul.f32 0.0, %v4342_v41 }
 0x170   :  { %v5358_v48 = vadd.f32 %v1312_v36, %v1310_v42  ;;  %1363 = vst.msk [vmem:[#allocation3] sm:$0xff] %vm287_vm1, %v5356_v43  ;;  %v1356_v47 = vsub.f32 1.0, %v4344_v44  ;;  %v1360_v54 = vmul.f32 0.0, %v4344_v44 }
 0x172   :  { %v4346_v46 = vpop.eup %4345  ;;  %1364 = vst.msk [vmem:[#allocation3 + $0x8] sm:$0xff] %vm287_vm1, %v5358_v48  ;;  %v1368_v8 = vpack.c.bf16 %v5358_v48, %v5356_v43 }
 0x173   :  { %v1357_v49 = vmul.f32 %v4346_v46, %v1355_v45  ;;  %v1501_v45 = vld [vmem:[#allocation2 + $0x280] sm:$0xff] }
 0x174   :  { %v4348_v51 = vpop.eup %4347  ;;  %4099 = vmatprep.subr.bf16.mxu1 %v1368_v8 }
 0x175   :  { %4100 = vmatpush3.bf16.msra.mxu1 %v1368_v8  ;;  %v1358_v53 = vmul.f32 %v4348_v51, %v1356_v47  ;;  %v5366_v55 = vadd.f32 %v1359_v50, %v1357_v49  ;;  %v1502_v51 = vld [vmem:[#allocation2 + $0x288] sm:$0xff] }
 0x177   :  { %v5368_v13 = vadd.f32 %v1360_v54, %v1358_v53  ;;  %1366 = vst.msk [vmem:[#allocation3 + $0xf0] sm:$0xff] %vm287_vm1, %v5366_v55 }
 0x179   :  { %1367 = vst.msk [vmem:[#allocation3 + $0xf8] sm:$0xff] %vm287_vm1, %v5368_v13  ;;  %v1369_v15 = vpack.c.bf16 %v5368_v13, %v5366_v55 }
 0x17b   :  { %4101 = vmatprep.subr.bf16.mxu1 %v1369_v15 }
 0x17c   :  { %4102 = vmatpush3.bf16.msra.mxu1 %v1369_v15 }
 0x17f   :  { %4104 = vmatmul.mubr.msk.bf16.vlgmr.msra.gmra.mrb[48].mxu1 %vm187_vm0, %v5070_v57 }
 0x180   :  { %4107 = vmatprep.mubr.msk.bf16.mxu1 %vm187_vm0, %v5075_v58  ;;  %v1451_v58 = vld [vmem:[#allocation2 + $0x60] sm:$0xff] }
 0x187   :  { %4108 = vmatmul.mubr.msk.bf16.gmra.mrb[52].mxu1 %vm187_vm0, %v5084_v59 }
 0x188   :  { %4111 = vmatprep.mubr.msk.bf16.mxu1 %vm187_vm0, %v5089_v60 }
 0x18f   :  { %4112 = vmatmul.mubr.msk.bf16.gmra.mrb[56].mxu1 %vm187_vm0, %v5098_v61 }
 0x190   :  { %4135 = vmatprep.mubr.msk.bf16.mxu1 %vm187_vm0, %v5057_v56  ;;  %v1454_v56 = vld [vmem:[#allocation2 + $0x78] sm:$0xff] }
 0x252   :  { %v4105_v16 = vpop.f32.mrb[48].mxu1 }
 0x253   :  { %v1404_v17 = vpop.f32.mrb[49].mxu1  ;;  %v1413_v18 = vadd.f32 %v4105_v16, %v5128_v10 }
 0x254   :  { %v1405_v57 = vadd.f32 %v1404_v17, %v5112_v2  ;;  %v4106_v19 = vpop.f32.mrb[50].mxu1 }
 0x255   :  { %v1407_v20 = vpop.f32.mrb[51].mxu1  ;;  %v1416_v59 = vadd.f32 %v4106_v19, %v5130_v11  ;;  %v1471_v61 = vadd.f32 %v1453_v62, %v1413_v18 }
 0x256   :  { %v1457_v6 = vadd.f32 %v1451_v58, %v1405_v57  ;;  %v1408_v60 = vadd.f32 %v1407_v20, %v5114_v3 }
 0x257   :  { %v1472_v24 = vadd.f32 %v1454_v56, %v1416_v59  ;;  %v3690_v29 = vmul.f32 -1.442695, %v1471_v61 }
 0x258   :  { %v3688_v22 = vmul.f32 -1.442695, %v1457_v6  ;;  %v1458_v7 = vadd.f32 %v1452_v21, %v1408_v60 }
 0x259   :  { %v3691_v37 = vmul.f32 -1.442695, %v1472_v24 }
 0x25a   :  { %4349 = vpow2.f32 %v3688_v22  ;;  %v3689_v25 = vmul.f32 -1.442695, %v1458_v7  ;;  %v4109_v0 = vpop.f32.mrb[52].mxu1  ;;  %v1455_v22 = vld [vmem:[#allocation2 + $0x80] sm:$0xff] }
 0x25b   :  { %v1429_v27 = vadd.f32 %v4109_v0, %v5116_v4  ;;  %v1420_v28 = vpop.f32.mrb[53].mxu1 }
 0x25c   :  { %4351 = vpow2.f32 %v3689_v25  ;;  %v4110_v33 = vpop.f32.mrb[54].mxu1  ;;  %v1421_v59 = vadd.f32 %v1420_v28, %v5344_v52  ;;  %v1456_v25 = vld [vmem:[#allocation2 + $0x88] sm:$0xff] }
 0x25d   :  { %v1505_v63 = vadd.f32 %v1499_v31, %v1429_v27  ;;  %v1432_v30 = vadd.f32 %v4110_v33, %v5118_v5  ;;  %v1423_v35 = vpop.f32.mrb[55].mxu1  ;;  %4353 = vpow2.f32 %v3690_v29 }
 0x25e   :  { %v1424_v21 = vadd.f32 %v1423_v35, %v5347_v9 }
 0x25f   :  { %v3692_v1 = vmul.f32 -1.442695, %v1505_v63  ;;  %v1506_v38 = vadd.f32 %v1500_v34, %v1432_v30 }
 0x261   :  { %4355 = vpow2.f32 %v3692_v1  ;;  %v3693_v39 = vmul.f32 -1.442695, %v1506_v38 }
 0x262   :  { %4357 = vpow2.f32 %v3691_v37  ;;  %v4113_v40 = vpop.f32.mrb[56].mxu1  ;;  %v1503_v37 = vld [vmem:[#allocation2 + $0x290] sm:$0xff] }
 0x263   :  { %4359 = vpow2.f32 %v3693_v39  ;;  %v1436_v32 = vpop.f32.mrb[57].mxu1  ;;  %v1445_v31 = vadd.f32 %v4113_v40, %v5350_v23  ;;  %v1504_v39 = vld [vmem:[#allocation2 + $0x298] sm:$0xff] }
 0x264   :  { %v4350_v41 = vpop.eup %4349  ;;  %v1437_v42 = vadd.f32 %v1436_v32, %v5132_v12  ;;  %v4114_v36 = vpop.f32.mrb[58].mxu1 }
 0x265   :  { %v1465_v44 = vadd.f32 1.0, %v4350_v41  ;;  %v1439_v46 = vpop.f32.mrb[59].mxu1  ;;  %v1448_v30 = vadd.f32 %v4114_v36, %v5353_v26 }
 0x266   :  { %v4352_v8 = vpop.eup %4351  ;;  %v1519_v47 = vadd.f32 %v1501_v45, %v1437_v42  ;;  %v1440_v49 = vadd.f32 %v1439_v46, %v5134_v14 }
 0x267   :  { %4361 = vrcp.f32 %v1465_v44  ;;  %v1466_v50 = vadd.f32 1.0, %v4352_v8  ;;  %v4354_v15 = vpop.eup %4353 }
 0x268   :  { %v3694_v53 = vmul.f32 -1.442695, %v1519_v47  ;;  %v1520_v54 = vadd.f32 %v1502_v51, %v1440_v49  ;;  %v1479_v58 = vadd.f32 1.0, %v4354_v15 }
 0x269   :  { %4363 = vrcp.f32 %v1466_v50 }
 0x26a   :  { %4365 = vpow2.f32 %v3694_v53  ;;  %v3695_v16 = vmul.f32 -1.442695, %v1520_v54 }
 0x26b   :  { %v4356_v17 = vpop.eup %4355 }
 0x26c   :  { %v4358_v18 = vpop.eup %4357  ;;  %v1513_v57 = vadd.f32 1.0, %v4356_v17  ;;  %4367 = vpow2.f32 %v3695_v16 }
 0x26d   :  { %v4360_v19 = vpop.eup %4359  ;;  %v1480_v6 = vadd.f32 1.0, %v4358_v18 }
 0x26e   :  { %4369 = vrcp.f32 %v1513_v57  ;;  %v1514_v20 = vadd.f32 1.0, %v4360_v19 }
 0x270   :  { %4371 = vrcp.f32 %v1514_v20 }
 0x271   :  { %v4362_v60 = vpop.eup %4361  ;;  %4373 = vrcp.f32 %v1479_v58 }
 0x272   :  { %v1485_v62 = vmul.f32 %v4362_v60, %v1421_v59  ;;  %4375 = vrcp.f32 %v1480_v6  ;;  %v5441_v59 = vld [vmem:[%s6045_s4 + $0x18] sm:$0xff]   ;;  %v5448_v60 = vld [vmem:[%s6045_s4 + $0x20] sm:$0xff]  }
 0x273   :  { %v4364_v61 = vpop.eup %4363 }
 0x274   :  { %v4366_v7 = vpop.eup %4365  ;;  %v1487_v56 = vadd.f32 %v1485_v62, %v1455_v22  ;;  %v1486_v24 = vmul.f32 %v4364_v61, %v1424_v21  ;;  %v5455_v62 = vld [vmem:[%s6045_s4 + $0x28] sm:$0xff]   ;;  %v5462_v21 = vld [vmem:[%s6045_s4] sm:$0xff]  }
 0x275   :  { %v1527_v0 = vadd.f32 1.0, %v4366_v7 }
 0x276   :  { %v4368_v27 = vpop.eup %4367  ;;  %4377 = vtanh.f32 %v1487_v56  ;;  %v1488_v29 = vadd.f32 %v1486_v24, %v1456_v25  ;;  %v1636_v25 = vld [vmem:[#allocation2 + $0xc0] sm:$0xff] }
 0x277   :  { %v1528_v28 = vadd.f32 1.0, %v4368_v27 }
 0x278   :  { %v4370_v33 = vpop.eup %4369  ;;  %4379 = vtanh.f32 %v1488_v29 }
 0x279   :  { %v1533_v63 = vmul.f32 %v4370_v33, %v1445_v31  ;;  %4381 = vrcp.f32 %v1527_v0  ;;  %v1637_v33 = vld [vmem:[#allocation2 + $0xc8] sm:$0xff] }
 0x27a   :  { %v4372_v35 = vpop.eup %4371  ;;  %4383 = vrcp.f32 %v1528_v28  ;;  %v1638_v28 = vld [vmem:[#allocation2 + $0xd0] sm:$0xff] }
 0x27b   :  { %v1535_v34 = vadd.f32 %v1533_v63, %v1503_v37  ;;  %v1534_v1 = vmul.f32 %v4372_v35, %v1448_v30  ;;  %v4374_v38 = vpop.eup %4373  ;;  %v1639_v37 = vld [vmem:[#allocation2 + $0xd8] sm:$0xff] }
 0x27c   :  { %v4376_v41 = vpop.eup %4375  ;;  %v1491_v42 = vsub.f32 1.0, %v4374_v38  ;;  %v1495_v46 = vmul.f32 %v4374_v38, %v5356_v43 }
 0x27d   :  { %4385 = vtanh.f32 %v1535_v34  ;;  %v1536_v32 = vadd.f32 %v1534_v1, %v1504_v39  ;;  %v1492_v44 = vsub.f32 1.0, %v4376_v41  ;;  %v1496_v49 = vmul.f32 %v4376_v41, %v5358_v48 }
 0x27f   :  { %4387 = vtanh.f32 %v1536_v32 }
 0x280   :  { %v4378_v40 = vpop.eup %4377 }
 0x281   :  { %v1493_v45 = vmul.f32 %v4378_v40, %v1491_v42  ;;  %v1684_v42 = vld [vmem:[#allocation2 + $0x210] sm:$0xff] }
 0x282   :  { %v4380_v8 = vpop.eup %4379 }
 0x283   :  { %v4382_v47 = vpop.eup %4381  ;;  %v1494_v36 = vmul.f32 %v4380_v8, %v1492_v44  ;;  %v5402_v50 = vadd.f32 %v1495_v46, %v1493_v45 }
 0x284   :  { %v4384_v51 = vpop.eup %4383  ;;  %v1539_v54 = vsub.f32 1.0, %v4382_v47  ;;  %v1543_v48 = vmul.f32 %v4382_v47, %v5366_v55  ;;  %v5427_v55 = vld [vmem:[%s6045_s4 + $0x8] sm:$0xff]   ;;  %v1685_v47 = vld [vmem:[#allocation2 + $0x218] sm:$0xff] }
 0x285   :  { %v5404_v53 = vadd.f32 %v1496_v49, %v1494_v36  ;;  %1548 = vst.msk [vmem:[#allocation3 + $0x20] sm:$0xff] %vm287_vm1, %v5402_v50  ;;  %v1540_v16 = vsub.f32 1.0, %v4384_v51  ;;  %v1544_v19 = vmul.f32 %v4384_v51, %v5368_v13  ;;  %v5434_v13 = vld [vmem:[%s6045_s4 + $0x10] sm:$0xff]  }
 0x287   :  { %v4386_v15 = vpop.eup %4385  ;;  %1549 = vst.msk [vmem:[#allocation3 + $0x28] sm:$0xff] %vm287_vm1, %v5404_v53  ;;  %v1553_v43 = vpack.c.bf16 %v5404_v53, %v5402_v50 }
 0x288   :  { %v1541_v17 = vmul.f32 %v4386_v15, %v1539_v54 }
 0x289   :  { %v4388_v18 = vpop.eup %4387  ;;  %4115 = vmatprep.subr.bf16.mxu0 %v1553_v43 }
 0x28a   :  { %4116 = vmatpush3.bf16.msra.mxu0 %v1553_v43  ;;  %v1542_v57 = vmul.f32 %v4388_v18, %v1540_v16  ;;  %v5414_v58 = vadd.f32 %v1543_v48, %v1541_v17  ;;  %v1686_v18 = vld [vmem:[#allocation2 + $0x220] sm:$0xff] }
 0x28c   :  { %v5416_v20 = vadd.f32 %v1544_v19, %v1542_v57  ;;  %1551 = vst.msk [vmem:[#allocation3 + $0xd0] sm:$0xff] %vm287_vm1, %v5414_v58 }
 0x28e   :  { %1552 = vst.msk [vmem:[#allocation3 + $0xd8] sm:$0xff] %vm287_vm1, %v5416_v20  ;;  %v1554_v6 = vpack.c.bf16 %v5416_v20, %v5414_v58 }
 0x290   :  { %4117 = vmatprep.subr.bf16.mxu0 %v1554_v6 }
 0x291   :  { %4118 = vmatpush3.bf16.msra.mxu0 %v1554_v6 }
 0x294   :  { %4120 = vmatmul.mubr.msk.bf16.vlgmr.msra.gmra.mrb[60].mxu0 %vm187_vm0, %v5427_v55 }
 0x295   :  { %4123 = vmatprep.mubr.msk.bf16.mxu0 %vm187_vm0, %v5434_v13 }
 0x29c   :  { %4124 = vmatmul.mubr.msk.bf16.gmra.mrb[64].mxu0 %vm187_vm0, %v5441_v59 }
 0x29d   :  { %4127 = vmatprep.mubr.msk.bf16.mxu0 %vm187_vm0, %v5448_v60 }
 0x2a4   :  { %4128 = vmatmul.mubr.msk.bf16.gmra.mrb[68].mxu0 %vm187_vm0, %v5455_v62 }
 0x2a5   :  { %4151 = vmatprep.mubr.msk.bf16.mxu0 %vm187_vm0, %v5462_v21 }
 0x367   :  { %v4121_v61 = vpop.f32.mrb[60].mxu0 }
 0x368   :  { %v1589_v22 = vpop.f32.mrb[61].mxu0  ;;  %v1598_v7 = vadd.f32 %v4121_v61, %v5128_v10 }
 0x369   :  { %v1590_v56 = vadd.f32 %v1589_v22, %v5112_v2  ;;  %v4122_v24 = vpop.f32.mrb[62].mxu0 }
 0x36a   :  { %v1592_v0 = vpop.f32.mrb[63].mxu0  ;;  %v1601_v29 = vadd.f32 %v4122_v24, %v5130_v11  ;;  %v1656_v63 = vadd.f32 %v1638_v28, %v1598_v7  ;;  %v1687_v7 = vld [vmem:[#allocation2 + $0x228] sm:$0xff] }
 0x36b   :  { %v1642_v27 = vadd.f32 %v1636_v25, %v1590_v56  ;;  %v1593_v31 = vadd.f32 %v1592_v0, %v5114_v3 }
 0x36c   :  { %v1657_v34 = vadd.f32 %v1639_v37, %v1601_v29  ;;  %v3704_v41 = vmul.f32 -1.442695, %v1656_v63 }
 0x36d   :  { %v3702_v30 = vmul.f32 -1.442695, %v1642_v27  ;;  %v1643_v35 = vadd.f32 %v1637_v33, %v1593_v31 }
 0x36e   :  { %v3705_v8 = vmul.f32 -1.442695, %v1657_v34 }
 0x36f   :  { %4389 = vpow2.f32 %v3702_v30  ;;  %v3703_v1 = vmul.f32 -1.442695, %v1643_v35  ;;  %v4125_v38 = vpop.f32.mrb[64].mxu0 }
 0x370   :  { %v1614_v39 = vadd.f32 %v4125_v38, %v5116_v4  ;;  %v1605_v32 = vpop.f32.mrb[65].mxu0 }
 0x371   :  { %4391 = vpow2.f32 %v3703_v1  ;;  %v4126_v40 = vpop.f32.mrb[66].mxu0  ;;  %v1606_v35 = vadd.f32 %v1605_v32, %v5344_v52 }
 0x372   :  { %v1690_v44 = vadd.f32 %v1684_v42, %v1614_v39  ;;  %v1617_v45 = vadd.f32 %v4126_v40, %v5118_v5  ;;  %v1608_v46 = vpop.f32.mrb[67].mxu0  ;;  %4393 = vpow2.f32 %v3704_v41  ;;  %v1640_v39 = vld [vmem:[#allocation2 + $0xe0] sm:$0xff] }
 0x373   :  { %v1609_v1 = vadd.f32 %v1608_v46, %v5347_v9 }
 0x374   :  { %v3706_v36 = vmul.f32 -1.442695, %v1690_v44  ;;  %v1691_v49 = vadd.f32 %v1685_v47, %v1617_v45  ;;  %v1641_v44 = vld [vmem:[#allocation2 + $0xe8] sm:$0xff] }
 0x376   :  { %4395 = vpow2.f32 %v3706_v36  ;;  %v3707_v51 = vmul.f32 -1.442695, %v1691_v49 }
 0x377   :  { %4397 = vpow2.f32 %v3705_v8  ;;  %v4129_v54 = vpop.f32.mrb[68].mxu0 }
 0x378   :  { %4399 = vpow2.f32 %v3707_v51  ;;  %v1621_v15 = vpop.f32.mrb[69].mxu0  ;;  %v1630_v36 = vadd.f32 %v4129_v54, %v5350_v23 }
 0x379   :  { %v4390_v43 = vpop.eup %4389  ;;  %v1622_v16 = vadd.f32 %v1621_v15, %v5132_v12  ;;  %v4130_v17 = vpop.f32.mrb[70].mxu0 }
 0x37a   :  { %v1650_v48 = vadd.f32 1.0, %v4390_v43  ;;  %v1624_v57 = vpop.f32.mrb[71].mxu0  ;;  %v1633_v46 = vadd.f32 %v4130_v17, %v5353_v26  ;;  %v1688_v43 = vld [vmem:[#allocation2 + $0x230] sm:$0xff] }
 0x37b   :  { %v4392_v19 = vpop.eup %4391  ;;  %v1704_v6 = vadd.f32 %v1686_v18, %v1622_v16  ;;  %v1625_v61 = vadd.f32 %v1624_v57, %v5134_v14  ;;  %v1689_v57 = vld [vmem:[#allocation2 + $0x238] sm:$0xff] }
 0x37c   :  { %4401 = vrcp.f32 %v1650_v48  ;;  %v1651_v22 = vadd.f32 1.0, %v4392_v19  ;;  %v4394_v25 = vpop.eup %4393 }
 0x37d   :  { %v3708_v56 = vmul.f32 -1.442695, %v1704_v6  ;;  %v1705_v24 = vadd.f32 %v1687_v7, %v1625_v61  ;;  %v1664_v33 = vadd.f32 1.0, %v4394_v25 }
 0x37e   :  { %4403 = vrcp.f32 %v1651_v22 }
 0x37f   :  { %4405 = vpow2.f32 %v3708_v56  ;;  %v3709_v0 = vmul.f32 -1.442695, %v1705_v24 }
 0x380   :  { %v4396_v27 = vpop.eup %4395 }
 0x381   :  { %v4398_v29 = vpop.eup %4397  ;;  %v1698_v31 = vadd.f32 1.0, %v4396_v27  ;;  %4407 = vpow2.f32 %v3709_v0 }
 0x382   :  { %v4400_v28 = vpop.eup %4399  ;;  %v1665_v30 = vadd.f32 1.0, %v4398_v29 }
 0x383   :  { %4409 = vrcp.f32 %v1698_v31  ;;  %v1699_v63 = vadd.f32 1.0, %v4400_v28 }
 0x385   :  { %4411 = vrcp.f32 %v1699_v63 }
 0x386   :  { %v4402_v37 = vpop.eup %4401  ;;  %4413 = vrcp.f32 %v1664_v33 }
 0x387   :  { %v1670_v34 = vmul.f32 %v4402_v37, %v1606_v35  ;;  %4415 = vrcp.f32 %v1665_v30 }
 0x388   :  { %v4404_v38 = vpop.eup %4403 }
 0x389   :  { %v4406_v41 = vpop.eup %4405  ;;  %v1672_v42 = vadd.f32 %v1670_v34, %v1640_v39  ;;  %v1671_v40 = vmul.f32 %v4404_v38, %v1609_v1 }
 0x38a   :  { %v1712_v45 = vadd.f32 1.0, %v4406_v41 }
 0x38b   :  { %v4408_v8 = vpop.eup %4407  ;;  %4417 = vtanh.f32 %v1672_v42  ;;  %v1673_v47 = vadd.f32 %v1671_v40, %v1641_v44  ;;  %v1821_v44 = vld [vmem:[#allocation2 + $0x120] sm:$0xff] }
 0x38c   :  { %v1713_v32 = vadd.f32 1.0, %v4408_v8 }
 0x38d   :  { %v4410_v49 = vpop.eup %4409  ;;  %4419 = vtanh.f32 %v1673_v47 }
 0x38e   :  { %v1718_v51 = vmul.f32 %v4410_v49, %v1630_v36  ;;  %4421 = vrcp.f32 %v1712_v45  ;;  %v1822_v49 = vld [vmem:[#allocation2 + $0x128] sm:$0xff] }
 0x38f   :  { %v4412_v15 = vpop.eup %4411  ;;  %4423 = vrcp.f32 %v1713_v32  ;;  %v1823_v32 = vld [vmem:[#allocation2 + $0x130] sm:$0xff] }
 0x390   :  { %v1720_v16 = vadd.f32 %v1718_v51, %v1688_v43  ;;  %v1719_v48 = vmul.f32 %v4412_v15, %v1633_v46  ;;  %v4414_v18 = vpop.eup %4413  ;;  %v1824_v43 = vld [vmem:[#allocation2 + $0x138] sm:$0xff] }
 0x391   :  { %v4416_v6 = vpop.eup %4415  ;;  %v1676_v61 = vsub.f32 1.0, %v4414_v18  ;;  %v1680_v56 = vmul.f32 %v4414_v18, %v5402_v50 }
 0x392   :  { %4425 = vtanh.f32 %v1720_v16  ;;  %v1721_v19 = vadd.f32 %v1719_v48, %v1689_v57  ;;  %v1677_v22 = vsub.f32 1.0, %v4416_v6  ;;  %v1681_v0 = vmul.f32 %v4416_v6, %v5404_v53 }
 0x394   :  { %4427 = vtanh.f32 %v1721_v19 }
 0x395   :  { %v4418_v54 = vpop.eup %4417 }
 0x396   :  { %v1678_v7 = vmul.f32 %v4418_v54, %v1676_v61  ;;  %v1869_v61 = vld [vmem:[#allocation2 + $0x1b0] sm:$0xff] }
 0x397   :  { %v4420_v24 = vpop.eup %4419 }
 0x398   :  { %v4422_v25 = vpop.eup %4421  ;;  %v1679_v17 = vmul.f32 %v4420_v24, %v1677_v22  ;;  %v5480_v27 = vadd.f32 %v1680_v56, %v1678_v7 }
 0x399   :  { %v4424_v29 = vpop.eup %4423  ;;  %v1724_v28 = vsub.f32 1.0, %v4422_v25  ;;  %v1728_v53 = vmul.f32 %v4422_v25, %v5414_v58  ;;  %v1870_v25 = vld [vmem:[#allocation2 + $0x1b8] sm:$0xff] }
 0x39a   :  { %v5482_v31 = vadd.f32 %v1681_v0, %v1679_v17  ;;  %1733 = vst.msk [vmem:[#allocation3 + $0x40] sm:$0xff] %vm287_vm1, %v5480_v27  ;;  %v1725_v63 = vsub.f32 1.0, %v4424_v29  ;;  %v1729_v34 = vmul.f32 %v4424_v29, %v5416_v20 }
 0x39c   :  { %v4426_v33 = vpop.eup %4425  ;;  %1734 = vst.msk [vmem:[#allocation3 + $0x48] sm:$0xff] %vm287_vm1, %v5482_v31  ;;  %v1738_v50 = vpack.c.bf16 %v5482_v31, %v5480_v27 }
 0x39d   :  { %v1726_v30 = vmul.f32 %v4426_v33, %v1724_v28 }
 0x39e   :  { %v4428_v35 = vpop.eup %4427  ;;  %4131 = vmatprep.subr.bf16.mxu1 %v1738_v50 }
 0x39f   :  { %4132 = vmatpush3.bf16.msra.mxu1 %v1738_v50  ;;  %v1727_v37 = vmul.f32 %v4428_v35, %v1725_v63  ;;  %v5492_v1 = vadd.f32 %v1728_v53, %v1726_v30  ;;  %v1871_v35 = vld [vmem:[#allocation2 + $0x1c0] sm:$0xff] }
 0x3a1   :  { %v5494_v38 = vadd.f32 %v1729_v34, %v1727_v37  ;;  %1736 = vst.msk [vmem:[#allocation3 + $0xb0] sm:$0xff] %vm287_vm1, %v5492_v1 }
 0x3a3   :  { %1737 = vst.msk [vmem:[#allocation3 + $0xb8] sm:$0xff] %vm287_vm1, %v5494_v38  ;;  %v1739_v39 = vpack.c.bf16 %v5494_v38, %v5492_v1 }
 0x3a5   :  { %4133 = vmatprep.subr.bf16.mxu1 %v1739_v39 }
 0x3a6   :  { %4134 = vmatpush3.bf16.msra.mxu1 %v1739_v39 }
 0x3a9   :  { %4136 = vmatmul.mubr.msk.bf16.vlgmr.msra.gmra.mrb[60].mxu1 %vm187_vm0, %v5427_v55 }
 0x3aa   :  { %4139 = vmatprep.mubr.msk.bf16.mxu1 %vm187_vm0, %v5434_v13 }
 0x3b1   :  { %4140 = vmatmul.mubr.msk.bf16.gmra.mrb[64].mxu1 %vm187_vm0, %v5441_v59 }
 0x3b2   :  { %4143 = vmatprep.mubr.msk.bf16.mxu1 %vm187_vm0, %v5448_v60 }
 0x3b9   :  { %4144 = vmatmul.mubr.msk.bf16.gmra.mrb[68].mxu1 %vm187_vm0, %v5455_v62 }
 0x3ba   :  { %4167 = vmatprep.mubr.msk.bf16.mxu1 %vm187_vm0, %v5462_v21 }
 0x47c   :  { %v4137_v58 = vpop.f32.mrb[60].mxu1 }
 0x47d   :  { %v1774_v20 = vpop.f32.mrb[61].mxu1  ;;  %v1783_v41 = vadd.f32 %v4137_v58, %v5128_v10 }
 0x47e   :  { %v1775_v42 = vadd.f32 %v1774_v20, %v5112_v2  ;;  %v4138_v40 = vpop.f32.mrb[62].mxu1 }
 0x47f   :  { %v1777_v45 = vpop.f32.mrb[63].mxu1  ;;  %v1786_v47 = vadd.f32 %v4138_v40, %v5130_v11  ;;  %v1841_v51 = vadd.f32 %v1823_v32, %v1783_v41  ;;  %v1872_v41 = vld [vmem:[#allocation2 + $0x1c8] sm:$0xff] }
 0x480   :  { %v1827_v8 = vadd.f32 %v1821_v44, %v1775_v42  ;;  %v1778_v36 = vadd.f32 %v1777_v45, %v5114_v3 }
 0x481   :  { %v1842_v16 = vadd.f32 %v1824_v43, %v1786_v47  ;;  %v3718_v6 = vmul.f32 -1.442695, %v1841_v51 }
 0x482   :  { %v3716_v46 = vmul.f32 -1.442695, %v1827_v8  ;;  %v1828_v15 = vadd.f32 %v1822_v49, %v1778_v36 }
 0x483   :  { %v3719_v24 = vmul.f32 -1.442695, %v1842_v16 }
 0x484   :  { %4429 = vpow2.f32 %v3716_v46  ;;  %v3717_v48 = vmul.f32 -1.442695, %v1828_v15  ;;  %v4141_v18 = vpop.f32.mrb[64].mxu1 }
 0x485   :  { %v1799_v57 = vadd.f32 %v4141_v18, %v5116_v4  ;;  %v1790_v19 = vpop.f32.mrb[65].mxu1 }
 0x486   :  { %4431 = vpow2.f32 %v3717_v48  ;;  %v4142_v54 = vpop.f32.mrb[66].mxu1  ;;  %v1791_v15 = vadd.f32 %v1790_v19, %v5344_v52 }
 0x487   :  { %v1875_v22 = vadd.f32 %v1869_v61, %v1799_v57  ;;  %v1802_v7 = vadd.f32 %v4142_v54, %v5118_v5  ;;  %v1793_v56 = vpop.f32.mrb[67].mxu1  ;;  %4433 = vpow2.f32 %v3718_v6  ;;  %v1825_v57 = vld [vmem:[#allocation2 + $0x140] sm:$0xff] }
 0x488   :  { %v1794_v48 = vadd.f32 %v1793_v56, %v5347_v9 }
 0x489   :  { %v3720_v17 = vmul.f32 -1.442695, %v1875_v22  ;;  %v1876_v0 = vadd.f32 %v1870_v25, %v1802_v7  ;;  %v1826_v22 = vld [vmem:[#allocation2 + $0x148] sm:$0xff] }
 0x48b   :  { %4435 = vpow2.f32 %v3720_v17  ;;  %v3721_v29 = vmul.f32 -1.442695, %v1876_v0 }
 0x48c   :  { %4437 = vpow2.f32 %v3719_v24  ;;  %v4145_v28 = vpop.f32.mrb[68].mxu1 }
 0x48d   :  { %4439 = vpow2.f32 %v3721_v29  ;;  %v1806_v33 = vpop.f32.mrb[69].mxu1  ;;  %v1815_v17 = vadd.f32 %v4145_v28, %v5350_v23 }
 0x48e   :  { %v4430_v50 = vpop.eup %4429  ;;  %v1807_v63 = vadd.f32 %v1806_v33, %v5132_v12  ;;  %v4146_v30 = vpop.f32.mrb[70].mxu1 }
 0x48f   :  { %v1835_v53 = vadd.f32 1.0, %v4430_v50  ;;  %v1809_v37 = vpop.f32.mrb[71].mxu1  ;;  %v1818_v56 = vadd.f32 %v4146_v30, %v5353_v26  ;;  %v1873_v50 = vld [vmem:[#allocation2 + $0x1d0] sm:$0xff] }
 0x490   :  { %v4432_v34 = vpop.eup %4431  ;;  %v1889_v39 = vadd.f32 %v1871_v35, %v1807_v63  ;;  %v1810_v58 = vadd.f32 %v1809_v37, %v5134_v14  ;;  %v1874_v37 = vld [vmem:[#allocation2 + $0x1d8] sm:$0xff] }
 0x491   :  { %4441 = vrcp.f32 %v1835_v53  ;;  %v1836_v20 = vadd.f32 1.0, %v4432_v34  ;;  %v4434_v44 = vpop.eup %4433 }
 0x492   :  { %v3722_v42 = vmul.f32 -1.442695, %v1889_v39  ;;  %v1890_v40 = vadd.f32 %v1872_v41, %v1810_v58  ;;  %v1849_v49 = vadd.f32 1.0, %v4434_v44 }
 0x493   :  { %4443 = vrcp.f32 %v1836_v20 }
 0x494   :  { %4445 = vpow2.f32 %v3722_v42  ;;  %v3723_v45 = vmul.f32 -1.442695, %v1890_v40 }
 0x495   :  { %v4436_v8 = vpop.eup %4435 }
 0x496   :  { %v4438_v47 = vpop.eup %4437  ;;  %v1883_v36 = vadd.f32 1.0, %v4436_v8  ;;  %4447 = vpow2.f32 %v3723_v45 }
 0x497   :  { %v4440_v32 = vpop.eup %4439  ;;  %v1850_v46 = vadd.f32 1.0, %v4438_v47 }
 0x498   :  { %4449 = vrcp.f32 %v1883_v36  ;;  %v1884_v51 = vadd.f32 1.0, %v4440_v32 }
 0x49a   :  { %4451 = vrcp.f32 %v1884_v51 }
 0x49b   :  { %v4442_v43 = vpop.eup %4441  ;;  %4453 = vrcp.f32 %v1849_v49 }
 0x49c   :  { %v1855_v16 = vmul.f32 %v4442_v43, %v1791_v15  ;;  %4455 = vrcp.f32 %v1850_v46 }
 0x49d   :  { %v4444_v18 = vpop.eup %4443 }
 0x49e   :  { %v4446_v6 = vpop.eup %4445  ;;  %v1857_v61 = vadd.f32 %v1855_v16, %v1825_v57  ;;  %v1856_v54 = vmul.f32 %v4444_v18, %v1794_v48 }
 0x49f   :  { %v1897_v7 = vadd.f32 1.0, %v4446_v6 }
 0x4a0   :  { %v4448_v24 = vpop.eup %4447  ;;  %4457 = vtanh.f32 %v1857_v61  ;;  %v1858_v25 = vadd.f32 %v1856_v54, %v1826_v22  ;;  %v2006_v22 = vld [vmem:[#allocation2 + $0x180] sm:$0xff] }
 0x4a1   :  { %v1898_v19 = vadd.f32 1.0, %v4448_v24 }
 0x4a2   :  { %v4450_v0 = vpop.eup %4449  ;;  %4459 = vtanh.f32 %v1858_v25 }
 0x4a3   :  { %v1903_v29 = vmul.f32 %v4450_v0, %v1815_v17  ;;  %4461 = vrcp.f32 %v1897_v7  ;;  %v2007_v0 = vld [vmem:[#allocation2 + $0x188] sm:$0xff] }
 0x4a4   :  { %v4452_v33 = vpop.eup %4451  ;;  %4463 = vrcp.f32 %v1898_v19  ;;  %v2008_v19 = vld [vmem:[#allocation2 + $0x190] sm:$0xff] }
 0x4a5   :  { %v1905_v63 = vadd.f32 %v1903_v29, %v1873_v50  ;;  %v1904_v53 = vmul.f32 %v4452_v33, %v1818_v56  ;;  %v4454_v35 = vpop.eup %4453  ;;  %v2009_v50 = vld [vmem:[#allocation2 + $0x198] sm:$0xff] }
 0x4a6   :  { %v4456_v39 = vpop.eup %4455  ;;  %v1861_v58 = vsub.f32 1.0, %v4454_v35  ;;  %v1865_v42 = vmul.f32 %v4454_v35, %v5480_v27 }
 0x4a7   :  { %4465 = vtanh.f32 %v1905_v63  ;;  %v1906_v34 = vadd.f32 %v1904_v53, %v1874_v37  ;;  %v1862_v20 = vsub.f32 1.0, %v4456_v39  ;;  %v1866_v45 = vmul.f32 %v4456_v39, %v5482_v31 }
 0x4a9   :  { %4467 = vtanh.f32 %v1906_v34 }
 0x4aa   :  { %v4458_v28 = vpop.eup %4457 }
 0x4ab   :  { %v1863_v41 = vmul.f32 %v4458_v28, %v1861_v58  ;;  %v2054_v58 = vld [vmem:[#allocation2 + $0x150] sm:$0xff] }
 0x4ac   :  { %v4460_v40 = vpop.eup %4459 }
 0x4ad   :  { %v4462_v44 = vpop.eup %4461  ;;  %v1864_v30 = vmul.f32 %v4460_v40, %v1862_v20  ;;  %v5528_v8 = vadd.f32 %v1865_v42, %v1863_v41 }
 0x4ae   :  { %v4464_v47 = vpop.eup %4463  ;;  %v1909_v32 = vsub.f32 1.0, %v4462_v44  ;;  %v1913_v31 = vmul.f32 %v4462_v44, %v5492_v1  ;;  %v2055_v44 = vld [vmem:[#allocation2 + $0x158] sm:$0xff] }
 0x4af   :  { %v5530_v36 = vadd.f32 %v1866_v45, %v1864_v30  ;;  %1918 = vst.msk [vmem:[#allocation3 + $0x60] sm:$0xff] %vm287_vm1, %v5528_v8  ;;  %v1910_v51 = vsub.f32 1.0, %v4464_v47  ;;  %v1914_v16 = vmul.f32 %v4464_v47, %v5494_v38 }
 0x4b1   :  { %v4466_v49 = vpop.eup %4465  ;;  %1919 = vst.msk [vmem:[#allocation3 + $0x68] sm:$0xff] %vm287_vm1, %v5530_v36  ;;  %v1923_v27 = vpack.c.bf16 %v5530_v36, %v5528_v8 }
 0x4b2   :  { %v1911_v46 = vmul.f32 %v4466_v49, %v1909_v32 }
 0x4b3   :  { %v4468_v15 = vpop.eup %4467  ;;  %4147 = vmatprep.subr.bf16.mxu0 %v1923_v27 }
 0x4b4   :  { %4148 = vmatpush3.bf16.msra.mxu0 %v1923_v27  ;;  %v1912_v43 = vmul.f32 %v4468_v15, %v1910_v51  ;;  %v5540_v48 = vadd.f32 %v1913_v31, %v1911_v46  ;;  %v2056_v15 = vld [vmem:[#allocation2 + $0x160] sm:$0xff] }
 0x4b6   :  { %v5542_v18 = vadd.f32 %v1914_v16, %v1912_v43  ;;  %1921 = vst.msk [vmem:[#allocation3 + $0x90] sm:$0xff] %vm287_vm1, %v5540_v48 }
 0x4b8   :  { %1922 = vst.msk [vmem:[#allocation3 + $0x98] sm:$0xff] %vm287_vm1, %v5542_v18  ;;  %v1924_v57 = vpack.c.bf16 %v5542_v18, %v5540_v48 }
 0x4ba   :  { %4149 = vmatprep.subr.bf16.mxu0 %v1924_v57 }
 0x4bb   :  { %4150 = vmatpush3.bf16.msra.mxu0 %v1924_v57 }
 0x4be   :  { %4152 = vmatmul.mubr.msk.bf16.vlgmr.msra.gmra.mrb[72].mxu0 %vm187_vm0, %v5427_v55 }
 0x4bf   :  { %4155 = vmatprep.mubr.msk.bf16.mxu0 %vm187_vm0, %v5434_v13 }
 0x4c6   :  { %4156 = vmatmul.mubr.msk.bf16.gmra.mrb[76].mxu0 %vm187_vm0, %v5441_v59 }
 0x4c7   :  { %4159 = vmatprep.mubr.msk.bf16.mxu0 %vm187_vm0, %v5448_v60 }
 0x4ce   :  { %4160 = vmatmul.mubr.msk.bf16.gmra.mrb[80].mxu0 %vm187_vm0, %v5455_v62 }
 0x4cf   :  { %4183 = vmatprep.mubr.msk.bf16.mxu0 %vm187_vm0, %v5462_v21 }
 0x591   :  { %v4153_v1 = vpop.f32.mrb[72].mxu0 }
 0x592   :  { %v1959_v38 = vpop.f32.mrb[73].mxu0  ;;  %v1968_v6 = vadd.f32 %v4153_v1, %v5128_v10 }
 0x593   :  { %v1960_v61 = vadd.f32 %v1959_v38, %v5112_v2  ;;  %v4154_v54 = vpop.f32.mrb[74].mxu0 }
 0x594   :  { %v1962_v7 = vpop.f32.mrb[75].mxu0  ;;  %v1971_v25 = vadd.f32 %v4154_v54, %v5130_v11  ;;  %v2026_v29 = vadd.f32 %v2008_v19, %v1968_v6  ;;  %v2057_v6 = vld [vmem:[#allocation2 + $0x168] sm:$0xff] }
 0x595   :  { %v2012_v24 = vadd.f32 %v2006_v22, %v1960_v61  ;;  %v1963_v17 = vadd.f32 %v1962_v7, %v5114_v3 }
 0x596   :  { %v2027_v63 = vadd.f32 %v2009_v50, %v1971_v25  ;;  %v3732_v39 = vmul.f32 -1.442695, %v2026_v29 }
 0x597   :  { %v3730_v56 = vmul.f32 -1.442695, %v2012_v24  ;;  %v2013_v33 = vadd.f32 %v2007_v0, %v1963_v17 }
 0x598   :  { %v3733_v40 = vmul.f32 -1.442695, %v2027_v63 }
 0x599   :  { %4469 = vpow2.f32 %v3730_v56  ;;  %v3731_v53 = vmul.f32 -1.442695, %v2013_v33  ;;  %v4157_v35 = vpop.f32.mrb[76].mxu0 }
 0x59a   :  { %v1984_v37 = vadd.f32 %v4157_v35, %v5116_v4  ;;  %v1975_v34 = vpop.f32.mrb[77].mxu0 }
 0x59b   :  { %4471 = vpow2.f32 %v3731_v53  ;;  %v4158_v28 = vpop.f32.mrb[78].mxu0  ;;  %v1976_v33 = vadd.f32 %v1975_v34, %v5344_v52 }
 0x59c   :  { %v2060_v20 = vadd.f32 %v2054_v58, %v1984_v37  ;;  %v1987_v41 = vadd.f32 %v4158_v28, %v5118_v5  ;;  %v1978_v42 = vpop.f32.mrb[79].mxu0  ;;  %4473 = vpow2.f32 %v3732_v39  ;;  %v2010_v37 = vld [vmem:[#allocation2 + $0x1a0] sm:$0xff] }
 0x59d   :  { %v1979_v53 = vadd.f32 %v1978_v42, %v5347_v9 }
 0x59e   :  { %v3734_v30 = vmul.f32 -1.442695, %v2060_v20  ;;  %v2061_v45 = vadd.f32 %v2055_v44, %v1987_v41  ;;  %v2011_v20 = vld [vmem:[#allocation2 + $0x1a8] sm:$0xff] }
 0x5a0   :  { %4475 = vpow2.f32 %v3734_v30  ;;  %v3735_v47 = vmul.f32 -1.442695, %v2061_v45 }
 0x5a1   :  { %4477 = vpow2.f32 %v3733_v40  ;;  %v4161_v32 = vpop.f32.mrb[80].mxu0 }
 0x5a2   :  { %4479 = vpow2.f32 %v3735_v47  ;;  %v1991_v49 = vpop.f32.mrb[81].mxu0  ;;  %v2000_v30 = vadd.f32 %v4161_v32, %v5350_v23 }
 0x5a3   :  { %v4470_v27 = vpop.eup %4469  ;;  %v1992_v51 = vadd.f32 %v1991_v49, %v5132_v12  ;;  %v4162_v46 = vpop.f32.mrb[82].mxu0 }
 0x5a4   :  { %v2020_v31 = vadd.f32 1.0, %v4470_v27  ;;  %v1994_v43 = vpop.f32.mrb[83].mxu0  ;;  %v2003_v42 = vadd.f32 %v4162_v46, %v5353_v26  ;;  %v2058_v27 = vld [vmem:[#allocation2 + $0x170] sm:$0xff] }
 0x5a5   :  { %v4472_v16 = vpop.eup %4471  ;;  %v2074_v57 = vadd.f32 %v2056_v15, %v1992_v51  ;;  %v1995_v1 = vadd.f32 %v1994_v43, %v5134_v14  ;;  %v2059_v43 = vld [vmem:[#allocation2 + $0x178] sm:$0xff] }
 0x5a6   :  { %4481 = vrcp.f32 %v2020_v31  ;;  %v2021_v38 = vadd.f32 1.0, %v4472_v16  ;;  %v4474_v22 = vpop.eup %4473 }
 0x5a7   :  { %v3736_v61 = vmul.f32 -1.442695, %v2074_v57  ;;  %v2075_v54 = vadd.f32 %v2057_v6, %v1995_v1  ;;  %v2034_v0 = vadd.f32 1.0, %v4474_v22 }
 0x5a8   :  { %4483 = vrcp.f32 %v2021_v38 }
 0x5a9   :  { %4485 = vpow2.f32 %v3736_v61  ;;  %v3737_v7 = vmul.f32 -1.442695, %v2075_v54 }
 0x5aa   :  { %v4476_v24 = vpop.eup %4475 }
 0x5ab   :  { %v4478_v25 = vpop.eup %4477  ;;  %v2068_v17 = vadd.f32 1.0, %v4476_v24  ;;  %4487 = vpow2.f32 %v3737_v7 }
 0x5ac   :  { %v4480_v19 = vpop.eup %4479  ;;  %v2035_v56 = vadd.f32 1.0, %v4478_v25 }
 0x5ad   :  { %4489 = vrcp.f32 %v2068_v17  ;;  %v2069_v29 = vadd.f32 1.0, %v4480_v19 }
 0x5af   :  { %4491 = vrcp.f32 %v2069_v29 }
 0x5b0   :  { %v4482_v50 = vpop.eup %4481  ;;  %4493 = vrcp.f32 %v2034_v0 }
 0x5b1   :  { %v2040_v63 = vmul.f32 %v4482_v50, %v1976_v33  ;;  %4495 = vrcp.f32 %v2035_v56 }
 0x5b2   :  { %v4484_v35 = vpop.eup %4483 }
 0x5b3   :  { %v4486_v39 = vpop.eup %4485  ;;  %v2042_v58 = vadd.f32 %v2040_v63, %v2010_v37  ;;  %v2041_v28 = vmul.f32 %v4484_v35, %v1979_v53 }
 0x5b4   :  { %v2082_v41 = vadd.f32 1.0, %v4486_v39 }
 0x5b5   :  { %v4488_v40 = vpop.eup %4487  ;;  %4497 = vtanh.f32 %v2042_v58  ;;  %v2043_v44 = vadd.f32 %v2041_v28, %v2011_v20 }
 0x5b6   :  { %v2083_v34 = vadd.f32 1.0, %v4488_v40  ;;  %v2190_v40 = vld [vmem:[#allocation2 + $0x1e8] sm:$0xff] }
 0x5b7   :  { %v4490_v45 = vpop.eup %4489  ;;  %4499 = vtanh.f32 %v2043_v44 }
 0x5b8   :  { %v2088_v47 = vmul.f32 %v4490_v45, %v2000_v30  ;;  %4501 = vrcp.f32 %v2082_v41  ;;  %v2191_v41 = vld [vmem:[#allocation2 + $0x1f0] sm:$0xff] }
 0x5b9   :  { %v4492_v49 = vpop.eup %4491  ;;  %4503 = vrcp.f32 %v2083_v34 }
 0x5ba   :  { %v2090_v51 = vadd.f32 %v2088_v47, %v2058_v27  ;;  %v2089_v31 = vmul.f32 %v4492_v49, %v2003_v42  ;;  %v4494_v15 = vpop.eup %4493 }
 0x5bb   :  { %v4496_v57 = vpop.eup %4495  ;;  %v2046_v1 = vsub.f32 1.0, %v4494_v15  ;;  %v2050_v61 = vmul.f32 %v4494_v15, %v5528_v8 }
 0x5bc   :  { %4505 = vtanh.f32 %v2090_v51  ;;  %v2091_v16 = vadd.f32 %v2089_v31, %v2059_v43  ;;  %v2047_v38 = vsub.f32 1.0, %v4496_v57  ;;  %v2051_v7 = vmul.f32 %v4496_v57, %v5530_v36  ;;  %v2237_v51 = vld [vmem:[#allocation2 + $0xf0] sm:$0xff] }
 0x5be   :  { %4507 = vtanh.f32 %v2091_v16 }
 0x5bf   :  { %v4498_v32 = vpop.eup %4497 }
 0x5c0   :  { %v2048_v6 = vmul.f32 %v4498_v32, %v2046_v1  ;;  %v2238_v1 = vld [vmem:[#allocation2 + $0xf8] sm:$0xff] }
 0x5c1   :  { %v4500_v54 = vpop.eup %4499 }
 0x5c2   :  { %v4502_v22 = vpop.eup %4501  ;;  %v2049_v46 = vmul.f32 %v4500_v54, %v2047_v38  ;;  %v5576_v24 = vadd.f32 %v2050_v61, %v2048_v6 }
 0x5c3   :  { %v4504_v25 = vpop.eup %4503  ;;  %v2094_v19 = vsub.f32 1.0, %v4502_v22  ;;  %v2098_v36 = vmul.f32 %v4502_v22, %v5540_v48 }
 0x5c4   :  { %v5578_v17 = vadd.f32 %v2051_v7, %v2049_v46  ;;  %2102 = vst.msk [vmem:[#allocation3 + $0x80] sm:$0xff] %vm287_vm1, %v5576_v24  ;;  %v2095_v29 = vsub.f32 1.0, %v4504_v25  ;;  %v2099_v63 = vmul.f32 %v4504_v25, %v5542_v18 }
 0x5c6   :  { %v4506_v0 = vpop.eup %4505  ;;  %2103 = vst.msk [vmem:[#allocation3 + $0x88] sm:$0xff] %vm287_vm1, %v5578_v17  ;;  %v2106_v8 = vpack.c.bf16 %v5578_v17, %v5576_v24 }
 0x5c7   :  { %v2096_v56 = vmul.f32 %v4506_v0, %v2094_v19  ;;  %v2239_v19 = vld [vmem:[#allocation2 + $0x100] sm:$0xff] }
 0x5c8   :  { %v4508_v33 = vpop.eup %4507  ;;  %4163 = vmatprep.subr.bf16.mxu1 %v2106_v8 }
 0x5c9   :  { %4164 = vmatpush3.bf16.msra.mxu1 %v2106_v8  ;;  %v2097_v50 = vmul.f32 %v4508_v33, %v2095_v29  ;;  %v5588_v53 = vadd.f32 %v2098_v36, %v2096_v56  ;;  %v2240_v33 = vld [vmem:[#allocation2 + $0x108] sm:$0xff] }
 0x5cb   :  { %v5590_v35 = vadd.f32 %v2099_v63, %v2097_v50  ;;  %2104 = vst.msk [vmem:[#allocation3 + $0x70] sm:$0xff] %vm287_vm1, %v5588_v53 }
 0x5cd   :  { %2105 = vst.msk [vmem:[#allocation3 + $0x78] sm:$0xff] %vm287_vm1, %v5590_v35  ;;  %v2107_v37 = vpack.c.bf16 %v5590_v35, %v5588_v53 }
 0x5cf   :  { %4165 = vmatprep.subr.bf16.mxu1 %v2107_v37 }
 0x5d0   :  { %4166 = vmatpush3.bf16.msra.mxu1 %v2107_v37 }
 0x5d3   :  { %4168 = vmatmul.mubr.msk.bf16.vlgmr.msra.gmra.mrb[72].mxu1 %vm187_vm0, %v5427_v55 }
 0x5d4   :  { %4171 = vmatprep.mubr.msk.bf16.mxu1 %vm187_vm0, %v5434_v13  ;;  %v2189_v13 = vld [vmem:[#allocation2 + $0x1e0] sm:$0xff] }
 0x5db   :  { %4172 = vmatmul.mubr.msk.bf16.gmra.mrb[76].mxu1 %vm187_vm0, %v5441_v59 }
 0x5dc   :  { %4175 = vmatprep.mubr.msk.bf16.mxu1 %vm187_vm0, %v5448_v60 }
 0x5e3   :  { %4176 = vmatmul.mubr.msk.bf16.gmra.mrb[80].mxu1 %vm187_vm0, %v5455_v62 }
 0x5e4   :  { %4199 = vmatprep.mubr.msk.bf16.mxu1 %vm187_vm0, %v5462_v21  ;;  %v2192_v21 = vld [vmem:[#allocation2 + $0x1f8] sm:$0xff] }
 0x6a6   :  { %v4169_v48 = vpop.f32.mrb[72].mxu1 }
 0x6a7   :  { %v2142_v18 = vpop.f32.mrb[73].mxu1  ;;  %v2151_v39 = vadd.f32 %v4169_v48, %v5128_v10 }
 0x6a8   :  { %v2143_v55 = vadd.f32 %v2142_v18, %v5112_v2  ;;  %v4170_v58 = vpop.f32.mrb[74].mxu1 }
 0x6a9   :  { %v2145_v28 = vpop.f32.mrb[75].mxu1  ;;  %v2154_v59 = vadd.f32 %v4170_v58, %v5130_v11  ;;  %v2209_v62 = vadd.f32 %v2191_v41, %v2151_v39 }
 0x6aa   :  { %v2195_v20 = vadd.f32 %v2189_v13, %v2143_v55  ;;  %v2146_v60 = vadd.f32 %v2145_v28, %v5114_v3 }
 0x6ab   :  { %v2210_v34 = vadd.f32 %v2192_v21, %v2154_v59  ;;  %v3746_v27 = vmul.f32 -1.442695, %v2209_v62 }
 0x6ac   :  { %v3744_v44 = vmul.f32 -1.442695, %v2195_v20  ;;  %v2196_v30 = vadd.f32 %v2190_v40, %v2146_v60 }
 0x6ad   :  { %v3747_v57 = vmul.f32 -1.442695, %v2210_v34 }
 0x6ae   :  { %4509 = vpow2.f32 %v3744_v44  ;;  %v3745_v45 = vmul.f32 -1.442695, %v2196_v30  ;;  %v4173_v47 = vpop.f32.mrb[76].mxu1  ;;  %v2193_v44 = vld [vmem:[#allocation2 + $0x200] sm:$0xff] }
 0x6af   :  { %v2167_v42 = vadd.f32 %v4173_v47, %v5116_v4  ;;  %v2158_v49 = vpop.f32.mrb[77].mxu1 }
 0x6b0   :  { %4511 = vpow2.f32 %v3745_v45  ;;  %v4174_v31 = vpop.f32.mrb[78].mxu1  ;;  %v2159_v59 = vadd.f32 %v2158_v49, %v5344_v52  ;;  %v2194_v45 = vld [vmem:[#allocation2 + $0x208] sm:$0xff] }
 0x6b1   :  { %v2243_v15 = vadd.f32 %v2237_v51, %v2167_v42  ;;  %v2170_v43 = vadd.f32 %v4174_v31, %v5118_v5  ;;  %v2161_v16 = vpop.f32.mrb[79].mxu1  ;;  %4513 = vpow2.f32 %v3746_v27 }
 0x6b2   :  { %v2162_v40 = vadd.f32 %v2161_v16, %v5347_v9 }
 0x6b3   :  { %v3748_v32 = vmul.f32 -1.442695, %v2243_v15  ;;  %v2244_v38 = vadd.f32 %v2238_v1, %v2170_v43 }
 0x6b5   :  { %4515 = vpow2.f32 %v3748_v32  ;;  %v3749_v6 = vmul.f32 -1.442695, %v2244_v38 }
 0x6b6   :  { %4517 = vpow2.f32 %v3747_v57  ;;  %v4177_v61 = vpop.f32.mrb[80].mxu1  ;;  %v2241_v57 = vld [vmem:[#allocation2 + $0x110] sm:$0xff] }
 0x6b7   :  { %4519 = vpow2.f32 %v3749_v6  ;;  %v2174_v54 = vpop.f32.mrb[81].mxu1  ;;  %v2183_v51 = vadd.f32 %v4177_v61, %v5350_v23  ;;  %v2242_v6 = vld [vmem:[#allocation2 + $0x118] sm:$0xff] }
 0x6b8   :  { %v4510_v22 = vpop.eup %4509  ;;  %v2175_v46 = vadd.f32 %v2174_v54, %v5132_v12  ;;  %v4178_v7 = vpop.f32.mrb[82].mxu1 }
 0x6b9   :  { %v2203_v25 = vadd.f32 1.0, %v4510_v22  ;;  %v2177_v0 = vpop.f32.mrb[83].mxu1  ;;  %v2186_v43 = vadd.f32 %v4178_v7, %v5353_v26 }
 0x6ba   :  { %v4512_v8 = vpop.eup %4511  ;;  %v2257_v29 = vadd.f32 %v2239_v19, %v2175_v46  ;;  %v2178_v56 = vadd.f32 %v2177_v0, %v5134_v14 }
 0x6bb   :  { %4521 = vrcp.f32 %v2203_v25  ;;  %v2204_v36 = vadd.f32 1.0, %v4512_v8  ;;  %v4514_v37 = vpop.eup %4513 }
 0x6bc   :  { %v3750_v50 = vmul.f32 -1.442695, %v2257_v29  ;;  %v2258_v63 = vadd.f32 %v2240_v33, %v2178_v56  ;;  %v2217_v13 = vadd.f32 1.0, %v4514_v37 }
 0x6bd   :  { %4523 = vrcp.f32 %v2204_v36 }
 0x6be   :  { %4525 = vpow2.f32 %v3750_v50  ;;  %v3751_v48 = vmul.f32 -1.442695, %v2258_v63 }
 0x6bf   :  { %v4516_v18 = vpop.eup %4515 }
 0x6c0   :  { %v4518_v39 = vpop.eup %4517  ;;  %v2251_v55 = vadd.f32 1.0, %v4516_v18  ;;  %4527 = vpow2.f32 %v3751_v48 }
 0x6c1   :  { %v4520_v58 = vpop.eup %4519  ;;  %v2218_v20 = vadd.f32 1.0, %v4518_v39 }
 0x6c2   :  { %4529 = vrcp.f32 %v2251_v55  ;;  %v2252_v28 = vadd.f32 1.0, %v4520_v58 }
 0x6c4   :  { %4531 = vrcp.f32 %v2252_v28 }
 0x6c5   :  { %v4522_v60 = vpop.eup %4521  ;;  %4533 = vrcp.f32 %v2217_v13 }
 0x6c6   :  { %v2223_v41 = vmul.f32 %v4522_v60, %v2159_v59  ;;  %4535 = vrcp.f32 %v2218_v20  ;;  %v2669_v20 = vld [vmem:[#allocation3 + $0x8] sm:$0xff]  ;;  %v2668_v59 = vld [vmem:[#allocation3] sm:$0xff] }
 0x6c7   :  { %v4524_v62 = vpop.eup %4523  ;;  %v2672_v60 = vpack.c.bf16 %v2669_v20, %v2668_v59  ;;  %v2422_v20 = vld [vmem:[#allocation2 + $0xa0] sm:$0xff] }
 0x6c8   :  { %v4526_v30 = vpop.eup %4525  ;;  %v2225_v21 = vadd.f32 %v2223_v41, %v2193_v44  ;;  %v2224_v34 = vmul.f32 %v4524_v62, %v2162_v40  ;;  %v5656_v41 = vld [vmem:[%s6045_s4 + $0x10] sm:$0xff]   ;;  %v5663_v40 = vld [vmem:[%s6045_s4 + $0x18] sm:$0xff]   ;;  %v5670_v62 = vld [vmem:[%s6045_s4 + $0x20] sm:$0xff]  }
 0x6c9   :  { %v2265_v47 = vadd.f32 1.0, %v4526_v30  ;;  %v5677_v44 = vld [vmem:[%s6045_s4 + $0x28] sm:$0xff]   ;;  %v5684_v30 = vld [vmem:[%s6048_s6] sm:$0xff]  }
 0x6ca   :  { %v4528_v42 = vpop.eup %4527  ;;  %4537 = vtanh.f32 %v2225_v21  ;;  %v2226_v27 = vadd.f32 %v2224_v34, %v2194_v45 }
 0x6cb   :  { %v2266_v49 = vadd.f32 1.0, %v4528_v42 }
 0x6cc   :  { %v4530_v31 = vpop.eup %4529  ;;  %4539 = vtanh.f32 %v2226_v27  ;;  %v2372_v27 = vld [vmem:[#allocation2 + $0x240] sm:$0xff] }
 0x6cd   :  { %v2271_v15 = vmul.f32 %v4530_v31, %v2183_v51  ;;  %4541 = vrcp.f32 %v2265_v47 }
 0x6ce   :  { %v4532_v16 = vpop.eup %4531  ;;  %4543 = vrcp.f32 %v2266_v49 }
 0x6cf   :  { %v2273_v1 = vadd.f32 %v2271_v15, %v2241_v57  ;;  %v2272_v32 = vmul.f32 %v4532_v16, %v2186_v43  ;;  %v4534_v38 = vpop.eup %4533  ;;  %v2374_v43 = vld [vmem:[#allocation2 + $0x250] sm:$0xff]  ;;  %v2373_v16 = vld [vmem:[#allocation2 + $0x248] sm:$0xff] }
 0x6d0   :  { %v4536_v22 = vpop.eup %4535  ;;  %v2229_v46 = vsub.f32 1.0, %v4534_v38  ;;  %v2233_v0 = vmul.f32 %v4534_v38, %v5576_v24  ;;  %v2375_v38 = vld [vmem:[#allocation2 + $0x258] sm:$0xff] }
 0x6d1   :  { %4545 = vtanh.f32 %v2273_v1  ;;  %v2274_v54 = vadd.f32 %v2272_v32, %v2242_v6  ;;  %v2230_v25 = vsub.f32 1.0, %v4536_v22  ;;  %v2234_v56 = vmul.f32 %v4536_v22, %v5578_v17 }
 0x6d3   :  { %4547 = vtanh.f32 %v2274_v54 }
 0x6d4   :  { %v4538_v61 = vpop.eup %4537 }
 0x6d5   :  { %v2231_v19 = vmul.f32 %v4538_v61, %v2229_v46 }
 0x6d6   :  { %v4540_v8 = vpop.eup %4539 }
 0x6d7   :  { %v4542_v29 = vpop.eup %4541  ;;  %v2232_v7 = vmul.f32 %v4540_v8, %v2230_v25  ;;  %v5624_v36 = vadd.f32 %v2233_v0, %v2231_v19  ;;  %v2420_v19 = vld [vmem:[#allocation2 + $0x90] sm:$0xff] }
 0x6d8   :  { %v4544_v33 = vpop.eup %4543  ;;  %v2277_v63 = vsub.f32 1.0, %v4542_v29  ;;  %v2281_v17 = vmul.f32 %v4542_v29, %v5588_v53 }
 0x6d9   :  { %v5626_v50 = vadd.f32 %v2234_v56, %v2232_v7  ;;  %2285 = vst.msk [vmem:[#allocation3 + $0xa0] sm:$0xff] %vm287_vm1, %v5624_v36  ;;  %v2278_v48 = vsub.f32 1.0, %v4544_v33  ;;  %v2282_v58 = vmul.f32 %v4544_v33, %v5590_v35  ;;  %v5649_v35 = vld [vmem:[%s6045_s4 + $0x8] sm:$0xff]   ;;  %v2421_v33 = vld [vmem:[#allocation2 + $0x98] sm:$0xff] }
 0x6db   :  { %v4546_v37 = vpop.eup %4545  ;;  %2286 = vst.msk [vmem:[#allocation3 + $0xa8] sm:$0xff] %vm287_vm1, %v5626_v50  ;;  %v2289_v24 = vpack.c.bf16 %v5626_v50, %v5624_v36 }
 0x6dc   :  { %v2279_v18 = vmul.f32 %v4546_v37, %v2277_v63 }
 0x6dd   :  { %v4548_v39 = vpop.eup %4547  ;;  %4179 = vmatprep.subr.bf16.mxu0 %v2289_v24 }
 0x6de   :  { %4180 = vmatpush3.bf16.msra.mxu0 %v2289_v24  ;;  %v2280_v55 = vmul.f32 %v4548_v39, %v2278_v48  ;;  %v5636_v13 = vadd.f32 %v2281_v17, %v2279_v18 }
 0x6e0   :  { %v5638_v28 = vadd.f32 %v2282_v58, %v2280_v55  ;;  %2287 = vst.msk [vmem:[#allocation3 + $0x50] sm:$0xff] %vm287_vm1, %v5636_v13 }
 0x6e2   :  { %2288 = vst.msk [vmem:[#allocation3 + $0x58] sm:$0xff] %vm287_vm1, %v5638_v28  ;;  %v2290_v53 = vpack.c.bf16 %v5638_v28, %v5636_v13 }
 0x6e4   :  { %4181 = vmatprep.subr.bf16.mxu0 %v2290_v53 }
 0x6e5   :  { %4182 = vmatpush3.bf16.msra.mxu0 %v2290_v53 }
 0x6e6   :  { %4211 = vmatprep.subr.bf16.mxu0 %v2672_v60 }
 0x6e8   :  { %4184 = vmatmul.mubr.msk.bf16.vlgmr.msra.gmra.mrb[84].mxu0 %vm187_vm0, %v5649_v35 }
 0x6e9   :  { %4212 = vmatpush3.bf16.msra.mxu0 %v2672_v60  ;;  %4187 = vmatprep.mubr.msk.bf16.mxu0 %vm187_vm0, %v5656_v41 }
 0x6f0   :  { %4188 = vmatmul.mubr.msk.bf16.gmra.mrb[88].mxu0 %vm187_vm0, %v5663_v40 }
 0x6f1   :  { %4191 = vmatprep.mubr.msk.bf16.mxu0 %vm187_vm0, %v5670_v62 }
 0x6f8   :  { %4192 = vmatmul.mubr.msk.bf16.gmra.mrb[92].mxu0 %vm187_vm0, %v5677_v44 }
 0x6f9   :  { %4215 = vmatprep.mubr.msk.bf16.mxu0 %vm187_vm0, %v5684_v30 }
 0x7bb   :  { %v4185_v21 = vpop.f32.mrb[84].mxu0 }
 0x7bc   :  { %v2325_v34 = vpop.f32.mrb[85].mxu0  ;;  %v2334_v45 = vadd.f32 %v4185_v21, %v5128_v10 }
 0x7bd   :  { %v2326_v47 = vadd.f32 %v2325_v34, %v5112_v2  ;;  %v4186_v42 = vpop.f32.mrb[86].mxu0 }
 0x7be   :  { %v2328_v51 = vpop.f32.mrb[87].mxu0  ;;  %v2337_v31 = vadd.f32 %v4186_v42, %v5130_v11  ;;  %v2392_v57 = vadd.f32 %v2374_v43, %v2334_v45  ;;  %v2423_v45 = vld [vmem:[#allocation2 + $0xa8] sm:$0xff] }
 0x7bf   :  { %v2378_v49 = vadd.f32 %v2372_v27, %v2326_v47  ;;  %v2329_v15 = vadd.f32 %v2328_v51, %v5114_v3 }
 0x7c0   :  { %v2393_v6 = vadd.f32 %v2375_v38, %v2337_v31  ;;  %v3760_v25 = vmul.f32 -1.442695, %v2392_v57 }
 0x7c1   :  { %v3758_v1 = vmul.f32 -1.442695, %v2378_v49  ;;  %v2379_v32 = vadd.f32 %v2373_v16, %v2329_v15 }
 0x7c2   :  { %v3761_v56 = vmul.f32 -1.442695, %v2393_v6 }
 0x7c3   :  { %4549 = vpow2.f32 %v3758_v1  ;;  %v3759_v54 = vmul.f32 -1.442695, %v2379_v32  ;;  %v4189_v22 = vpop.f32.mrb[88].mxu0 }
 0x7c4   :  { %v2350_v46 = vadd.f32 %v4189_v22, %v5116_v4  ;;  %v2341_v61 = vpop.f32.mrb[89].mxu0 }
 0x7c5   :  { %4551 = vpow2.f32 %v3759_v54  ;;  %v4190_v0 = vpop.f32.mrb[90].mxu0  ;;  %v2342_v32 = vadd.f32 %v2341_v61, %v5344_v52 }
 0x7c6   :  { %v2426_v8 = vadd.f32 %v2420_v19, %v2350_v46  ;;  %v2353_v29 = vadd.f32 %v4190_v0, %v5118_v5  ;;  %v2344_v7 = vpop.f32.mrb[91].mxu0  ;;  %4553 = vpow2.f32 %v3760_v25  ;;  %v2376_v46 = vld [vmem:[#allocation2 + $0x260] sm:$0xff] }
 0x7c7   :  { %v2345_v54 = vadd.f32 %v2344_v7, %v5347_v9 }
 0x7c8   :  { %v3762_v63 = vmul.f32 -1.442695, %v2426_v8  ;;  %v2427_v37 = vadd.f32 %v2421_v33, %v2353_v29  ;;  %v2377_v8 = vld [vmem:[#allocation2 + $0x268] sm:$0xff] }
 0x7ca   :  { %4555 = vpow2.f32 %v3762_v63  ;;  %v3763_v24 = vmul.f32 -1.442695, %v2427_v37 }
 0x7cb   :  { %4557 = vpow2.f32 %v3761_v56  ;;  %v4193_v48 = vpop.f32.mrb[92].mxu0 }
 0x7cc   :  { %4559 = vpow2.f32 %v3763_v24  ;;  %v2357_v18 = vpop.f32.mrb[93].mxu0  ;;  %v2366_v63 = vadd.f32 %v4193_v48, %v5350_v23 }
 0x7cd   :  { %v4550_v17 = vpop.eup %4549  ;;  %v2358_v39 = vadd.f32 %v2357_v18, %v5132_v12  ;;  %v4194_v55 = vpop.f32.mrb[94].mxu0 }
 0x7ce   :  { %v2386_v58 = vadd.f32 1.0, %v4550_v17  ;;  %v2360_v53 = vpop.f32.mrb[95].mxu0  ;;  %v2369_v7 = vadd.f32 %v4194_v55, %v5353_v26  ;;  %v2424_v17 = vld [vmem:[#allocation2 + $0xb0] sm:$0xff] }
 0x7cf   :  { %v4552_v59 = vpop.eup %4551  ;;  %v2440_v60 = vadd.f32 %v2422_v20, %v2358_v39  ;;  %v2361_v21 = vadd.f32 %v2360_v53, %v5134_v14  ;;  %v2425_v53 = vld [vmem:[#allocation2 + $0xb8] sm:$0xff] }
 0x7d0   :  { %4561 = vrcp.f32 %v2386_v58  ;;  %v2387_v34 = vadd.f32 1.0, %v4552_v59  ;;  %v4554_v27 = vpop.eup %4553 }
 0x7d1   :  { %v3764_v47 = vmul.f32 -1.442695, %v2440_v60  ;;  %v2441_v42 = vadd.f32 %v2423_v45, %v2361_v21  ;;  %v2400_v16 = vadd.f32 1.0, %v4554_v27 }
 0x7d2   :  { %4563 = vrcp.f32 %v2387_v34 }
 0x7d3   :  { %4565 = vpow2.f32 %v3764_v47  ;;  %v3765_v51 = vmul.f32 -1.442695, %v2441_v42 }
 0x7d4   :  { %v4556_v49 = vpop.eup %4555 }
 0x7d5   :  { %v4558_v31 = vpop.eup %4557  ;;  %v2434_v15 = vadd.f32 1.0, %v4556_v49  ;;  %4567 = vpow2.f32 %v3765_v51 }
 0x7d6   :  { %v4560_v43 = vpop.eup %4559  ;;  %v2401_v1 = vadd.f32 1.0, %v4558_v31 }
 0x7d7   :  { %4569 = vrcp.f32 %v2434_v15  ;;  %v2435_v57 = vadd.f32 1.0, %v4560_v43 }
 0x7d9   :  { %4571 = vrcp.f32 %v2435_v57 }
 0x7da   :  { %v4562_v38 = vpop.eup %4561  ;;  %4573 = vrcp.f32 %v2400_v16 }
 0x7db   :  { %v2406_v6 = vmul.f32 %v4562_v38, %v2342_v32  ;;  %4575 = vrcp.f32 %v2401_v1 }
 0x7dc   :  { %v4564_v22 = vpop.eup %4563 }
 0x7dd   :  { %v4566_v25 = vpop.eup %4565  ;;  %v2408_v19 = vadd.f32 %v2406_v6, %v2376_v46  ;;  %v2407_v0 = vmul.f32 %v4564_v22, %v2345_v54  ;;  %v2803_v46 = vld [vmem:[#allocation3 + $0x28] sm:$0xff] }
 0x7de   :  { %v2448_v29 = vadd.f32 1.0, %v4566_v25  ;;  %v2802_v25 = vld [vmem:[#allocation3 + $0x20] sm:$0xff] }
 0x7df   :  { %v4568_v56 = vpop.eup %4567  ;;  %4577 = vtanh.f32 %v2408_v19  ;;  %v2409_v33 = vadd.f32 %v2407_v0, %v2377_v8  ;;  %v2806_v19 = vpack.c.bf16 %v2803_v46, %v2802_v25  ;;  %v2957_v8 = vld [vmem:[#allocation3 + $0x68] sm:$0xff] }
 0x7e0   :  { %v2449_v61 = vadd.f32 1.0, %v4568_v56  ;;  %v2956_v56 = vld [vmem:[#allocation3 + $0x60] sm:$0xff] }
 0x7e1   :  { %v4570_v37 = vpop.eup %4569  ;;  %4579 = vtanh.f32 %v2409_v33  ;;  %v2960_v33 = vpack.c.bf16 %v2957_v8, %v2956_v56 }
 0x7e2   :  { %v2454_v24 = vmul.f32 %v4570_v37, %v2366_v63  ;;  %4581 = vrcp.f32 %v2448_v29  ;;  %v2958_v63 = vld [vmem:[#allocation3 + $0x70] sm:$0xff]  ;;  %v3113_v37 = vld [vmem:[#allocation3 + $0xb8] sm:$0xff] }
 0x7e3   :  { %v4572_v18 = vpop.eup %4571  ;;  %4583 = vrcp.f32 %v2449_v61  ;;  %v3111_v61 = vld [vmem:[#allocation3 + $0xa8] sm:$0xff] }
 0x7e4   :  { %v2456_v39 = vadd.f32 %v2454_v24, %v2424_v17  ;;  %v2455_v58 = vmul.f32 %v4572_v18, %v2369_v7  ;;  %v4574_v20 = vpop.eup %4573  ;;  %v3112_v24 = vld [vmem:[#allocation3 + $0xb0] sm:$0xff] }
 0x7e5   :  { %v4576_v60 = vpop.eup %4575  ;;  %v2412_v21 = vsub.f32 1.0, %v4574_v20  ;;  %v2416_v47 = vmul.f32 %v4574_v20, %v5624_v36  ;;  %v3115_v7 = vpack.c.bf16 %v3113_v37, %v3112_v24 }
 0x7e6   :  { %4585 = vtanh.f32 %v2456_v39  ;;  %v2457_v59 = vadd.f32 %v2455_v58, %v2425_v53  ;;  %v2413_v34 = vsub.f32 1.0, %v4576_v60  ;;  %v2417_v51 = vmul.f32 %v4576_v60, %v5626_v50  ;;  %v2557_v58 = vld [vmem:[#allocation2 + $0x2b0] sm:$0xff]  ;;  %v2555_v60 = vld [vmem:[#allocation2 + $0x2a0] sm:$0xff] }
 0x7e8   :  { %4587 = vtanh.f32 %v2457_v59 }
 0x7e9   :  { %v4578_v48 = vpop.eup %4577 }
 0x7ea   :  { %v2414_v45 = vmul.f32 %v4578_v48, %v2412_v21 }
 0x7eb   :  { %v4580_v42 = vpop.eup %4579 }
 0x7ec   :  { %v4582_v27 = vpop.eup %4581  ;;  %v2415_v55 = vmul.f32 %v4580_v42, %v2413_v34  ;;  %v5702_v49 = vadd.f32 %v2416_v47, %v2414_v45  ;;  %v2556_v42 = vld [vmem:[#allocation2 + $0x2a8] sm:$0xff] }
 0x7ed   :  { %v4584_v31 = vpop.eup %4583  ;;  %v2460_v43 = vsub.f32 1.0, %v4582_v27  ;;  %v2464_v50 = vmul.f32 %v4582_v27, %v5636_v13 }
 0x7ee   :  { %v5704_v15 = vadd.f32 %v2417_v51, %v2415_v55  ;;  %2468 = vst.msk [vmem:[#allocation3 + $0xc0] sm:$0xff] %vm287_vm1, %v5702_v49  ;;  %v2461_v57 = vsub.f32 1.0, %v4584_v31  ;;  %v2465_v6 = vmul.f32 %v4584_v31, %v5638_v28  ;;  %v2558_v51 = vld [vmem:[#allocation2 + $0x2b8] sm:$0xff] }
 0x7f0   :  { %v4586_v16 = vpop.eup %4585  ;;  %2469 = vst.msk [vmem:[#allocation3 + $0xc8] sm:$0xff] %vm287_vm1, %v5704_v15  ;;  %v2472_v36 = vpack.c.bf16 %v5704_v15, %v5702_v49 }
 0x7f1   :  { %v2462_v1 = vmul.f32 %v4586_v16, %v2460_v43 }
 0x7f2   :  { %v4588_v32 = vpop.eup %4587  ;;  %4195 = vmatprep.subr.bf16.mxu1 %v2472_v36 }
 0x7f3   :  { %4196 = vmatpush3.bf16.msra.mxu1 %v2472_v36  ;;  %v2463_v38 = vmul.f32 %v4588_v32, %v2461_v57  ;;  %v5714_v54 = vadd.f32 %v2464_v50, %v2462_v1  ;;  %v2603_v36 = vld [vmem:[#allocation2 + $0x30] sm:$0xff]  ;;  %v2604_v32 = vld [vmem:[#allocation2 + $0x38] sm:$0xff] }
 0x7f5   :  { %v5716_v22 = vadd.f32 %v2465_v6, %v2463_v38  ;;  %2470 = vst.msk [vmem:[#allocation3 + $0x30] sm:$0xff] %vm287_vm1, %v5714_v54 }
 0x7f7   :  { %2471 = vst.msk [vmem:[#allocation3 + $0x38] sm:$0xff] %vm287_vm1, %v5716_v22  ;;  %v2473_v13 = vpack.c.bf16 %v5716_v22, %v5714_v54 }
 0x7f9   :  { %4197 = vmatprep.subr.bf16.mxu1 %v2473_v13 }
 0x7fa   :  { %4198 = vmatpush3.bf16.msra.mxu1 %v2473_v13 }
 0x7fb   :  { %4219 = vmatprep.subr.bf16.mxu1 %v2806_v19 }
 0x7fc   :  { %v2804_v28 = vld [vmem:[#allocation3 + $0x30] sm:$0xff] }
 0x7fd   :  { %4200 = vmatmul.mubr.msk.bf16.vlgmr.msra.gmra.mrb[84].mxu1 %vm187_vm0, %v5649_v35  ;;  %v5739_v35 = vld [vmem:[%s6048_s6 + $0x8] sm:$0xff]  }
 0x7fe   :  { %4220 = vmatpush3.bf16.msra.mxu1 %v2806_v19  ;;  %v2805_v0 = vld [vmem:[#allocation3 + $0x38] sm:$0xff]  ;;  %4203 = vmatprep.mubr.msk.bf16.mxu1 %vm187_vm0, %v5656_v41 }
 0x7ff   :  { %v2807_v29 = vpack.c.bf16 %v2805_v0, %v2804_v28  ;;  %v2959_v41 = vld [vmem:[#allocation3 + $0x78] sm:$0xff]  ;;  %v5761_v28 = vpop.permute.xlu0 %2676 }
 0x801   :  { %4221 = vmatprep.subr.bf16.mxu1 %v2807_v29 }
 0x802   :  { %4222 = vmatpush3.bf16.msra.mxu1 %v2807_v29  ;;  %v2605_v29 = vld [vmem:[#allocation2 + $0x40] sm:$0xff] }
 0x803   :  { %4235 = vmatprep.subr.bf16.mxu1 %v2960_v33 }
 0x805   :  { %4204 = vmatmul.mubr.msk.bf16.gmra.mrb[88].mxu1 %vm187_vm0, %v5663_v40  ;;  %v2961_v40 = vpack.c.bf16 %v2959_v41, %v2958_v63  ;;  %v5766_v41 = vpop.permute.xlu1 %2681 }
 0x806   :  { %4207 = vmatprep.mubr.msk.bf16.mxu1 %vm187_vm0, %v5670_v62  ;;  %v3110_v62 = vld [vmem:[#allocation3 + $0xa0] sm:$0xff] }
 0x80d   :  { %4208 = vmatmul.mubr.msk.bf16.gmra.mrb[92].mxu1 %vm187_vm0, %v5677_v44  ;;  %v3114_v44 = vpack.c.bf16 %v3111_v61, %v3110_v62 }
 0x80e   :  { %4223 = vmatprep.mubr.msk.bf16.mxu1 %vm187_vm0, %v5684_v30 }
 0x815   :  { %4224 = vmatmul.mubr.msk.bf16.vlgmr.msra.gmra.mrb[96].mxu1 %vm187_vm0, %v5739_v35 }
 0x816   :  { %4236 = vmatpush3.bf16.msra.mxu1 %v2960_v33  ;;  %4239 = vmatprep.mubr.msk.bf16.mxu1 %vm187_vm0, %v5684_v30 }
 0x817   :  { %4237 = vmatprep.subr.bf16.mxu1 %v2961_v40 }
 0x81a   :  { %4238 = vmatpush3.bf16.msra.mxu1 %v2961_v40 }
 0x81b   :  { %4251 = vmatprep.subr.bf16.mxu1 %v3114_v44 }
 0x81d   :  { %4240 = vmatmul.mubr.msk.bf16.vlgmr.msra.gmra.mrb[100].mxu1 %vm187_vm0, %v5739_v35 }
 0x81e   :  { %4252 = vmatpush3.bf16.msra.mxu1 %v3114_v44  ;;  %4255 = vmatprep.mubr.msk.bf16.mxu1 %vm187_vm0, %v5684_v30  ;;  %v2606_v44 = vld [vmem:[#allocation2 + $0x48] sm:$0xff] }
 0x81f   :  { %4253 = vmatprep.subr.bf16.mxu1 %v3115_v7 }
 0x822   :  { %4254 = vmatpush3.bf16.msra.mxu1 %v3115_v7  ;;  %v5769_v7 = vpop.permute.xlu0 %2686 }
 0x825   :  { %4256 = vmatmul.mubr.msk.bf16.vlgmr.msra.gmra.mrb[104].mxu1 %vm187_vm0, %v5739_v35 }
 0x826   :  { %4271 = vmatprep.mubr.msk.bf16.mxu1 %vm187_vm0, %v5684_v30 }
 0x8d0   :  { %v4201_v18 = vpop.f32.mrb[84].mxu1 }
 0x8d1   :  { %v2517_v17 = vadd.f32 %v4201_v18, %v5128_v10  ;;  %v2508_v39 = vpop.f32.mrb[85].mxu1 }
 0x8d2   :  { %v2509_v20 = vadd.f32 %v2508_v39, %v5112_v2  ;;  %v4202_v53 = vpop.f32.mrb[86].mxu1 }
 0x8d3   :  { %v2575_v59 = vadd.f32 %v2557_v58, %v2517_v17  ;;  %v2511_v21 = vpop.f32.mrb[87].mxu1  ;;  %v2520_v34 = vadd.f32 %v4202_v53, %v5130_v11  ;;  %v5772_v53 = vpop.permute.xlu1 %2691 }
 0x8d4   :  { %v2561_v48 = vadd.f32 %v2555_v60, %v2509_v20  ;;  %v2512_v45 = vadd.f32 %v2511_v21, %v5114_v3 }
 0x8d5   :  { %v3774_v47 = vmul.f32 -1.442695, %v2575_v59  ;;  %v2576_v10 = vadd.f32 %v2558_v51, %v2520_v34 }
 0x8d6   :  { %v3772_v27 = vmul.f32 -1.442695, %v2561_v48  ;;  %v2562_v55 = vadd.f32 %v2556_v42, %v2512_v45 }
 0x8d7   :  { %4589 = vpow2.f32 %v3774_v47  ;;  %v3775_v50 = vmul.f32 -1.442695, %v2576_v10 }
 0x8d8   :  { %4591 = vpow2.f32 %v3772_v27  ;;  %v3773_v31 = vmul.f32 -1.442695, %v2562_v55  ;;  %v4205_v43 = vpop.f32.mrb[88].mxu1 }
 0x8d9   :  { %v2533_v2 = vadd.f32 %v4205_v43, %v5116_v4  ;;  %v2524_v16 = vpop.f32.mrb[89].mxu1 }
 0x8da   :  { %4593 = vpow2.f32 %v3773_v31  ;;  %v4206_v57 = vpop.f32.mrb[90].mxu1  ;;  %v2525_v27 = vadd.f32 %v2524_v16, %v5344_v52  ;;  %v5780_v52 = vpop.permute.xlu0 %2765  ;;  %v2560_v16 = vld [vmem:[#allocation2 + $0x2c8] sm:$0xff] }
 0x8db   :  { %v2609_v1 = vadd.f32 %v2603_v36, %v2533_v2  ;;  %v2536_v11 = vadd.f32 %v4206_v57, %v5118_v5  ;;  %v2527_v3 = vpop.f32.mrb[91].mxu1  ;;  %v2559_v2 = vld [vmem:[#allocation2 + $0x2c0] sm:$0xff] }
 0x8dc   :  { %v2528_v10 = vadd.f32 %v2527_v3, %v5347_v9 }
 0x8dd   :  { %v3776_v38 = vmul.f32 -1.442695, %v2609_v1  ;;  %v2610_v6 = vadd.f32 %v2604_v32, %v2536_v11 }
 0x8df   :  { %4595 = vpow2.f32 %v3776_v38  ;;  %v3777_v46 = vmul.f32 -1.442695, %v2610_v6 }
 0x8e0   :  { %4597 = vpow2.f32 %v3775_v50  ;;  %v5759_v13 = vpop.f32.mrb[92].mxu1 }
 0x8e1   :  { %v4590_v25 = vpop.eup %4589  ;;  %4599 = vpow2.f32 %v3777_v46  ;;  %v2540_v4 = vpop.f32.mrb[93].mxu1 }
 0x8e2   :  { %v4592_v19 = vpop.eup %4591  ;;  %v2541_v0 = vadd.f32 %v2540_v4, %v5132_v12  ;;  %v5764_v8 = vpop.f32.mrb[94].mxu1  ;;  %v2583_v61 = vadd.f32 1.0, %v4590_v25 }
 0x8e3   :  { %v2569_v5 = vadd.f32 1.0, %v4592_v19  ;;  %v2543_v56 = vpop.f32.mrb[95].mxu1  ;;  %v2549_v19 = vadd.f32 %v5759_v13, %v5350_v23 }
 0x8e4   :  { %v4594_v33 = vpop.eup %4593  ;;  %v2623_v63 = vadd.f32 %v2605_v29, %v2541_v0  ;;  %v2544_v40 = vadd.f32 %v2543_v56, %v5134_v14  ;;  %v5786_v56 = vpop.permute.xlu1 %2770 }
 0x8e5   :  { %4601 = vrcp.f32 %v2569_v5  ;;  %v2570_v62 = vadd.f32 1.0, %v4594_v33 }
 0x8e6   :  { %v3778_v37 = vmul.f32 -1.442695, %v2623_v63  ;;  %v2624_v24 = vadd.f32 %v2606_v44, %v2544_v40  ;;  %v2607_v44 = vld [vmem:[#allocation2 + $0x50] sm:$0xff] }
 0x8e7   :  { %4603 = vrcp.f32 %v2570_v62 }
 0x8e8   :  { %4605 = vpow2.f32 %v3778_v37  ;;  %v3779_v12 = vmul.f32 -1.442695, %v2624_v24  ;;  %v4225_v18 = vpop.f32.mrb[96].mxu1  ;;  %v5792_v24 = vpop.permute.xlu0 %2775 }
 0x8e9   :  { %v4596_v17 = vpop.eup %4595  ;;  %4607 = vrcp.f32 %v2583_v61  ;;  %v2851_v39 = vadd.f32 %v4225_v18, %v5769_v7  ;;  %v2842_v58 = vpop.f32.mrb[97].mxu1  ;;  %v2552_v61 = vadd.f32 %v5764_v8, %v5353_v26 }
 0x8ea   :  { %v4598_v20 = vpop.eup %4597  ;;  %v2617_v14 = vadd.f32 1.0, %v4596_v17  ;;  %4609 = vpow2.f32 %v3779_v12  ;;  %v2843_v59 = vadd.f32 %v2842_v58, %v5761_v28  ;;  %v4226_v60 = vpop.f32.mrb[98].mxu1  ;;  %v2608_v58 = vld [vmem:[#allocation2 + $0x58] sm:$0xff] }
 0x8eb   :  { %v4600_v21 = vpop.eup %4599  ;;  %4611 = vtanh.f32 %v2851_v39  ;;  %v2854_v48 = vadd.f32 %v4226_v60, %v5772_v53  ;;  %v2845_v34 = vpop.f32.mrb[99].mxu1  ;;  %v2584_v42 = vadd.f32 1.0, %v4598_v20 }
 0x8ec   :  { %4613 = vrcp.f32 %v2617_v14  ;;  %v2618_v45 = vadd.f32 1.0, %v4600_v21  ;;  %v2846_v47 = vadd.f32 %v2845_v34, %v5766_v41  ;;  %v5798_v34 = vpop.permute.xlu1 %2780 }
 0x8ed   :  { %4615 = vtanh.f32 %v2843_v59 }
 0x8ee   :  { %4617 = vrcp.f32 %v2618_v45 }
 0x8ef   :  { %v4602_v55 = vpop.eup %4601  ;;  %4619 = vtanh.f32 %v2854_v48 }
 0x8f0   :  { %v2589_v51 = vmul.f32 %v4602_v55, %v2525_v27  ;;  %4621 = vtanh.f32 %v2846_v47  ;;  %v4241_v31 = vpop.f32.mrb[100].mxu1 }
 0x8f1   :  { %v4604_v43 = vpop.eup %4603  ;;  %v3005_v36 = vadd.f32 %v4241_v31, %v5769_v7  ;;  %v2996_v57 = vpop.f32.mrb[101].mxu1  ;;  %4623 = vrcp.f32 %v2584_v42 }
 0x8f2   :  { %v4606_v1 = vpop.eup %4605  ;;  %v2591_v11 = vadd.f32 %v2589_v51, %v2559_v2  ;;  %v2590_v50 = vmul.f32 %v4604_v43, %v2528_v10  ;;  %v4242_v32 = vpop.f32.mrb[102].mxu1  ;;  %v2997_v25 = vadd.f32 %v2996_v57, %v5761_v28 }
 0x8f3   :  { %v4608_v38 = vpop.eup %4607  ;;  %v2631_v6 = vadd.f32 1.0, %v4606_v1  ;;  %4625 = vtanh.f32 %v3005_v36  ;;  %v2999_v46 = vpop.f32.mrb[103].mxu1  ;;  %v3008_v5 = vadd.f32 %v4242_v32, %v5772_v53 }
 0x8f4   :  { %v4610_v9 = vpop.eup %4609  ;;  %4627 = vtanh.f32 %v2591_v11  ;;  %v2592_v3 = vadd.f32 %v2590_v50, %v2560_v16  ;;  %v3000_v33 = vadd.f32 %v2999_v46, %v5766_v41  ;;  %v2595_v45 = vsub.f32 1.0, %v4608_v38 }
 0x8f5   :  { %v4612_v4 = vpop.eup %4611  ;;  %4629 = vrcp.f32 %v2631_v6  ;;  %v2632_v0 = vadd.f32 1.0, %v4610_v9  ;;  %v2599_v43 = vmul.f32 %v4608_v38, %v5702_v49 }
 0x8f6   :  { %v4614_v29 = vpop.eup %4613  ;;  %4631 = vtanh.f32 %v2592_v3  ;;  %v2863_v20 = vmul.f32 %v4612_v4, %v5792_v24 }
 0x8f7   :  { %v4616_v63 = vpop.eup %4615  ;;  %v2637_v40 = vmul.f32 %v4614_v29, %v2549_v19  ;;  %4633 = vrcp.f32 %v2632_v0 }
 0x8f8   :  { %v4618_v62 = vpop.eup %4617  ;;  %v2861_v23 = vmul.f32 %v4616_v63, %v5780_v52  ;;  %4635 = vtanh.f32 %v2997_v25  ;;  %v4257_v13 = vpop.f32.mrb[104].mxu1  ;;  %v2868_v11 = vsel %vm287_vm1, %v2863_v20, 0.0 }
 0x8f9   :  { %v4620_v37 = vpop.eup %4619  ;;  %v2639_v12 = vadd.f32 %v2637_v40, %v2607_v44  ;;  %v2638_v18 = vmul.f32 %v4618_v62, %v2552_v61  ;;  %4637 = vtanh.f32 %v3008_v5  ;;  %v3150_v17 = vpop.f32.mrb[105].mxu1  ;;  %v3159_v60 = vadd.f32 %v4257_v13, %v5769_v7 }
 0x8fa   :  { %v4622_v39 = vpop.eup %4621  ;;  %4639 = vtanh.f32 %v3000_v33  ;;  %v3151_v26 = vadd.f32 %v3150_v17, %v5761_v28  ;;  %v4258_v8 = vpop.f32.mrb[106].mxu1  ;;  %v2865_v47 = vsel %vm287_vm1, %v2861_v23, 0.0  ;;  %v2864_v55 = vmul.f32 %v4620_v37, %v5798_v34 }
 0x8fb   :  { %4641 = vtanh.f32 %v2639_v12  ;;  %v2640_v14 = vadd.f32 %v2638_v18, %v2608_v58  ;;  %v2862_v59 = vmul.f32 %v4622_v39, %v5786_v56  ;;  %v3153_v21 = vpop.f32.mrb[107].mxu1  ;;  %v4624_v48 = vpop.eup %4623  ;;  %v3162_v42 = vadd.f32 %v4258_v8, %v5772_v53 }
 0x8fc   :  { %v3154_v10 = vadd.f32 %v3153_v21, %v5766_v41  ;;  %v2596_v57 = vsub.f32 1.0, %v4624_v48  ;;  %v2600_v32 = vmul.f32 %v4624_v48, %v5704_v15  ;;  %v2870_v3 = vsel %vm287_vm1, %v2864_v55, 0.0 }
 0x8fd   :  { %v4626_v27 = vpop.eup %4625  ;;  %4643 = vtanh.f32 %v2640_v14  ;;  %v2866_v51 = vsel %vm287_vm1, %v2862_v59, 0.0 }
 0x8fe   :  { %v4628_v31 = vpop.eup %4627  ;;  %v2867_v2 = vadd.f32 %v2866_v51, %v2865_v47  ;;  %4645 = vtanh.f32 %v3151_v26  ;;  %v3017_v29 = vmul.f32 %v4626_v27, %v5792_v24 }
 0x8ff   :  { %v4630_v36 = vpop.eup %4629  ;;  %v2597_v1 = vmul.f32 %v4628_v31, %v2595_v45  ;;  %4647 = vtanh.f32 %v3159_v60  ;;  %v5841_v31 = vld [vmem:[#allocation3 + $0xf0] sm:$0xff] }
 0x900   :  { %v4632_v50 = vpop.eup %4631  ;;  %v2869_v16 = vadd.f32 %v2868_v11, %v2867_v2  ;;  %4649 = vtanh.f32 %v3162_v42  ;;  %v2643_v5 = vsub.f32 1.0, %v4630_v36  ;;  %v2647_v40 = vmul.f32 %v4630_v36, %v5714_v54  ;;  %v5834_v42 = vld [vmem:[#allocation3 + $0xf8] sm:$0xff] }
 0x901   :  { %v4634_v6 = vpop.eup %4633  ;;  %v2601_v46 = vadd.f32 %v2599_v43, %v2597_v1  ;;  %v2598_v9 = vmul.f32 %v4632_v50, %v2596_v57  ;;  %4651 = vtanh.f32 %v3154_v10  ;;  %v3022_v20 = vsel %vm287_vm1, %v3017_v29, 0.0 }
 0x902   :  { %v4636_v49 = vpop.eup %4635  ;;  %v5809_v38 = vadd.f32 %v2870_v3, %v2869_v16  ;;  %v2644_v61 = vsub.f32 1.0, %v4634_v6  ;;  %v2648_v17 = vmul.f32 %v4634_v6, %v5716_v22  ;;  %v3269_v2 = vpack.c.bf16 %v5834_v42, %v5841_v31  ;;  %v5853_v16 = vld [vmem:[#allocation3 + $0x48] sm:$0xff]  ;;  %v5863_v3 = vld [vmem:[#allocation3 + $0x58] sm:$0xff] }
 0x903   :  { %v4638_v25 = vpop.eup %4637  ;;  %2651 = vst.msk [vmem:[#allocation3 + $0xe0] sm:$0xff] %vm287_vm1, %v2601_v46  ;;  %v2602_v4 = vadd.f32 %v2600_v32, %v2598_v9  ;;  %v3015_v19 = vmul.f32 %v4636_v49, %v5780_v52  ;;  %v5857_v46 = vld [vmem:[#allocation3 + $0x40] sm:$0xff]  ;;  %v5865_v49 = vld [vmem:[#allocation3 + $0x50] sm:$0xff] }
 0x904   :  { %v4640_v0 = vpop.eup %4639  ;;  %v3018_v23 = vmul.f32 %v4638_v25, %v5798_v34  ;;  %v2883_v9 = vpack.c.bf16 %v5853_v16, %v5857_v46  ;;  %v2884_v25 = vpack.c.bf16 %v5863_v3, %v5865_v49 }
 0x905   :  { %v4642_v15 = vpop.eup %4641  ;;  %2652 = vst.msk [vmem:[#allocation3 + $0xe8] sm:$0xff] %vm287_vm1, %v2602_v4  ;;  %v3016_v33 = vmul.f32 %v4640_v0, %v5786_v56  ;;  %v3019_v44 = vsel %vm287_vm1, %v3015_v19, 0.0  ;;  %v5871_v4 = vld [vmem:[#allocation3 + $0x88] sm:$0xff]  ;;  %v5875_v19 = vld [vmem:[#allocation3 + $0x80] sm:$0xff] }
 0x906   :  { %v2645_v63 = vmul.f32 %v4642_v15, %v2643_v5  ;;  %v3024_v60 = vsel %vm287_vm1, %v3018_v23, 0.0  ;;  %v3037_v0 = vpack.c.bf16 %v5871_v4, %v5875_v19  ;;  %v5879_v5 = vld [vmem:[#allocation3 + $0x98] sm:$0xff]  ;;  %v5881_v15 = vld [vmem:[#allocation3 + $0x90] sm:$0xff] }
 0x907   :  { %v4644_v62 = vpop.eup %4643  ;;  %v3020_v13 = vsel %vm287_vm1, %v3016_v33, 0.0  ;;  %v3038_v29 = vpack.c.bf16 %v5879_v5, %v5881_v15  ;;  %v5887_v33 = vld [vmem:[#allocation3 + $0xc8] sm:$0xff] }
 0x908   :  { %v4646_v37 = vpop.eup %4645  ;;  %v2649_v12 = vadd.f32 %v2647_v40, %v2645_v63  ;;  %v2646_v18 = vmul.f32 %v4644_v62, %v2644_v61  ;;  %v3021_v39 = vadd.f32 %v3020_v13, %v3019_v44  ;;  %v5891_v63 = vld [vmem:[#allocation3 + $0xc0] sm:$0xff]  ;;  %v5895_v61 = vld [vmem:[#allocation3 + $0xd8] sm:$0xff]  ;;  %v5897_v62 = vld [vmem:[#allocation3 + $0xd0] sm:$0xff] }
 0x909   :  { %v4648_v58 = vpop.eup %4647  ;;  %v3169_v14 = vmul.f32 %v4646_v37, %v5780_v52  ;;  %v3191_v40 = vpack.c.bf16 %v5887_v33, %v5891_v63  ;;  %v3192_v44 = vpack.c.bf16 %v5895_v61, %v5897_v62 }
 0x90a   :  { %v4650_v26 = vpop.eup %4649  ;;  %2653 = vst.msk [vmem:[#allocation3 + $0x10] sm:$0xff] %vm287_vm1, %v2649_v12  ;;  %v2650_v54 = vadd.f32 %v2648_v17, %v2646_v18  ;;  %v3023_v8 = vadd.f32 %v3022_v20, %v3021_v39  ;;  %v3171_v22 = vmul.f32 %v4648_v58, %v5792_v24  ;;  %v5830_v45 = vld [vmem:[#allocation3 + $0xe0] sm:$0xff] }
 0x90b   :  { %v4652_v59 = vpop.eup %4651  ;;  %v3173_v55 = vsel %vm287_vm1, %v3169_v14, 0.0  ;;  %v3172_v51 = vmul.f32 %v4650_v26, %v5798_v34 }
 0x90c   :  { %2654 = vst.msk [vmem:[#allocation3 + $0x18] sm:$0xff] %vm287_vm1, %v2650_v54  ;;  %v5826_v21 = vadd.f32 %v3024_v60, %v3023_v8  ;;  %v3170_v48 = vmul.f32 %v4652_v59, %v5786_v56  ;;  %v5832_v47 = vld [vmem:[#allocation3 + $0xe8] sm:$0xff]  ;;  %v3176_v36 = vsel %vm287_vm1, %v3171_v22, 0.0  ;;  %v2872_v60 = vrot.slane %v5809_v38, 4 }
 0x90d   :  { %v3268_v27 = vpack.c.bf16 %v5832_v47, %v5830_v45  ;;  %v3178_v1 = vsel %vm287_vm1, %v3172_v51, 0.0 }
 0x90e   :  { %v3174_v10 = vsel %vm287_vm1, %v3170_v48, 0.0 }
 0x90f   :  { %v3175_v43 = vadd.f32 %v3174_v10, %v3173_v55  ;;  %4267 = vmatprep.subr.bf16.mxu1 %v3268_v27 }
 0x910   :  { %4268 = vmatpush3.bf16.msra.mxu1 %v3268_v27 }
 0x911   :  { %v3177_v57 = vadd.f32 %v3176_v36, %v3175_v43  ;;  %4269 = vmatprep.subr.bf16.mxu1 %v3269_v2  ;;  %v5849_v50 = vld [vmem:[#allocation3 + $0x10] sm:$0xff] }
 0x913   :  { %v5847_v11 = vadd.f32 %v3178_v1, %v3177_v57  ;;  %v5851_v32 = vld [vmem:[#allocation3 + $0x18] sm:$0xff]  ;;  %v2873_v1 = vadd.f32 %v2872_v60, %v5809_v38 }
 0x914   :  { %4270 = vmatpush3.bf16.msra.mxu1 %v3269_v2  ;;  %v2673_v6 = vpack.c.bf16 %v5851_v32, %v5849_v50 }
 0x916   :  { %4213 = vmatprep.subr.bf16.mxu0 %v2673_v6 }
 0x917   :  { %4214 = vmatpush3.bf16.msra.mxu0 %v2673_v6  ;;  %4272 = vmatmul.mubr.msk.bf16.vlgmr.msra.gmra.mrb[108].mxu1 %vm187_vm0, %v5739_v35 }
 0x918   :  { %4227 = vmatprep.subr.bf16.mxu0 %v2883_v9 }
 0x91a   :  { %4216 = vmatmul.mubr.msk.bf16.vlgmr.msra.gmra.mrb[96].mxu0 %vm187_vm0, %v5739_v35 }
 0x91b   :  { %4228 = vmatpush3.bf16.msra.mxu0 %v2883_v9  ;;  %4231 = vmatprep.mubr.msk.bf16.mxu0 %vm187_vm0, %v5684_v30 }
 0x91c   :  { %4229 = vmatprep.subr.bf16.mxu0 %v2884_v25 }
 0x91f   :  { %4230 = vmatpush3.bf16.msra.mxu0 %v2884_v25 }
 0x920   :  { %4243 = vmatprep.subr.bf16.mxu0 %v3037_v0 }
 0x922   :  { %4232 = vmatmul.mubr.msk.bf16.vlgmr.msra.gmra.mrb[100].mxu0 %vm187_vm0, %v5739_v35 }
 0x923   :  { %4244 = vmatpush3.bf16.msra.mxu0 %v3037_v0  ;;  %4247 = vmatprep.mubr.msk.bf16.mxu0 %vm187_vm0, %v5684_v30 }
 0x924   :  { %4245 = vmatprep.subr.bf16.mxu0 %v3038_v29 }
 0x927   :  { %4246 = vmatpush3.bf16.msra.mxu0 %v3038_v29 }
 0x928   :  { %4259 = vmatprep.subr.bf16.mxu0 %v3191_v40 }
 0x92a   :  { %4248 = vmatmul.mubr.msk.bf16.vlgmr.msra.gmra.mrb[104].mxu0 %vm187_vm0, %v5739_v35 }
 0x92b   :  { %4260 = vmatpush3.bf16.msra.mxu0 %v3191_v40  ;;  %4263 = vmatprep.mubr.msk.bf16.mxu0 %vm187_vm0, %v5684_v30 }
 0x92c   :  { %4261 = vmatprep.subr.bf16.mxu0 %v3192_v44 }
 0x92f   :  { %4262 = vmatpush3.bf16.msra.mxu0 %v3192_v44 }
 0x932   :  { %4264 = vmatmul.mubr.msk.bf16.vlgmr.msra.gmra.mrb[108].mxu0 %vm187_vm0, %v5739_v35 }
 0x9ea   :  { %v4273_v23 = vpop.f32.mrb[108].mxu1 }
 0x9eb   :  { %v3313_v13 = vadd.f32 %v4273_v23, %v5769_v7  ;;  %v3304_v37 = vpop.f32.mrb[109].mxu1 }
 0x9ec   :  { %v3305_v12 = vadd.f32 %v3304_v37, %v5761_v28  ;;  %v4274_v18 = vpop.f32.mrb[110].mxu1  ;;  %v3026_v37 = vrot.slane %v5826_v21, 4 }
 0x9ed   :  { %4653 = vtanh.f32 %v3313_v13  ;;  %v3316_v17 = vadd.f32 %v4274_v18, %v5772_v53  ;;  %v4217_v39 = vpop.f32.mrb[96].mxu0  ;;  %v3307_v58 = vpop.f32.mrb[111].mxu1  ;;  %v2874_v13 = vrot.slane %v2873_v1, 2 }
 0x9ee   :  { %4655 = vtanh.f32 %v3305_v12  ;;  %v2753_v30 = vadd.f32 %v4217_v39, %v5769_v7  ;;  %v3308_v20 = vadd.f32 %v3307_v58, %v5766_v41  ;;  %v2744_v26 = vpop.f32.mrb[97].mxu0 }
 0x9ef   :  { %4657 = vtanh.f32 %v3316_v17  ;;  %v2745_v35 = vadd.f32 %v2744_v26, %v5761_v28  ;;  %v4218_v54 = vpop.f32.mrb[98].mxu0 }
 0x9f0   :  { %4659 = vtanh.f32 %v2753_v30  ;;  %v2756_v8 = vadd.f32 %v4218_v54, %v5772_v53  ;;  %v2747_v14 = vpop.f32.mrb[99].mxu0 }
 0x9f1   :  { %4661 = vtanh.f32 %v3308_v20  ;;  %v2748_v59 = vadd.f32 %v2747_v14, %v5766_v41 }
 0x9f2   :  { %4663 = vtanh.f32 %v2745_v35 }
 0x9f3   :  { %4665 = vtanh.f32 %v2756_v8 }
 0x9f4   :  { %4667 = vtanh.f32 %v2748_v59 }
 0x9f5   :  { %v4233_v22 = vpop.f32.mrb[100].mxu0 }
 0x9f6   :  { %v2928_v48 = vadd.f32 %v4233_v22, %v5769_v7  ;;  %v2919_v27 = vpop.f32.mrb[101].mxu0 }
 0x9f7   :  { %v4654_v55 = vpop.eup %4653  ;;  %v2920_v51 = vadd.f32 %v2919_v27, %v5761_v28  ;;  %v4234_v10 = vpop.f32.mrb[102].mxu0 }
 0x9f8   :  { %v4656_v43 = vpop.eup %4655  ;;  %4669 = vtanh.f32 %v2928_v48  ;;  %v2931_v2 = vadd.f32 %v4234_v10, %v5772_v53  ;;  %v2922_v36 = vpop.f32.mrb[103].mxu0  ;;  %v3325_v6 = vmul.f32 %v4654_v55, %v5792_v24 }
 0x9f9   :  { %v4658_v57 = vpop.eup %4657  ;;  %4671 = vtanh.f32 %v2920_v51  ;;  %v2923_v9 = vadd.f32 %v2922_v36, %v5766_v41  ;;  %v3323_v0 = vmul.f32 %v4656_v43, %v5780_v52 }
 0x9fa   :  { %v4660_v25 = vpop.eup %4659  ;;  %4673 = vtanh.f32 %v2931_v2  ;;  %v3330_v38 = vsel %vm287_vm1, %v3325_v6, 0.0  ;;  %v3326_v58 = vmul.f32 %v4658_v57, %v5798_v34  ;;  %v2875_v6 = vadd.f32 %v2874_v13, %v2873_v1 }
 0x9fb   :  { %v4662_v29 = vpop.eup %4661  ;;  %4675 = vtanh.f32 %v2923_v9  ;;  %v3327_v39 = vsel %vm287_vm1, %v3323_v0, 0.0  ;;  %v2785_v35 = vmul.f32 %v4660_v25, %v5792_v24 }
 0x9fc   :  { %v4664_v40 = vpop.eup %4663  ;;  %v3324_v44 = vmul.f32 %v4662_v29, %v5786_v56  ;;  %v3332_v2 = vsel %vm287_vm1, %v3326_v58, 0.0  ;;  %v2876_v58 = vrot.slane %v2875_v6, 1 }
 0x9fd   :  { %v4666_v23 = vpop.eup %4665  ;;  %v2783_v12 = vmul.f32 %v4664_v40, %v5780_v52  ;;  %v4249_v18 = vpop.f32.mrb[104].mxu0  ;;  %v2790_v9 = vsel %vm287_vm1, %v2785_v35, 0.0 }
 0x9fe   :  { %v4668_v17 = vpop.eup %4667  ;;  %v3328_v30 = vsel %vm287_vm1, %v3324_v44, 0.0  ;;  %v3082_v20 = vadd.f32 %v4249_v18, %v5769_v7  ;;  %v3073_v26 = vpop.f32.mrb[105].mxu0  ;;  %v2786_v22 = vmul.f32 %v4666_v23, %v5798_v34  ;;  %v3027_v23 = vadd.f32 %v3026_v37, %v5826_v21 }
 0x9ff   :  { %v3329_v54 = vadd.f32 %v3328_v30, %v3327_v39  ;;  %v2784_v8 = vmul.f32 %v4668_v17, %v5786_v56  ;;  %v3074_v14 = vadd.f32 %v3073_v26, %v5761_v28  ;;  %v4250_v59 = vpop.f32.mrb[106].mxu0  ;;  %v2787_v60 = vsel %vm287_vm1, %v2783_v12, 0.0 }
 0xa00   :  { %4677 = vtanh.f32 %v3082_v20  ;;  %v3085_v48 = vadd.f32 %v4250_v59, %v5772_v53  ;;  %v3076_v27 = vpop.f32.mrb[107].mxu0 }
 0xa01   :  { %v3331_v55 = vadd.f32 %v3330_v38, %v3329_v54  ;;  %v2788_v51 = vsel %vm287_vm1, %v2784_v8, 0.0  ;;  %4679 = vtanh.f32 %v3074_v14  ;;  %v3077_v10 = vadd.f32 %v3076_v27, %v5766_v41 }
 0xa02   :  { %v4670_v43 = vpop.eup %4669  ;;  %v2789_v36 = vadd.f32 %v2788_v51, %v2787_v60  ;;  %4681 = vtanh.f32 %v3085_v48  ;;  %v2792_v38 = vsel %vm287_vm1, %v2786_v22, 0.0  ;;  %v3028_v14 = vrot.slane %v3027_v23, 2 }
 0xa03   :  { %v4672_v57 = vpop.eup %4671  ;;  %v5941_v25 = vadd.f32 %v3332_v2, %v3331_v55  ;;  %4683 = vtanh.f32 %v3077_v10  ;;  %v2940_v17 = vmul.f32 %v4670_v43, %v5792_v24 }
 0xa04   :  { %v4674_v0 = vpop.eup %4673  ;;  %v2791_v29 = vadd.f32 %v2790_v9, %v2789_v36  ;;  %v2938_v40 = vmul.f32 %v4672_v57, %v5780_v52  ;;  %v3029_v57 = vadd.f32 %v3028_v14, %v3027_v23 }
 0xa05   :  { %v4676_v44 = vpop.eup %4675  ;;  %v4265_v12 = vpop.f32.mrb[108].mxu0  ;;  %v2941_v20 = vmul.f32 %v4674_v0, %v5798_v34  ;;  %v2945_v27 = vsel %vm287_vm1, %v2940_v17, 0.0 }
 0xa06   :  { %v2793_v18 = vadd.f32 %v2792_v38, %v2791_v29  ;;  %v2939_v1 = vmul.f32 %v4676_v44, %v5786_v56  ;;  %v3236_v13 = vadd.f32 %v4265_v12, %v5769_v7  ;;  %v3227_v39 = vpop.f32.mrb[109].mxu0  ;;  %v2942_v30 = vsel %vm287_vm1, %v2938_v40, 0.0  ;;  %v5957_v7 = vld [vmem:[%s6049_s1] sm:$0xff] }
 0xa07   :  { %v3228_v26 = vadd.f32 %v3227_v39, %v5761_v28  ;;  %v4266_v35 = vpop.f32.mrb[110].mxu0  ;;  %v3180_v28 = vrot.slane %v5847_v11, 4  ;;  %vm2800_vm2 = vcmp.lt.f32.partialorder %v5957_v7, 0.5  ;;  %v2947_v2 = vsel %vm287_vm1, %v2941_v20, 0.0 }
 0xa08   :  { %v2794_v21 = vrot.slane %v2793_v18, 4  ;;  %v2943_v37 = vsel %vm287_vm1, %v2939_v1, 0.0  ;;  %4685 = vtanh.f32 %v3236_v13  ;;  %v3239_v54 = vadd.f32 %v4266_v35, %v5772_v53  ;;  %v3230_v8 = vpop.f32.mrb[111].mxu0 }
 0xa09   :  { %v2944_v59 = vadd.f32 %v2943_v37, %v2942_v30  ;;  %4687 = vtanh.f32 %v3228_v26  ;;  %v3231_v60 = vadd.f32 %v3230_v8, %v5766_v41  ;;  %v2877_v53 = vadd.f32 %v2876_v58, %v2875_v6 }
 0xa0a   :  { %v4678_v22 = vpop.eup %4677  ;;  %v2795_v48 = vadd.f32 %v2794_v21, %v2793_v18  ;;  %4689 = vtanh.f32 %v3239_v54  ;;  %v3181_v0 = vadd.f32 %v3180_v28, %v5847_v11  ;;  %v3030_v39 = vrot.slane %v3029_v57, 1 }
 0xa0b   :  { %v4680_v55 = vpop.eup %4679  ;;  %v2946_v51 = vadd.f32 %v2945_v27, %v2944_v59  ;;  %4691 = vtanh.f32 %v3231_v60  ;;  %v3094_v40 = vmul.f32 %v4678_v22, %v5792_v24  ;;  %v5970_v44 = vsel %vm2800_vm2, -1e+09, %v2877_v53 }
 0xa0c   :  { %v4682_v10 = vpop.eup %4681  ;;  %v2796_v43 = vrot.slane %v2795_v48, 2  ;;  %v3092_v36 = vmul.f32 %v4680_v55, %v5780_v52  ;;  %v3182_v58 = vrot.slane %v3181_v0, 2  ;;  %v3342_v35 = vrot.slane %v5970_v44, 1 }
 0xa0d   :  { %v4684_v41 = vpop.eup %4683  ;;  %v2948_v9 = vadd.f32 %v2947_v2, %v2946_v51  ;;  %v3095_v17 = vmul.f32 %v4682_v10, %v5798_v34  ;;  %v3099_v20 = vsel %vm287_vm1, %v3094_v40, 0.0  ;;  %v3334_v21 = vrot.slane %v5941_v25, 4 }
 0xa0e   :  { %v2797_v29 = vadd.f32 %v2796_v43, %v2795_v48  ;;  %v3093_v6 = vmul.f32 %v4684_v41, %v5786_v56  ;;  %v3096_v18 = vsel %vm287_vm1, %v3092_v36, 0.0  ;;  %v3031_v55 = vadd.f32 %v3030_v39, %v3029_v57 }
 0xa0f   :  { %v2949_v38 = vrot.slane %v2948_v9, 4  ;;  %v3101_v59 = vsel %vm287_vm1, %v3095_v17, 0.0  ;;  %v3183_v53 = vadd.f32 %v3182_v58, %v3181_v0  ;;  %v3335_v43 = vadd.f32 %v3334_v21, %v5941_v25 }
 0xa10   :  { %v2798_v12 = vrot.slane %v2797_v29, 1  ;;  %v3097_v23 = vsel %vm287_vm1, %v3093_v6, 0.0  ;;  %v3032_v57 = vsel %vm2800_vm2, -1e+09, %v3031_v55 }
 0xa11   :  { %v2950_v1 = vadd.f32 %v2949_v38, %v2948_v9  ;;  %v3098_v13 = vadd.f32 %v3097_v23, %v3096_v18  ;;  %v3184_v0 = vrot.slane %v3183_v53, 1 }
 0xa12   :  { %v4686_v11 = vpop.eup %4685  ;;  %v2799_v30 = vadd.f32 %v2798_v12, %v2797_v29 }
 0xa13   :  { %v4688_v26 = vpop.eup %4687  ;;  %v2951_v37 = vrot.slane %v2950_v1, 2  ;;  %v3100_v54 = vadd.f32 %v3099_v20, %v3098_v13  ;;  %v3248_v51 = vmul.f32 %v4686_v11, %v5792_v24  ;;  %v3185_v11 = vadd.f32 %v3184_v0, %v3183_v53 }
 0xa14   :  { %v4690_v8 = vpop.eup %4689  ;;  %v5980_v14 = vsel %vm2800_vm2, -1e+09, %v2799_v30  ;;  %v3246_v60 = vmul.f32 %v4688_v26, %v5780_v52 }
 0xa15   :  { %v4692_v22 = vpop.eup %4691  ;;  %v3344_v28 = vmax.f32 %v5980_v14, %v3342_v35  ;;  %v2952_v48 = vadd.f32 %v2951_v37, %v2950_v1  ;;  %v3102_v27 = vadd.f32 %v3101_v59, %v3100_v54  ;;  %v3249_v9 = vmul.f32 %v4690_v8, %v5798_v34 }
 0xa16   :  { %v3247_v10 = vmul.f32 %v4692_v22, %v5786_v56  ;;  %v3250_v41 = vsel %vm287_vm1, %v3246_v60, 0.0  ;;  %v3253_v24 = vsel %vm287_vm1, %v3248_v51, 0.0  ;;  %v3336_v56 = vrot.slane %v3335_v43, 2 }
 0xa17   :  { %v2953_v2 = vrot.slane %v2952_v48, 1  ;;  %v3103_v36 = vrot.slane %v3102_v27, 4  ;;  %v3255_v34 = vsel %vm287_vm1, %v3249_v9, 0.0  ;;  %v3350_v1 = vrot.slane %v3032_v57, 3 }
 0xa18   :  { %v3251_v52 = vsel %vm287_vm1, %v3247_v10, 0.0  ;;  %v3337_v39 = vadd.f32 %v3336_v56, %v3335_v43  ;;  %v3186_v21 = vsel %vm2800_vm2, -1e+09, %v3185_v11 }
 0xa19   :  { %v2954_v29 = vadd.f32 %v2953_v2, %v2952_v48  ;;  %v3104_v40 = vadd.f32 %v3103_v36, %v3102_v27  ;;  %v3252_v6 = vadd.f32 %v3251_v52, %v3250_v41  ;;  %v3358_v22 = vrot.slane %v3186_v21, 5 }
 0xa1a   :  { %v3338_v37 = vrot.slane %v3337_v39, 1 }
 0xa1b   :  { %v2955_v25 = vsel %vm2800_vm2, -1e+09, %v2954_v29  ;;  %v3105_v38 = vrot.slane %v3104_v40, 2  ;;  %v3254_v12 = vadd.f32 %v3253_v24, %v3252_v6 }
 0xa1c   :  { %v3346_v18 = vrot.slane %v2955_v25, 2 }
 0xa1d   :  { %v3106_v17 = vadd.f32 %v3105_v38, %v3104_v40  ;;  %v3256_v23 = vadd.f32 %v3255_v34, %v3254_v12 }
 0xa1e   :  { %v3348_v13 = vmax.f32 %v3344_v28, %v3346_v18  ;;  %v3339_v28 = vadd.f32 %v3338_v37, %v3337_v39 }
 0xa1f   :  { %v3107_v58 = vrot.slane %v3106_v17, 1  ;;  %v3257_v30 = vrot.slane %v3256_v23, 4 }
 0xa20   :  { %v3352_v20 = vmax.f32 %v3348_v13, %v3350_v1  ;;  %v3340_v51 = vsel %vm2800_vm2, -1e+09, %v3339_v28 }
 0xa21   :  { %v3108_v26 = vadd.f32 %v3107_v58, %v3106_v17  ;;  %v3258_v35 = vadd.f32 %v3257_v30, %v3256_v23  ;;  %v3366_v2 = vrot.slane %v3340_v51, 7 }
 0xa23   :  { %v3109_v54 = vsel %vm2800_vm2, -1e+09, %v3108_v26  ;;  %v3259_v8 = vrot.slane %v3258_v35, 2 }
 0xa24   :  { %v3354_v59 = vrot.slane %v3109_v54, 4 }
 0xa25   :  { %v3260_v60 = vadd.f32 %v3259_v8, %v3258_v35 }
 0xa26   :  { %v3356_v48 = vmax.f32 %v3352_v20, %v3354_v59 }
 0xa27   :  { %v3261_v27 = vrot.slane %v3260_v60, 1 }
 0xa28   :  { %v3360_v55 = vmax.f32 %v3356_v48, %v3358_v22 }
 0xa29   :  { %v3262_v53 = vadd.f32 %v3261_v27, %v3260_v60 }
 0xa2b   :  { %v3263_v10 = vsel %vm2800_vm2, -1e+09, %v3262_v53 }
 0xa2c   :  { %v3362_v43 = vrot.slane %v3263_v10, 6 }
 0xa2e   :  { %v3364_v36 = vmax.f32 %v3360_v55, %v3362_v43 }
 0xa30   :  { %v3368_v41 = vmax.f32 %v3364_v36, %v3366_v2 }
 0xa32   :  { %v3369_v9 = vsub.f32 %v5980_v14, %v3368_v41  ;;  %v3373_v52 = vrot.slane %v3368_v41, 7  ;;  %v3378_v29 = vrot.slane %v3368_v41, 6  ;;  %v3383_v40 = vrot.slane %v3368_v41, 5 }
 0xa33   :  { %v3388_v6 = vrot.slane %v3368_v41, 4  ;;  %v3393_v0 = vrot.slane %v3368_v41, 3  ;;  %v3398_v24 = vrot.slane %v3368_v41, 2  ;;  %v3403_v56 = vrot.slane %v3368_v41, 1 }
 0xa34   :  { %v3370_v38 = vmul.f32 1.442695, %v3369_v9  ;;  %v3375_v12 = vsub.f32 %v5970_v44, %v3373_v52  ;;  %v3380_v18 = vsub.f32 %v2955_v25, %v3378_v29  ;;  %v3385_v34 = vsub.f32 %v3032_v57, %v3383_v40 }
 0xa35   :  { %v3390_v7 = vsub.f32 %v3109_v54, %v3388_v6  ;;  %v3395_v17 = vsub.f32 %v3186_v21, %v3393_v0  ;;  %v3400_v23 = vsub.f32 %v3263_v10, %v3398_v24  ;;  %v3405_v1 = vsub.f32 %v3340_v51, %v3403_v56 }
 0xa36   :  { %v3376_v13 = vmul.f32 1.442695, %v3375_v12  ;;  %v3381_v11 = vmul.f32 1.442695, %v3380_v18  ;;  %v3386_v39 = vmul.f32 1.442695, %v3385_v34  ;;  %4693 = vpow2.f32 %v3370_v38 }
 0xa37   :  { %v3391_v14 = vmul.f32 1.442695, %v3390_v7  ;;  %v3396_v58 = vmul.f32 1.442695, %v3395_v17  ;;  %v3401_v30 = vmul.f32 1.442695, %v3400_v23  ;;  %v3438_v41 = vlaneseq }
 0xa38   :  { %4695 = vpow2.f32 %v3376_v13  ;;  %v3406_v20 = vmul.f32 1.442695, %v3405_v1 }
 0xa39   :  { %4697 = vpow2.f32 %v3381_v11  ;;  %v3439_v9 = vshrl.u32 %v3438_v41, 7  ;;  %v4727_v41 = vld [vmem:[#allocation3 + $0x38] sm:$0xff] }
 0xa3a   :  { %4699 = vpow2.f32 %v3386_v39 }
 0xa3b   :  { %4701 = vpow2.f32 %v3391_v14  ;;  %v3440_v52 = vsub.s32 0, %v3439_v9  ;;  %v3456_v29 = vsub.s32 1, %v3439_v9  ;;  %v3471_v40 = vsub.s32 2, %v3439_v9 }
 0xa3c   :  { %4703 = vpow2.f32 %v3396_v58  ;;  %v3486_v6 = vsub.s32 3, %v3439_v9  ;;  %v3501_v24 = vsub.s32 4, %v3439_v9  ;;  %v3516_v56 = vsub.s32 5, %v3439_v9 }
 0xa3d   :  { %4705 = vpow2.f32 %v3401_v30  ;;  %v3531_v38 = vsub.s32 6, %v3439_v9  ;;  %v3546_v12 = vsub.s32 7, %v3439_v9 }
 0xa3e   :  { %4707 = vpow2.f32 %v3406_v20 }
 0xa40   :  { %v4694_v44 = vpop.eup %4693 }
 0xa42   :  { %v4696_v57 = vpop.eup %4695 }
 0xa43   :  { %v4698_v25 = vpop.eup %4697  ;;  %v3409_v26 = vrot.slane %v4696_v57, 1 }
 0xa44   :  { %v4700_v35 = vpop.eup %4699  ;;  %v3413_v37 = vrot.slane %v4698_v25, 2 }
 0xa45   :  { %v3411_v21 = vadd.f32 %v4694_v44, %v3409_v26  ;;  %v4702_v54 = vpop.eup %4701  ;;  %v3417_v59 = vrot.slane %v4700_v35, 3 }
 0xa46   :  { %v4704_v60 = vpop.eup %4703  ;;  %v3421_v48 = vrot.slane %v4702_v54, 4 }
 0xa47   :  { %v3415_v8 = vadd.f32 %v3413_v37, %v3411_v21  ;;  %v4706_v28 = vpop.eup %4705  ;;  %v3425_v55 = vrot.slane %v4704_v60, 5 }
 0xa48   :  { %v4708_v53 = vpop.eup %4707  ;;  %v3429_v10 = vrot.slane %v4706_v28, 6 }
 0xa49   :  { %v3419_v22 = vadd.f32 %v3417_v59, %v3415_v8  ;;  %v3433_v2 = vrot.slane %v4708_v53, 7  ;;  %v4722_v8 = vld [vmem:[#allocation3] sm:$0xff] }
 0xa4b   :  { %v3423_v27 = vadd.f32 %v3421_v48, %v3419_v22  ;;  %v4723_v22 = vld [vmem:[#allocation3 + $0x8] sm:$0xff] }
 0xa4d   :  { %v3427_v51 = vadd.f32 %v3425_v55, %v3423_v27 }
 0xa4f   :  { %v3431_v43 = vadd.f32 %v3429_v10, %v3427_v51 }
 0xa51   :  { %v3435_v36 = vadd.f32 %v3433_v2, %v3431_v43 }
 0xa53   :  { %4709 = vrcp.f32 %v3435_v36 }
 0xa5d   :  { %v4710_v0 = vpop.eup %4709 }
 0xa5e   :  { %v3437_v18 = vmul.f32 %v4710_v0, %v4694_v44  ;;  %v3451_v34 = vrot.slane %v4710_v0, 7  ;;  %v3466_v7 = vrot.slane %v4710_v0, 6  ;;  %v3481_v17 = vrot.slane %v4710_v0, 5 }
 0xa5f   :  { %v3496_v23 = vrot.slane %v4710_v0, 4  ;;  %v3511_v1 = vrot.slane %v4710_v0, 3  ;;  %v3526_v13 = vrot.slane %v4710_v0, 2  ;;  %v3541_v11 = vrot.slane %v4710_v0, 1 }
 0xa60   :  { %v3441_v39 = vrot.slane %v3437_v18, %v3440_v52  ;;  %v3453_v14 = vmul.f32 %v4696_v57, %v3451_v34  ;;  %v3468_v58 = vmul.f32 %v4698_v25, %v3466_v7  ;;  %v3483_v30 = vmul.f32 %v4700_v35, %v3481_v17  ;;  %v4724_v35 = vld [vmem:[#allocation3 + $0x20] sm:$0xff]  ;;  %v4730_v34 = vld [vmem:[#allocation3 + $0x70] sm:$0xff]  ;;  %v4731_v17 = vld [vmem:[#allocation3 + $0x78] sm:$0xff] }
 0xa61   :  { %v3498_v20 = vmul.f32 %v4702_v54, %v3496_v23  ;;  %v3513_v26 = vmul.f32 %v4704_v60, %v3511_v1  ;;  %v3528_v21 = vmul.f32 %v4706_v28, %v3526_v13  ;;  %v3543_v37 = vmul.f32 %v4708_v53, %v3541_v11  ;;  %v4725_v60 = vld [vmem:[#allocation3 + $0x28] sm:$0xff]  ;;  %v4726_v53 = vld [vmem:[#allocation3 + $0x30] sm:$0xff] }
 0xa62   :  { %v3442_v59 = vmul.f32 %v4722_v8, %v3441_v39  ;;  %v3443_v48 = vmul.f32 %v4723_v22, %v3441_v39  ;;  %v3444_v44 = vmul.f32 %v3441_v39, %v5849_v50  ;;  %v3445_v27 = vmul.f32 %v3441_v39, %v5851_v32 }
 0xa63   :  { %v3457_v55 = vrot.slane %v3453_v14, %v3456_v29  ;;  %v3472_v51 = vrot.slane %v3468_v58, %v3471_v40  ;;  %v3487_v10 = vrot.slane %v3483_v30, %v3486_v6  ;;  %v3502_v43 = vrot.slane %v3498_v20, %v3501_v24 }
 0xa64   :  { %v3517_v2 = vrot.slane %v3513_v26, %v3516_v56  ;;  %v3532_v57 = vrot.slane %v3528_v21, %v3531_v38  ;;  %v3547_v25 = vrot.slane %v3543_v37, %v3546_v12  ;;  %v4728_v56 = vld [vmem:[#allocation3 + $0x60] sm:$0xff]  ;;  %v4729_v12 = vld [vmem:[#allocation3 + $0x68] sm:$0xff] }
 0xa65   :  { %v3458_v54 = vmul.f32 %v4724_v35, %v3457_v55  ;;  %v3459_v28 = vmul.f32 %v4725_v60, %v3457_v55  ;;  %v3460_v36 = vmul.f32 %v4726_v53, %v3457_v55  ;;  %v3461_v9 = vmul.f32 %v4727_v41, %v3457_v55  ;;  %v4732_v26 = vld [vmem:[#allocation3 + $0xa0] sm:$0xff]  ;;  %v4733_v37 = vld [vmem:[#allocation3 + $0xa8] sm:$0xff] }
 0xa66   :  { %v3473_v52 = vmul.f32 %v3472_v51, %v5857_v46  ;;  %v3474_v50 = vmul.f32 %v3472_v51, %v5853_v16  ;;  %v3475_v32 = vmul.f32 %v3472_v51, %v5865_v49  ;;  %v3476_v29 = vmul.f32 %v3472_v51, %v5863_v3 }
 0xa67   :  { %v3462_v40 = vadd.f32 %v3458_v54, %v3442_v59  ;;  %v3463_v6 = vadd.f32 %v3459_v28, %v3443_v48  ;;  %v3464_v0 = vadd.f32 %v3460_v36, %v3444_v44  ;;  %v3465_v24 = vadd.f32 %v3461_v9, %v3445_v27  ;;  %v4734_v59 = vld [vmem:[#allocation3 + $0xb0] sm:$0xff]  ;;  %v4735_v48 = vld [vmem:[#allocation3 + $0xb8] sm:$0xff] }
 0xa68   :  { %v3488_v38 = vmul.f32 %v4728_v56, %v3487_v10  ;;  %v3489_v18 = vmul.f32 %v4729_v12, %v3487_v10  ;;  %v3490_v7 = vmul.f32 %v4730_v34, %v3487_v10  ;;  %v3491_v23 = vmul.f32 %v4731_v17, %v3487_v10 }
 0xa69   :  { %v3477_v1 = vadd.f32 %v3473_v52, %v3462_v40  ;;  %v3478_v46 = vadd.f32 %v3474_v50, %v3463_v6  ;;  %v3479_v13 = vadd.f32 %v3475_v32, %v3464_v0  ;;  %v3480_v16 = vadd.f32 %v3476_v29, %v3465_v24 }
 0xa6a   :  { %v3503_v49 = vmul.f32 %v3502_v43, %v5875_v19  ;;  %v3504_v3 = vmul.f32 %v3502_v43, %v5871_v4  ;;  %v3505_v11 = vmul.f32 %v3502_v43, %v5881_v15  ;;  %v3506_v39 = vmul.f32 %v3502_v43, %v5879_v5 }
 0xa6b   :  { %v3492_v14 = vadd.f32 %v3488_v38, %v3477_v1  ;;  %v3493_v58 = vadd.f32 %v3489_v18, %v3478_v46  ;;  %v3494_v30 = vadd.f32 %v3490_v7, %v3479_v13  ;;  %v3495_v20 = vadd.f32 %v3491_v23, %v3480_v16 }
 0xa6c   :  { %v3518_v21 = vmul.f32 %v4732_v26, %v3517_v2  ;;  %v3519_v8 = vmul.f32 %v4733_v37, %v3517_v2  ;;  %v3520_v22 = vmul.f32 %v4734_v59, %v3517_v2  ;;  %v3521_v44 = vmul.f32 %v4735_v48, %v3517_v2 }
 0xa6d   :  { %v3507_v27 = vadd.f32 %v3503_v49, %v3492_v14  ;;  %v3508_v19 = vadd.f32 %v3504_v3, %v3493_v58  ;;  %v3509_v55 = vadd.f32 %v3505_v11, %v3494_v30  ;;  %v3510_v4 = vadd.f32 %v3506_v39, %v3495_v20 }
 0xa6e   :  { %v3533_v15 = vmul.f32 %v3532_v57, %v5891_v63  ;;  %v3534_v5 = vmul.f32 %v3532_v57, %v5887_v33  ;;  %v3535_v51 = vmul.f32 %v3532_v57, %v5897_v62  ;;  %v3536_v10 = vmul.f32 %v3532_v57, %v5895_v61 }
 0xa6f   :  { %v3522_v43 = vadd.f32 %v3518_v21, %v3507_v27  ;;  %v3523_v35 = vadd.f32 %v3519_v8, %v3508_v19  ;;  %v3524_v54 = vadd.f32 %v3520_v22, %v3509_v55  ;;  %v3525_v60 = vadd.f32 %v3521_v44, %v3510_v4 }
 0xa70   :  { %v3548_v28 = vmul.f32 %v3547_v25, %v5830_v45  ;;  %v3549_v2 = vmul.f32 %v3547_v25, %v5832_v47  ;;  %v3550_v53 = vmul.f32 %v3547_v25, %v5841_v31  ;;  %v3551_v36 = vmul.f32 %v3547_v25, %v5834_v42 }
 0xa71   :  { %v3537_v41 = vadd.f32 %v3533_v15, %v3522_v43  ;;  %v3538_v63 = vadd.f32 %v3534_v5, %v3523_v35  ;;  %v3539_v9 = vadd.f32 %v3535_v51, %v3524_v54  ;;  %v3540_v33 = vadd.f32 %v3536_v10, %v3525_v60 }
 0xa73   :  { %v3552_v52 = vadd.f32 %v3548_v28, %v3537_v41  ;;  %v3553_v62 = vadd.f32 %v3549_v2, %v3538_v63  ;;  %v3554_v50 = vadd.f32 %v3550_v53, %v3539_v9  ;;  %v3555_v61 = vadd.f32 %v3551_v36, %v3540_v33 }
 0xa75   :  { %3556 = vst.msk [vmem:[%s6050_s9] sm:$0xff] %vm287_vm1, %v3552_v52  ;;  %3557 = vst.msk [vmem:[%s6050_s9 + $0x8] sm:$0xff] %vm287_vm1, %v3553_v62 }
 0xa76   :  { %3558 = vst.msk [vmem:[%s6050_s9 + $0x10] sm:$0xff] %vm287_vm1, %v3554_v50  ;;  %3559 = vst.msk [vmem:[%s6050_s9 + $0x18] sm:$0xff] %vm287_vm1, %v3555_v61 }

</bundles_post_ra>
